<compile_context>
chip_gen: v7x
topology: tpu7x:2x2x1
jax: 0.10.0
libtpu: 0.0.40
codegen_flags: <defaults>
</compile_context>

<pallas_src>
import jax
import jax.numpy as jnp
from jax.experimental import pallas as pl
from jax.experimental.pallas import tpu as pltpu

CLS_DIM = (37, 10, 4)
IN_DIM = 1800
HID_DIM = 2048
OUT_DIM = CLS_DIM[0] * CLS_DIM[1] * CLS_DIM[2]   # 1480
OUT_PAD = 1536                                   # 12 * 128 -> lane-dense output
TH = 512                                         # hidden-dim tile (4 grid steps)


def _num_tensorcores() -> int:
    """Best-effort trace-time query of TensorCores per chip (v7x has 2)."""
    try:
        info = pltpu.get_tpu_info()
    except Exception:
        return 1
    for name in ("num_cores", "num_tensorcores", "tensorcores_per_chip",
                 "cores_per_chip", "core_count"):
        v = getattr(info, name, None)
        if isinstance(v, int) and v >= 1:
            return v
    return 1


def _mlp_kernel(x_ref, w1_ref, b1_ref, w2_ref, b2_ref, o_ref):
    # Grid = (output-column split [parallel], hidden reduction [arbitrary]).
    k = pl.program_id(1)

    @pl.when(k == 0)
    def _():
        # Initialize the VMEM-resident output tile with the second bias.
        o_ref[...] = jnp.broadcast_to(b2_ref[...], o_ref.shape).astype(o_ref.dtype)

    # First linear (one hidden chunk) + bias + ReLU.  bf16 x bf16 -> f32 acc.
    h = jnp.dot(x_ref[...].astype(jnp.bfloat16), w1_ref[...],
                preferred_element_type=jnp.float32)
    h = jnp.maximum(h + b1_ref[...], 0.0)

    # Second linear: accumulate this hidden chunk's contribution in f32
    # directly into the resident output block.
    o_ref[...] += jnp.dot(h.astype(jnp.bfloat16), w2_ref[...],
                          preferred_element_type=jnp.float32).astype(o_ref.dtype)


def prepare_params(w1, b1, w2, b2):
    """Cast weights to bf16 once and zero-pad the output dim to OUT_PAD."""
    w1p = w1.astype(jnp.bfloat16)                                   # (1800, 2048)
    b1p = b1.reshape(1, HID_DIM).astype(jnp.float32)                # (1, 2048)
    w2p = jnp.pad(w2, ((0, 0), (0, OUT_PAD - OUT_DIM))).astype(jnp.bfloat16)
    b2p = jnp.pad(b2.reshape(1, OUT_DIM),
                  ((0, 0), (0, OUT_PAD - OUT_DIM))).astype(jnp.float32)
    return w1p, b1p, w2p, b2p


def classifier_forward(feat, w1, b1, w2, b2, *, col_splits=None):
    """feat: (B, 1800) float32 -> (B, 37, 10, 4) float32.

    w1: (1800, 2048) bf16, b1: (1, 2048) f32,
    w2: (2048, 1536) bf16 zero-padded, b2: (1, 1536) f32  (see prepare_params).
    """
    B = feat.shape[0]

    if col_splits is None:
        col_splits = 2 if _num_tensorcores() >= 2 else 1
    nj = col_splits if (OUT_PAD % (col_splits * 128) == 0) else 1
    tj = OUT_PAD // nj

    # Pad batch to a multiple of 8 (f32 sublane tile) for aligned stores.
    b_pad = max(8, ((B + 7) // 8) * 8)
    if b_pad != B:
        feat = jnp.pad(feat, ((0, b_pad - B), (0, 0)))

    nk = HID_DIM // TH

    out = pl.pallas_call(
        _mlp_kernel,
        out_shape=jax.ShapeDtypeStruct((b_pad, OUT_PAD), jnp.float32),
        grid_spec=pltpu.PrefetchScalarGridSpec(
            num_scalar_prefetch=0,
            grid=(nj, nk),
            in_specs=[
                pl.BlockSpec((b_pad, IN_DIM), lambda j, k: (0, 0)),   # feat (resident)
                pl.BlockSpec((IN_DIM, TH), lambda j, k: (0, k)),      # W1 hidden tile
                pl.BlockSpec((1, TH), lambda j, k: (0, k)),           # b1 hidden tile
                pl.BlockSpec((TH, tj), lambda j, k: (k, j)),          # W2 tile
                pl.BlockSpec((1, tj), lambda j, k: (0, j)),           # b2 column tile
            ],
            out_specs=pl.BlockSpec((b_pad, tj), lambda j, k: (0, j)),
        ),
        compiler_params=pltpu.CompilerParams(
            dimension_semantics=("parallel", "arbitrary"),
            vmem_limit_bytes=32 * 1024 * 1024,
        ),
    )(feat, w1, b1, w2, b2)

    # Strip padding and apply the PyTorch .view(-1, 37, 10, 4).
    return out[:B, :OUT_DIM].reshape(B, *CLS_DIM)


def init_params(key):
    """Synthetic init matching real_init_weights: Linear weights ~ N(0, 0.01),
    biases at 0.  Master copies kept in f32; prepare_params casts/pads."""
    k1, k2 = jax.random.split(key)
    w1 = 0.01 * jax.random.normal(k1, (IN_DIM, HID_DIM), dtype=jnp.float32)
    b1 = jnp.zeros((1, HID_DIM), dtype=jnp.float32)
    w2 = 0.01 * jax.random.normal(k2, (HID_DIM, OUT_DIM), dtype=jnp.float32)
    b2 = jnp.zeros((1, OUT_DIM), dtype=jnp.float32)
    return w1, b1, w2, b2


if __name__ == "__main__":
    key = jax.random.PRNGKey(0)
    kp, kx = jax.random.split(key)
    w1, b1, w2, b2 = init_params(kp)
    pw1, pb1, pw2, pb2 = prepare_params(w1, b1, w2, b2)

    B = 4
    feat = jax.random.normal(kx, (B, IN_DIM), dtype=jnp.float32)

    out = classifier_forward(feat, pw1, pb1, pw2, pb2)
    out = jax.block_until_ready(out)

    # Pure-JAX reference mirroring the kernel's bf16 weights / f32 accumulation.
    x16 = feat.astype(jnp.bfloat16).astype(jnp.float32)
    h_ref = jnp.maximum(x16 @ pw1.astype(jnp.float32) + pb1, 0.0)
    ref = (h_ref.astype(jnp.bfloat16).astype(jnp.float32)
           @ pw2.astype(jnp.float32)[:, :OUT_DIM] + b2).reshape(B, *CLS_DIM)

    assert out.shape == (B, 37, 10, 4)
    max_err = float(jnp.max(jnp.abs(out - ref)))
    assert jnp.allclose(out, ref, atol=1e-2, rtol=1e-2), max_err

    print("KERNEL_OK")
</pallas_src>

<mosaic_0001>
module attributes {stable_mosaic.version = 11 : i64} {
  func.func @_mlp_kernel(%arg0: i32, %arg1: i32, %arg2: memref<8x1800xf32, #tpu.memory_space<vmem>>, %arg3: memref<1800x512xbf16, #tpu.memory_space<vmem>>, %arg4: memref<1x512xf32, #tpu.memory_space<vmem>>, %arg5: memref<512x1536xbf16, #tpu.memory_space<vmem>>, %arg6: memref<1x1536xf32, #tpu.memory_space<vmem>>, %arg7: memref<8x1536xf32, #tpu.memory_space<vmem>>) attributes {dimension_semantics = [#tpu.dimension_semantics<parallel>, #tpu.dimension_semantics<arbitrary>], iteration_bounds = array<i64: 1, 4>, scalar_prefetch = 0 : i64, scratch_operands = 0 : i64, tpu.core_type = #tpu.core_type<tc>, window_params = [{pipeline_mode = #tpu.pipeline_mode<synchronous>, transform_indices = @transform_0, window_bounds = array<i64: 8, 1800>}, {transform_indices = @transform_1, window_bounds = array<i64: 1800, 512>}, {transform_indices = @transform_2, window_bounds = array<i64: 1, 512>}, {transform_indices = @transform_3, window_bounds = array<i64: 512, 1536>}, {transform_indices = @transform_4, window_bounds = array<i64: 1, 1536>}, {transform_indices = @transform_5, window_bounds = array<i64: 8, 1536>}]} {
    %c0_i32 = arith.constant 0 : i32
    %0 = arith.cmpi eq, %arg1, %c0_i32 : i32
    %1 = arith.extui %0 : i1 to i32
    %c0_i32_0 = arith.constant 0 : i32
    %2 = arith.cmpi ne, %1, %c0_i32_0 : i32
    scf.if %2 {
      %c0_14 = arith.constant 0 : index
      %c0_15 = arith.constant 0 : index
      %18 = vector.load %arg6[%c0_14, %c0_15] : memref<1x1536xf32, #tpu.memory_space<vmem>>, vector<1x1536xf32>
      %19 = vector.shape_cast %18 : vector<1x1536xf32> to vector<1x1536xf32>
      %20 = vector.broadcast %19 : vector<1x1536xf32> to vector<8x1536xf32>
      %c0_16 = arith.constant 0 : index
      %c0_17 = arith.constant 0 : index
      %21 = vector.load %arg7[%c0_16, %c0_17] : memref<8x1536xf32, #tpu.memory_space<vmem>>, vector<8x1536xf32>
      tpu.vector_store %arg7[%c0_16, %c0_17], %20 {strides = array<i32>} : memref<8x1536xf32, #tpu.memory_space<vmem>>, vector<8x1536xf32>,
    } else {
    }
    %c0 = arith.constant 0 : index
    %c0_1 = arith.constant 0 : index
    %3 = vector.load %arg2[%c0, %c0_1] : memref<8x1800xf32, #tpu.memory_space<vmem>>, vector<8x1800xf32>
    %4 = arith.truncf %3 : vector<8x1800xf32> to vector<8x1800xbf16>
    %c0_2 = arith.constant 0 : index
    %c0_3 = arith.constant 0 : index
    %5 = vector.load %arg3[%c0_2, %c0_3] : memref<1800x512xbf16, #tpu.memory_space<vmem>>, vector<1800x512xbf16>
    %cst = arith.constant dense<0.000000e+00> : vector<8x512xf32>
    %6 = tpu.matmul %4, %5, %cst {dimension_numbers = #tpu.dot_dimension_numbers<[1], [0], [0], [1], [0, 0, 1, 1], [], []>} : vector<8x1800xbf16>, vector<1800x512xbf16>, vector<8x512xf32> -> vector<8x512xf32>
    %c0_4 = arith.constant 0 : index
    %c0_5 = arith.constant 0 : index
    %7 = vector.load %arg4[%c0_4, %c0_5] : memref<1x512xf32, #tpu.memory_space<vmem>>, vector<1x512xf32>
    %8 = vector.broadcast %7 : vector<1x512xf32> to vector<8x512xf32>
    %9 = arith.addf %6, %8 : vector<8x512xf32>
    %cst_6 = arith.constant 0.000000e+00 : f32
    %10 = vector.broadcast %cst_6 : f32 to vector<8x512xf32>
    %11 = arith.maximumf %9, %10 : vector<8x512xf32>
    %c0_7 = arith.constant 0 : index
    %c0_8 = arith.constant 0 : index
    %12 = vector.load %arg7[%c0_7, %c0_8] : memref<8x1536xf32, #tpu.memory_space<vmem>>, vector<8x1536xf32>
    %13 = arith.truncf %11 : vector<8x512xf32> to vector<8x512xbf16>
    %c0_9 = arith.constant 0 : index
    %c0_10 = arith.constant 0 : index
    %14 = vector.load %arg5[%c0_9, %c0_10] : memref<512x1536xbf16, #tpu.memory_space<vmem>>, vector<512x1536xbf16>
    %cst_11 = arith.constant dense<0.000000e+00> : vector<8x1536xf32>
    %15 = tpu.matmul %13, %14, %cst_11 {dimension_numbers = #tpu.dot_dimension_numbers<[1], [0], [0], [1], [0, 0, 1, 1], [], []>} : vector<8x512xbf16>, vector<512x1536xbf16>, vector<8x1536xf32> -> vector<8x1536xf32>
    %16 = arith.addf %12, %15 : vector<8x1536xf32>
    %c0_12 = arith.constant 0 : index
    %c0_13 = arith.constant 0 : index
    %17 = vector.load %arg7[%c0_12, %c0_13] : memref<8x1536xf32, #tpu.memory_space<vmem>>, vector<8x1536xf32>
    tpu.vector_store %arg7[%c0_12, %c0_13], %16 {strides = array<i32>} : memref<8x1536xf32, #tpu.memory_space<vmem>>, vector<8x1536xf32>,
    return
  }
  func.func @transform_0(%arg0: i32, %arg1: i32) -> (i32, i32) {
    %c0_i32 = arith.constant 0 : i32
    %c0_i32_0 = arith.constant 0 : i32
    %c0_i32_1 = arith.constant 0 : i32
    return %c0_i32, %c0_i32_0 : i32, i32
  }
  func.func @transform_1(%arg0: i32, %arg1: i32) -> (i32, i32) {
    %c0_i32 = arith.constant 0 : i32
    %c0_i32_0 = arith.constant 0 : i32
    return %c0_i32, %arg1 : i32, i32
  }
  func.func @transform_2(%arg0: i32, %arg1: i32) -> (i32, i32) {
    %c0_i32 = arith.constant 0 : i32
    %c0_i32_0 = arith.constant 0 : i32
    return %c0_i32, %arg1 : i32, i32
  }
  func.func @transform_3(%arg0: i32, %arg1: i32) -> (i32, i32) {
    %c0_i32 = arith.constant 0 : i32
    return %arg1, %arg0 : i32, i32
  }
  func.func @transform_4(%arg0: i32, %arg1: i32) -> (i32, i32) {
    %c0_i32 = arith.constant 0 : i32
    %c0_i32_0 = arith.constant 0 : i32
    return %c0_i32, %arg0 : i32, i32
  }
  func.func @transform_5(%arg0: i32, %arg1: i32) -> (i32, i32) {
    %c0_i32 = arith.constant 0 : i32
    %c0_i32_0 = arith.constant 0 : i32
    return %c0_i32, %arg0 : i32, i32
  }
}

</mosaic_0001>

<bundles_post_ra>
// kernel: tpu_custom_call.1
= control target key start
LH: loop header
LB: loop body
LE: loop exit
PB: predicated region body
PF: predicated region fallthrough
CT: control target
= control target key end

     0   :  { %s10569_s0 = inlined_call_operand.hbm [shape: f32[8,1800], index: 0, kind: input, shape index: {}]   ;;  %s10570_s1 = inlined_call_operand.hbm [shape: bf16[1800,2048], index: 1, kind: input, shape index: {}]   ;;  %s10571_s2 = inlined_call_operand.hbm [shape: f32[1,2048], index: 2, kind: input, shape index: {}]   ;;  %s10572_s3 = inlined_call_operand.hbm [shape: bf16[2048,1536], index: 3, kind: input, shape index: {}]   ;;  %s10573_s4 = inlined_call_operand.hbm [shape: f32[1,1536], index: 4, kind: input, shape index: {}]   ;;  %s10574_s5 = inlined_call_operand.hbm [shape: f32[8,1536], index: 5, kind: output, shape index: {}]  }
   0x1   :  { %10588 = sst [smem:[#allocation20_spill]] %s10570_s1 }
   0x2   :  { %10589 = sst [smem:[#allocation21_spill]] %s10573_s4 }
   0x3   :  { %10 = vsyncpa [#allocation3], 0 }
   0x4   :  { %11 = vsyncpa [#allocation6], 0 }
   0x5   :  { %13 = vsyncpa [#allocation6 + $0x1], 0 }
   0x6   :  { %14 = vsyncpa [#allocation9], 0 }
   0x7   :  { %16 = vsyncpa [#allocation9 + $0x1], 0 }
   0x8   :  { %17 = vsyncpa [#allocation4], 0  ;;  %s9415_s18 = smov 0   ;;  %s9417_s19 = smov 0  }
   0x9   :  { %s9419_s20 = smov 0   ;;  %s9421_s21 = smov 0  }
   0xa   :  { %s9423_s22 = smov 0   ;;  %s9425_s23 = smov 0  }
   0xb LB: > { %10590 = sst [smem:[#allocation17_spill]] %s9359_s20  ;;  %s9444_s24 = sadd.s32 4294967295, %s9371_s23   ;;  %s9371_s23 = sphi %s9425_s23, %s23_s23   ;;  %s9367_s22 = sphi %s9423_s22, %s10619_s22   ;;  %s9363_s21 = sphi %s9421_s21, %s10618_s21   ;;  %s9359_s20 = sphi %s9419_s20, %s10614_s20   ;;  %s9355_s19 = sphi %s9417_s19, %s10617_s19   ;;  %s9351_s18 = sphi %s9415_s18, %s10616_s18  }
   0xc   : > { %s63_s25 = sadd.s32 1, %s9359_s20  ;;  %p70_p0 = scmp.ne.s32.totalorder %s9359_s20, %s9355_s19 }
   0xd   : > { %p71_p1 = scmp.eq.s32.totalorder %s9371_s23, 0  ;;  %p76_p2 = scmp.ne.s32.totalorder %s9355_s19, %s9351_s18 }
   0xe   : > { %p10575_p3 = scmp.eq.s32.totalorder %s9444_s24, 0  ;;  %p6854_p5 = scmp.ge.s32.totalorder %s9371_s23, 1 }
   0xf   : > { %p72_p4 = por %p71_p1, %p70_p0  ;;  %p193_p7 = scmp.lt.s32.totalorder %s9371_s23, 5 }
  0x10   : > { %p9455_p6 = por %p10575_p3, %p76_p2  ;;  %s9373_s28 = smov [#allocation10]  }
  0x11   : > { %p9460_p8 = pnand %p6854_p5, %p193_p7  ;;  %s220_s29 = sshll.u32 %s9373_s28, 4  ;;  %s221_s29 = int_to_ptr.vmem [resolvable:$true] %s220_s29 }
  0x12   : > { %s10591_s26 = scalar_select %p9455_p6, 1, 0 }
  0x13   : > { %s10592_s27 = scalar_select %p9460_p8, 1, 0 }
  0x14   : > { %p7800_p9 = pneg %p9460_p8  ;;  %p7819_p10 = scmp.lt.s32.totalorder %s9371_s23, 4 }
  0x15   : > { %s10582_s30 = sand.u32 1, %s9371_s23   ;;  %s10595_s4 = sld [smem:[#allocation21_spill]] }
  0x16   : > { %p9470_p11 = pnand %p7800_p9, %p10575_p3  ;;  %p9474_p12 = pnand %p7819_p10, %p72_p4 }
  0x18   : > { %s10593_s6 = scalar_select %p9470_p11, 1, 0 }
  0x19   : > { %s10594_s7 = scalar_select %p9474_p12, 1, 0 }
  0x1a   : > { %p10579_p0 = pneg %p9470_p11 }
  0x1b   : > { %s9133_s10 = scalar_lea.hbm %s10595_s4, 192 }
  0x1c   : > { %p9134_p13 = scmp.ne.s32.totalorder %s10595_s4, %s9133_s10  ;;  %p9140_p4 = scmp.lt.u32.totalorder %s9133_s10, %s10595_s4 }
  0x1e   : > { %p9136_p1 = pnand %p10579_p0, %p9134_p13 }
  0x20   : > { %p9137_p2 = pneg %p9136_p1 }
  0x22   : > { %p9142_p5 = pnand %p9140_p4, %p9137_p2 }
  0x24   : > { %9145 = shalt.err (!%p9142_p5)
}
  0x25   : > { %s9146_s15 = scalar_lea.vmem %s221_s29, 192  ;;  %p9154_p3 = scmp.lt.s32.totalorder %s221_s29, %s221_s29 }
  0x26   : > { %p9147_p7 = scmp.ne.s32.totalorder %s221_s29, %s9146_s15  ;;  %p9155_p6 = scmp.lt.s32.totalorder %s9146_s15, %s9146_s15 }
  0x28   : > { %p9149_p9 = pnand %p9147_p7, %p10579_p0  ;;  %p9156_p8 = por %p9155_p6, %p9154_p3 }
  0x2a   : > { %p9150_p10 = pneg %p9149_p9 }
  0x2c   : > { %p9157_p12 = pnand %p9156_p8, %p9150_p10 }
  0x2e   : > { %9160 = shalt.err (!%p9157_p12)
}
  0x2f   : > { %7806 = dma.hbm_to_vmem [thread:$0]  (!%p9470_p11), %s10595_s4, 192, %s221_s29, [#allocation9]  }
  0x30   : > { %s32_s18 = sadd.s32 1, %s9367_s22  ;;  %s9502_s28 = sand.u32 1, %s9359_s20  }
  0x31   : > { %p33_p3 = scmp.ge.s32.totalorder %s32_s18, 4  ;;  %s7777_s8 = smul.u32 3600, %s9502_s28 }
  0x32   : > { %s7715_s9 = sshll.u32 %s9367_s22, 8  ;;  %s10597_s1 = sld [smem:[#allocation20_spill]] }
  0x33   : > { %s10621_s18 = smov (%p33_p3, %s32_s18), 0  ;;  %s235_s13 = scalar_lea.vmem [#allocation5], %s7777_s8 }
  0x34   : > { %10596 = sst [smem:[#allocation18_spill]] %s10621_s18  ;;  %s60_s29 = ssub.s32 %s9367_s22, %s10621_s18 }
  0x35   : > { %s242_s14 = sshll.u32 %s235_s13, 4  ;;  %p61_p6 = scmp.eq.s32.totalorder %s60_s29, 0  ;;  %s9515_s14 = int_to_ptr.vmem [resolvable:$true] %s242_s14 }
  0x36   : > { %s9524_s16 = scalar_lea.sflag [#allocation6], %s10582_s30  ;;  %p10599_p12 = scmp.ne.s32.totalorder %s10594_s7, 0 }
  0x37   : > { %s9520_s15 = scalar_select %p61_p6, %s9359_s20, %s63_s25  }
  0x38   : > { %s9511_s12 = scalar_lea.hbm %s10597_s1, %s7715_s9  ;;  %p9530_p13 = pneg %p10599_p12 }
  0x39   : > { %10598 = sst [smem:[#allocation19_spill]] %s9520_s15  ;;  %s9161_s17 = scalar_lea.hbm %s9511_s12, 57600 }
  0x3a   : > { %p9162_p8 = scmp.ne.s32.totalorder %s9511_s12, %s9161_s17  ;;  %s9166_s11 = scalar_lea.hbm %s10597_s1, 230400 }
  0x3b   : > { %s10600_s9 = scalar_select %p9530_p13, 1, 0 }
  0x3c   : > { %p9164_p1 = pnand %p9530_p13, %p9162_p8  ;;  %p9167_p4 = scmp.lt.u32.totalorder %s9511_s12, %s10597_s1 }
  0x3d   : > { %p9168_p5 = scmp.lt.u32.totalorder %s9166_s11, %s9161_s17  ;;  %p9170_p9 = scmp.lt.u32.totalorder %s9161_s17, %s9511_s12 }
  0x3e   : > { %p9165_p2 = pneg %p9164_p1 }
  0x3f   : > { %p9169_p7 = por %p9168_p5, %p9167_p4 }
  0x41   : > { %p9171_p10 = por %p9170_p9, %p9169_p7 }
  0x43   : > { %p9172_p3 = pnand %p9171_p10, %p9165_p2 }
  0x45   : > { %9175 = shalt.err (!%p9172_p3)
}
  0x46   : > { %s9176_s13 = scalar_lea.vmem %s9515_s14, 57600  ;;  %s9374_s8 = smov [#allocation5]  }
  0x47   : > { %p9177_p6 = scmp.ne.s32.totalorder %s9515_s14, %s9176_s13  ;;  %s9181_s10 = sshll.u32 %s9374_s8, 4  ;;  %s9182_s10 = int_to_ptr.vmem [resolvable:$false] %s9181_s10 }
  0x48   : > { %s9183_s25 = scalar_lea.vmem %s9182_s10, 115200  ;;  %p9184_p0 = scmp.lt.s32.totalorder %s9515_s14, %s9182_s10 }
  0x49   : > { %p9179_p8 = pnand %p9177_p6, %p9530_p13  ;;  %p9185_p11 = scmp.lt.s32.totalorder %s9183_s25, %s9176_s13 }
  0x4b   : > { %p9180_p1 = pneg %p9179_p8  ;;  %p9186_p4 = por %p9185_p11, %p9184_p0 }
  0x4d   : > { %p9187_p5 = pnand %p9186_p4, %p9180_p1 }
  0x4f   : > { %9190 = shalt.err (!%p9187_p5)
}
  0x50   : > { %s9375_s17 = smov 1024   ;;  %s9376_s11 = smov 256  }
  0x51   : > { %s9377_s29 = smov 16   ;;  %s9378_s30 = smov [#allocation2]  }
  0x52   : > { %7810 = dma.hbm_to_vmem [thread:$0]  (!%p10599_p12), %s9511_s12, 57600, %s9515_s14, %s9524_s16, %s9375_s17, %s9376_s11, %s9377_s29  }
  0x53   : > { %s206_s8 = sshll.u32 %s9378_s30, 4  ;;  %s6860_s1 = sshll.u32 %s9502_s28, 2  ;;  %s207_s8 = int_to_ptr.vmem [resolvable:$true] %s206_s8 }
  0x54   : > { %s9191_s25 = scalar_lea.hbm %s10569_s0, 1920  ;;  %p10601_p0 = scmp.ne.s32.totalorder %s10593_s6, 0 }
  0x55   : > { %p9192_p11 = scmp.ne.s32.totalorder %s10569_s0, %s9191_s25  ;;  %p9198_p10 = scmp.lt.u32.totalorder %s9191_s25, %s10569_s0 }
  0x56   : > { %p10602_p2 = pneg %p10601_p0 }
  0x58   : > { %p9194_p7 = pnand %p9192_p11, %p10602_p2 }
  0x5a   : > { %p9195_p9 = pneg %p9194_p7 }
  0x5c   : > { %p9200_p3 = pnand %p9198_p10, %p9195_p9 }
  0x5e   : > { %9203 = shalt.err (!%p9200_p3)
}
  0x5f   : > { %s9204_s30 = scalar_lea.vmem %s207_s8, 1920  ;;  %p10603_p8 = pmov %p10602_p2 }
  0x60   : > { %p9205_p6 = scmp.ne.s32.totalorder %s207_s8, %s9204_s30  ;;  %p9212_p5 = scmp.lt.s32.totalorder %s207_s8, %s207_s8 }
  0x61   : > { %p9213_p12 = scmp.lt.s32.totalorder %s9204_s30, %s9204_s30 }
  0x62   : > { %p9207_p1 = pnand %p9205_p6, %p10603_p8 }
  0x63   : > { %p9214_p13 = por %p9213_p12, %p9212_p5 }
  0x64   : > { %p9208_p4 = pneg %p9207_p1 }
  0x66   : > { %p9215_p2 = pnand %p9214_p13, %p9208_p4 }
  0x68   : > { %9218 = shalt.err (!%p9215_p2)
}
  0x69   : > { %7803 = dma.hbm_to_vmem [thread:$0]  (!%p10601_p0), %s10569_s0, 1920, %s207_s8, [#allocation3]  }
  0x6a   : > { %s7716_s20 = sshll.u32 %s9367_s22, 6  ;;  %s256_s17 = scalar_lea.vmem [#allocation7], %s6860_s1 }
  0x6b   : > { %s9579_s15 = scalar_lea.hbm %s10571_s2, %s7716_s20  ;;  %s264_s11 = sshll.u32 %s256_s17, 4  ;;  %s265_s11 = int_to_ptr.vmem [resolvable:$true] %s264_s11 }
  0x6c   : > { %s9219_s6 = scalar_lea.hbm %s9579_s15, 64  ;;  %p10604_p13 = scmp.ne.s32.totalorder %s10600_s9, 0 }
  0x6d   : > { %p9220_p12 = scmp.ne.s32.totalorder %s9579_s15, %s9219_s6  ;;  %s9224_s10 = scalar_lea.hbm %s10571_s2, 256 }
  0x6e   : > { %p9225_p0 = scmp.lt.u32.totalorder %s9579_s15, %s10571_s2  ;;  %p9226_p9 = scmp.lt.u32.totalorder %s9224_s10, %s9219_s6 }
  0x6f   : > { %p9222_p11 = pnand %p9220_p12, %p10604_p13  ;;  %p9228_p3 = scmp.lt.u32.totalorder %s9219_s6, %s9579_s15 }
  0x70   : > { %p9227_p10 = por %p9226_p9, %p9225_p0 }
  0x71   : > { %p9223_p7 = pneg %p9222_p11 }
  0x72   : > { %p9229_p6 = por %p9228_p3, %p9227_p10 }
  0x74   : > { %p9230_p8 = pnand %p9229_p6, %p9223_p7 }
  0x76   : > { %9233 = shalt.err (!%p9230_p8)
}
  0x77   : > { %s9234_s1 = scalar_lea.vmem %s265_s11, 64  ;;  %s9379_s30 = smov [#allocation7]  }
  0x78   : > { %p9235_p1 = scmp.ne.s32.totalorder %s265_s11, %s9234_s1  ;;  %s9239_s4 = sshll.u32 %s9379_s30, 4  ;;  %s9240_s4 = int_to_ptr.vmem [resolvable:$false] %s9239_s4 }
  0x79   : > { %s9241_s18 = scalar_lea.vmem %s9240_s4, 128  ;;  %p9242_p2 = scmp.lt.s32.totalorder %s265_s11, %s9240_s4 }
  0x7a   : > { %p9237_p4 = pnand %p9235_p1, %p10604_p13  ;;  %p9243_p12 = scmp.lt.s32.totalorder %s9241_s18, %s9234_s1 }
  0x7c   : > { %p9238_p5 = pneg %p9237_p4  ;;  %p9244_p11 = por %p9243_p12, %p9242_p2 }
  0x7e   : > { %p9245_p0 = pnand %p9244_p11, %p9238_p5 }
  0x80   : > { %9248 = shalt.err (!%p9245_p0)
}
  0x81   : > { %p10605_p9 = scmp.ne.s32.totalorder %s10594_s7, 0  ;;  %s7778_s20 = smul.u32 3072, %s9502_s28 }
  0x82   : > { %s7779_s12 = smul.u32 49152, %s9367_s22  ;;  %s10606_s10 = sand.u32 1, %s9371_s23  }
  0x83   : > { %7813 = dma.hbm_to_vmem [thread:$0]  (!%p10605_p9), %s9579_s15, 64, %s265_s11, %s9524_s16  }
  0x84   : > { %s9604_s6 = scalar_lea.hbm %s10572_s3, %s7779_s12  ;;  %s275_s29 = scalar_lea.vmem [#allocation8], %s7778_s20 }
  0x85   : > { %s285_s8 = sshll.u32 %s275_s29, 4  ;;  %s9610_s13 = scalar_lea.sflag [#allocation9], %s10606_s10  ;;  %s9606_s8 = int_to_ptr.vmem [resolvable:$true] %s285_s8 }
  0x86   : > { %s9249_s25 = scalar_lea.hbm %s9604_s6, 49152  ;;  %s9254_s15 = scalar_lea.hbm %s10572_s3, 196608 }
  0x87   : > { %p9250_p7 = scmp.ne.s32.totalorder %s9604_s6, %s9249_s25  ;;  %p9255_p6 = scmp.lt.u32.totalorder %s9604_s6, %s10572_s3 }
  0x88   : > { %p9256_p8 = scmp.lt.u32.totalorder %s9254_s15, %s9249_s25  ;;  %p9258_p4 = scmp.lt.u32.totalorder %s9249_s25, %s9604_s6 }
  0x89   : > { %p9252_p10 = pnand %p9250_p7, %p10604_p13 }
  0x8a   : > { %p9257_p1 = por %p9256_p8, %p9255_p6 }
  0x8b   : > { %p9253_p3 = pneg %p9252_p10 }
  0x8c   : > { %p9259_p5 = por %p9258_p4, %p9257_p1 }
  0x8e   : > { %p9260_p2 = pnand %p9259_p5, %p9253_p3 }
  0x90   : > { %9263 = shalt.err (!%p9260_p2)
}
  0x91   : > { %s9264_s30 = scalar_lea.vmem %s9606_s8, 49152  ;;  %s9380_s4 = smov [#allocation8]  }
  0x92   : > { %p9265_p12 = scmp.ne.s32.totalorder %s9606_s8, %s9264_s30  ;;  %s9269_s18 = sshll.u32 %s9380_s4, 4  ;;  %s9270_s18 = int_to_ptr.vmem [resolvable:$false] %s9269_s18 }
  0x93   : > { %s9271_s20 = scalar_lea.vmem %s9270_s18, 98304  ;;  %p9272_p7 = scmp.lt.s32.totalorder %s9606_s8, %s9270_s18 }
  0x94   : > { %p9267_p11 = pnand %p9265_p12, %p10604_p13  ;;  %p9273_p10 = scmp.lt.s32.totalorder %s9271_s20, %s9264_s30 }
  0x96   : > { %p9268_p0 = pneg %p9267_p11  ;;  %p9274_p6 = por %p9273_p10, %p9272_p7 }
  0x98   : > { %p9275_p8 = pnand %p9274_p6, %p9268_p0 }
  0x9a   : > { %9278 = shalt.err (!%p9275_p8)
}
  0x9b   : > { %s9381_s12 = smov 768   ;;  %s9382_s14 = smov 48  }
  0x9c   : > { %7816 = dma.hbm_to_vmem [thread:$0]  (!%p10605_p9), %s9604_s6, 49152, %s9606_s8, %s9610_s13, %s9381_s12, %s9381_s12, %s9382_s14  }
  0x9d   : > { %p10607_p13 = scmp.ne.s32.totalorder %s10592_s27, 0 }
  0x9e   : > { %p10608_p3 = scmp.eq.s32.totalorder (!%p10607_p13), %s9444_s24, 0 }
  0x9f   : > { %297 = sbr.rel (%p10607_p13) target bundleno = 1428 (0x594), region = 40 }
  0xa6   : > { %9330 = dma.done.wait (%p10608_p3), [#allocation3], 1920   ;;  %p10609_p1 = pmov %p10608_p3 }
  0xa7   : > { %s303_s9 = sand.u32 1, %s9444_s24   ;;  %s305_s17 = sand.u32 1, %s9355_s19  }
  0xa8   : > { %9332 = vsyncadd (%p10609_p1), [#allocation3], 4294965376  ;;  %s7780_s29 = smul.u32 3600, %s305_s17  ;;  %s304_s10 = scalar_lea.sflag [#allocation6], %s303_s9 }
  0xa9   : > { %p10610_p4 = scmp.ne.s32.totalorder %s10591_s26, 0 }
  0xaa   : > { %s9642_s25 = scalar_lea.vmem [#allocation5], %s7780_s29 }
  0xab   : > { %9334 = dma.done.wait (%p10610_p4), %s304_s10, 57664  }
  0xac   : > { %9336 = vsyncadd (%p10610_p4), %s304_s10, 4294909632  ;;  %s6868_s27 = sshll.u32 %s305_s17, 2  ;;  %s7781_s7 = smul.u32 3072, %s305_s17 }
  0xad   : > { %s9648_s6 = scalar_lea.vmem [#allocation7], %s6868_s27  ;;  %s322_s8 = scalar_lea.sflag [#allocation9], %s303_s9 }
  0xae   : > { %s9650_s13 = scalar_lea.vmem [#allocation8], %s7781_s7 }
  0xaf   : > { %9338 = dma.done.wait (%p10610_p4), %s322_s8, 49152  }
  0xb0   : > { %9340 = vsyncadd (%p10610_p4), %s322_s8, 4294918144  ;;  %p10611_p9 = pmov %p10609_p1 }
  0xb1   : > { %p10612_p5 = pmov %p10609_p1 }
  0xb2   : > { %9342 = dma.done.wait (%p10611_p9), [#allocation9], 192  }
  0xb3   : > { %9344 = vsyncadd (%p10612_p5), [#allocation9], 4294967104  ;;  %p6870_p2 = scmp.ne.s32.totalorder %s9363_s21, 0 }
  0xb4   : > { %v376_v0 = vlaneseq (!%p6870_p2)  ;;  %v372_v2 = vld [vmem:[#allocation10] sm:$0xff] (!%p6870_p2)  ;;  %v373_v11 = vld [vmem:[#allocation10 + $0x8] sm:$0xf] (!%p6870_p2) }
  0xb5   : > { %371 = sbr.rel (%p6870_p2) target bundleno = 194 (0xc2), region = 64 }
  0xb6   : > { %v377_v1 = vshrl.u32 (!%p6870_p2), %v376_v0, 7 }
  0xb8   : > { %v378_v3 = vsub.s32 (!%p6870_p2), 0, %v377_v1  ;;  %v382_v4 = vsub.s32 (!%p6870_p2), 1, %v377_v1  ;;  %v386_v5 = vsub.s32 (!%p6870_p2), 2, %v377_v1  ;;  %v390_v6 = vsub.s32 (!%p6870_p2), 3, %v377_v1 }
  0xb9   : > { %v394_v7 = vsub.s32 (!%p6870_p2), 4, %v377_v1  ;;  %v398_v8 = vsub.s32 (!%p6870_p2), 5, %v377_v1  ;;  %v402_v9 = vsub.s32 (!%p6870_p2), 6, %v377_v1  ;;  %v406_v10 = vsub.s32 (!%p6870_p2), 7, %v377_v1 }
  0xba   : > { %v379_v12 = vrot.slane (!%p6870_p2), %v372_v2, %v378_v3  ;;  %v383_v13 = vrot.slane (!%p6870_p2), %v372_v2, %v382_v4  ;;  %v387_v14 = vrot.slane (!%p6870_p2), %v372_v2, %v386_v5  ;;  %v391_v15 = vrot.slane (!%p6870_p2), %v372_v2, %v390_v6 }
  0xbb   : > { %v395_v16 = vrot.slane (!%p6870_p2), %v372_v2, %v394_v7  ;;  %v399_v17 = vrot.slane (!%p6870_p2), %v372_v2, %v398_v8  ;;  %v403_v18 = vrot.slane (!%p6870_p2), %v372_v2, %v402_v9  ;;  %v407_v19 = vrot.slane (!%p6870_p2), %v372_v2, %v406_v10 }
  0xbc   : > { %436 = vst [vmem:[#allocation11] sm:$0xff] %v379_v12  ;;  %437 = vst [vmem:[#allocation11 + $0x8] sm:$0xff] %v383_v13  ;;  %v411_v20 = vrot.slane %v373_v11, %v378_v3  ;;  %v415_v21 = vrot.slane %v373_v11, %v382_v4  ;;  %v419_v22 = vrot.slane %v373_v11, %v386_v5 }
  0xbd   : > { %438 = vst [vmem:[#allocation11 + $0x10] sm:$0xff] %v387_v14  ;;  %439 = vst [vmem:[#allocation11 + $0x18] sm:$0xff] %v391_v15  ;;  %v423_v23 = vrot.slane %v373_v11, %v390_v6 }
  0xbe   : > { %440 = vst [vmem:[#allocation11 + $0x20] sm:$0xff] %v395_v16  ;;  %441 = vst [vmem:[#allocation11 + $0x28] sm:$0xff] %v399_v17 }
  0xbf   : > { %442 = vst [vmem:[#allocation11 + $0x30] sm:$0xff] %v403_v18  ;;  %443 = vst [vmem:[#allocation11 + $0x38] sm:$0xff] %v407_v19 }
  0xc0   : > { %444 = vst [vmem:[#allocation11 + $0x40] sm:$0xff] %v411_v20  ;;  %445 = vst [vmem:[#allocation11 + $0x48] sm:$0xff] %v415_v21 }
  0xc1   : > { %446 = vst [vmem:[#allocation11 + $0x50] sm:$0xff] %v419_v22  ;;  %447 = vst [vmem:[#allocation11 + $0x58] sm:$0xff] %v423_v23 }
  0xc2 PF: > { %v7881_v24 = vld [vmem:[%s9642_s25 + $0x4] ss:$16 sps:$4 sm:$0xff]   ;;  %v7883_v25 = vld [vmem:[%s9642_s25 + $0xc] ss:$16 sps:$4 sm:$0xff]   ;;  %v7885_v26 = vld [vmem:[%s9642_s25] ss:$16 sps:$4 sm:$0xff]  }
  0xc3   : > { %3217 = vmatprep.subr.bf16.mxu0 %v7881_v24  ;;  %v7886_v27 = vld [vmem:[%s9642_s25 + $0x8] ss:$16 sps:$4 sm:$0xff]   ;;  %3545 = vmatprep.subr.bf16.mxu1 %v7883_v25  ;;  %v7887_v28 = vld [vmem:[%s9642_s25 + $0x24] ss:$16 sps:$4 sm:$0xff]   ;;  %v7889_v29 = vld [vmem:[%s9642_s25 + $0x2c] ss:$16 sps:$4 sm:$0xff]  }
  0xc4   : > { %3218 = vmatpush1.bf16.msra.mxu0 %v7885_v26  ;;  %3546 = vmatpush1.bf16.msra.mxu1 %v7886_v27  ;;  %v7891_v30 = vld [vmem:[%s9642_s25 + $0x20] ss:$16 sps:$4 sm:$0xff]   ;;  %v7892_v31 = vld [vmem:[%s9642_s25 + $0x28] ss:$16 sps:$4 sm:$0xff]   ;;  %v7893_v32 = vld [vmem:[%s9642_s25 + $0x44] ss:$16 sps:$4 sm:$0xff]  }
  0xc5   : > { %3219 = vmatprep.subr.bf16.mxu0 %v7887_v28  ;;  %3547 = vmatprep.subr.bf16.mxu1 %v7889_v29  ;;  %v7895_v33 = vld [vmem:[%s9642_s25 + $0x4c] ss:$16 sps:$4 sm:$0xff]   ;;  %v7897_v34 = vld [vmem:[%s9642_s25 + $0x40] ss:$16 sps:$4 sm:$0xff]   ;;  %v7898_v35 = vld [vmem:[%s9642_s25 + $0x48] ss:$16 sps:$4 sm:$0xff]  }
  0xc6   : > { %v7899_v36 = vld [vmem:[%s9642_s25 + $0x64] ss:$16 sps:$4 sm:$0xff]   ;;  %v7901_v37 = vld [vmem:[%s9642_s25 + $0x6c] ss:$16 sps:$4 sm:$0xff]   ;;  %v7903_v38 = vld [vmem:[%s9642_s25 + $0x60] ss:$16 sps:$4 sm:$0xff]  }
  0xc7   : > { %v7904_v39 = vld [vmem:[%s9642_s25 + $0x68] ss:$16 sps:$4 sm:$0xff]   ;;  %v7905_v40 = vld [vmem:[%s9642_s25 + $0x84] ss:$16 sps:$4 sm:$0xff]   ;;  %v7907_v41 = vld [vmem:[%s9642_s25 + $0x8c] ss:$16 sps:$4 sm:$0xff]  }
  0xc8   : > { %3220 = vmatpush1.bf16.msra.mxu0 %v7891_v30  ;;  %3548 = vmatpush1.bf16.msra.mxu1 %v7892_v31  ;;  %v7909_v42 = vld [vmem:[%s9642_s25 + $0x80] ss:$16 sps:$4 sm:$0xff]   ;;  %v7910_v43 = vld [vmem:[%s9642_s25 + $0x88] ss:$16 sps:$4 sm:$0xff]   ;;  %v7911_v44 = vld [vmem:[%s9642_s25 + $0xa4] ss:$16 sps:$4 sm:$0xff]  }
  0xc9   : > { %3221 = vmatprep.subr.bf16.mxu0 %v7893_v32  ;;  %3549 = vmatprep.subr.bf16.mxu1 %v7895_v33  ;;  %v7913_v45 = vld [vmem:[%s9642_s25 + $0xac] ss:$16 sps:$4 sm:$0xff]   ;;  %v7915_v46 = vld [vmem:[%s9642_s25 + $0xa0] ss:$16 sps:$4 sm:$0xff]   ;;  %v7916_v47 = vld [vmem:[%s9642_s25 + $0xa8] ss:$16 sps:$4 sm:$0xff]  }
  0xca   : > { %v7917_v48 = vld [vmem:[%s9642_s25 + $0xc4] ss:$16 sps:$4 sm:$0xff]   ;;  %v7919_v49 = vld [vmem:[%s9642_s25 + $0xcc] ss:$16 sps:$4 sm:$0xff]   ;;  %v7921_v50 = vld [vmem:[%s9642_s25 + $0xc0] ss:$16 sps:$4 sm:$0xff]  }
  0xcb   : > { %v7922_v51 = vld [vmem:[%s9642_s25 + $0xc8] ss:$16 sps:$4 sm:$0xff]   ;;  %v7923_v52 = vld [vmem:[%s9642_s25 + $0xe4] ss:$16 sps:$4 sm:$0xff]   ;;  %v7925_v53 = vld [vmem:[%s9642_s25 + $0xec] ss:$16 sps:$4 sm:$0xff]  }
  0xcc   : > { %3222 = vmatpush1.bf16.msra.mxu0 %v7897_v34  ;;  %3550 = vmatpush1.bf16.msra.mxu1 %v7898_v35  ;;  %v7927_v54 = vld [vmem:[%s9642_s25 + $0xe0] ss:$16 sps:$4 sm:$0xff]   ;;  %v7928_v55 = vld [vmem:[%s9642_s25 + $0xe8] ss:$16 sps:$4 sm:$0xff]   ;;  %v7929_v56 = vld [vmem:[%s9642_s25 + $0x104] ss:$16 sps:$4 sm:$0xff]  }
  0xcd   : > { %3223 = vmatprep.subr.bf16.mxu0 %v7899_v36  ;;  %3551 = vmatprep.subr.bf16.mxu1 %v7901_v37  ;;  %v7931_v57 = vld [vmem:[%s9642_s25 + $0x10c] ss:$16 sps:$4 sm:$0xff]   ;;  %v7933_v58 = vld [vmem:[%s9642_s25 + $0x100] ss:$16 sps:$4 sm:$0xff]   ;;  %v7934_v59 = vld [vmem:[%s9642_s25 + $0x108] ss:$16 sps:$4 sm:$0xff]  }
  0xce   : > { %v7935_v60 = vld [vmem:[%s9642_s25 + $0x124] ss:$16 sps:$4 sm:$0xff]   ;;  %v7937_v61 = vld [vmem:[%s9642_s25 + $0x12c] ss:$16 sps:$4 sm:$0xff]   ;;  %v7939_v62 = vld [vmem:[%s9642_s25 + $0x120] ss:$16 sps:$4 sm:$0xff]  }
  0xcf   : > { %v7940_v63 = vld [vmem:[%s9642_s25 + $0x128] ss:$16 sps:$4 sm:$0xff]   ;;  %v7941_v0 = vld [vmem:[%s9642_s25 + $0x144] ss:$16 sps:$4 sm:$0xff]   ;;  %v7943_v1 = vld [vmem:[%s9642_s25 + $0x14c] ss:$16 sps:$4 sm:$0xff]  }
  0xd0   : > { %3224 = vmatpush1.bf16.msra.mxu0 %v7903_v38  ;;  %3552 = vmatpush1.bf16.msra.mxu1 %v7904_v39  ;;  %v7945_v2 = vld [vmem:[%s9642_s25 + $0x140] ss:$16 sps:$4 sm:$0xff]   ;;  %v7946_v3 = vld [vmem:[%s9642_s25 + $0x148] ss:$16 sps:$4 sm:$0xff]   ;;  %v7947_v4 = vld [vmem:[%s9642_s25 + $0x164] ss:$16 sps:$4 sm:$0xff]  }
  0xd1   : > { %3225 = vmatprep.subr.bf16.mxu0 %v7905_v40  ;;  %3553 = vmatprep.subr.bf16.mxu1 %v7907_v41  ;;  %v7949_v5 = vld [vmem:[%s9642_s25 + $0x16c] ss:$16 sps:$4 sm:$0xff]   ;;  %v449_v6 = vld [vmem:[#allocation2 + $0x8] sm:$0xff]  ;;  %v7952_v9 = vld [vmem:[%s9642_s25 + $0x168] ss:$16 sps:$4 sm:$0xff]   ;;  %vm3204_vm0 = vcmask 1043456  }
  0xd2   : > { %v7951_v7 = vld [vmem:[%s9642_s25 + $0x160] ss:$16 sps:$4 sm:$0xff]   ;;  %v464_v8 = vpack.c.bf16 %v449_v6, %v449_v6  ;;  %v7953_v10 = vld [vmem:[%s9642_s25 + $0x184] ss:$16 sps:$4 sm:$0xff]   ;;  %v7955_v11 = vld [vmem:[%s9642_s25 + $0x18c] ss:$16 sps:$4 sm:$0xff]  }
  0xd3   : > { %v7957_v12 = vld [vmem:[%s9642_s25 + $0x180] ss:$16 sps:$4 sm:$0xff]   ;;  %v7958_v13 = vld [vmem:[%s9642_s25 + $0x188] ss:$16 sps:$4 sm:$0xff]   ;;  %v7959_v14 = vld [vmem:[%s9642_s25 + $0x1a4] ss:$16 sps:$4 sm:$0xff]  }
  0xd4   : > { %3226 = vmatpush1.bf16.msra.mxu0 %v7909_v42  ;;  %3554 = vmatpush1.bf16.msra.mxu1 %v7910_v43  ;;  %v7961_v15 = vld [vmem:[%s9642_s25 + $0x1ac] ss:$16 sps:$4 sm:$0xff]   ;;  %v7963_v16 = vld [vmem:[%s9642_s25 + $0x1a0] ss:$16 sps:$4 sm:$0xff]   ;;  %v7964_v17 = vld [vmem:[%s9642_s25 + $0x1a8] ss:$16 sps:$4 sm:$0xff]  }
  0xd5   : > { %3227 = vmatprep.subr.bf16.mxu0 %v7911_v44  ;;  %3555 = vmatprep.subr.bf16.mxu1 %v7913_v45  ;;  %v7965_v18 = vld [vmem:[%s9642_s25 + $0x1c4] ss:$16 sps:$4 sm:$0xff]   ;;  %v7967_v19 = vld [vmem:[%s9642_s25 + $0x1cc] ss:$16 sps:$4 sm:$0xff]   ;;  %v7969_v20 = vld [vmem:[%s9642_s25 + $0x1c0] ss:$16 sps:$4 sm:$0xff]  }
  0xd6   : > { %3249 = vmatprep.mubr.bf16.mxu0 %v464_v8  ;;  %3577 = vmatprep.mubr.bf16.mxu1 %v464_v8  ;;  %v7970_v21 = vld [vmem:[%s9642_s25 + $0x1c8] ss:$16 sps:$4 sm:$0xff]   ;;  %v7971_v22 = vld [vmem:[%s9642_s25 + $0x1e4] ss:$16 sps:$4 sm:$0xff]   ;;  %v7973_v23 = vld [vmem:[%s9642_s25 + $0x1ec] ss:$16 sps:$4 sm:$0xff]  }
  0xd7   : > { %v7975_v24 = vld [vmem:[%s9642_s25 + $0x1e0] ss:$16 sps:$4 sm:$0xff]   ;;  %v7976_v25 = vld [vmem:[%s9642_s25 + $0x1e8] ss:$16 sps:$4 sm:$0xff]   ;;  %v7979_v27 = vld [vmem:[%s9642_s25 + $0x204] ss:$16 sps:$4 sm:$0xff]  }
  0xd8   : > { %3228 = vmatpush1.bf16.msra.mxu0 %v7915_v46  ;;  %3556 = vmatpush1.bf16.msra.mxu1 %v7916_v47  ;;  %v448_v26 = vld [vmem:[#allocation2] sm:$0xff]  ;;  %v7977_v30 = vld [vmem:[%s9642_s25 + $0x200] ss:$16 sps:$4 sm:$0xff]   ;;  %v7985_v32 = vld [vmem:[%s9642_s25 + $0x224] ss:$16 sps:$4 sm:$0xff]   ;;  %vm3200_vm1 = vcmask 64512  }
  0xd9   : > { %3229 = vmatprep.subr.bf16.mxu0 %v7917_v48  ;;  %3557 = vmatprep.subr.bf16.mxu1 %v7919_v49  ;;  %v7982_v28 = vld [vmem:[%s9642_s25 + $0x20c] ss:$16 sps:$4 sm:$0xff]   ;;  %v463_v29 = vpack.c.bf16 %v448_v26, %v448_v26  ;;  %v7980_v31 = vld [vmem:[%s9642_s25 + $0x208] ss:$16 sps:$4 sm:$0xff]   ;;  %v7983_v34 = vld [vmem:[%s9642_s25 + $0x220] ss:$16 sps:$4 sm:$0xff]  }
  0xda   : > { %v7988_v33 = vld [vmem:[%s9642_s25 + $0x22c] ss:$16 sps:$4 sm:$0xff]   ;;  %v7986_v35 = vld [vmem:[%s9642_s25 + $0x228] ss:$16 sps:$4 sm:$0xff]   ;;  %v7991_v36 = vld [vmem:[%s9642_s25 + $0x244] ss:$16 sps:$4 sm:$0xff]  }
  0xdb   : > { %v7994_v37 = vld [vmem:[%s9642_s25 + $0x24c] ss:$16 sps:$4 sm:$0xff]   ;;  %v7989_v38 = vld [vmem:[%s9642_s25 + $0x240] ss:$16 sps:$4 sm:$0xff]   ;;  %v7992_v39 = vld [vmem:[%s9642_s25 + $0x248] ss:$16 sps:$4 sm:$0xff]  }
  0xdc   : > { %3230 = vmatpush1.bf16.msra.mxu0 %v7921_v50  ;;  %3558 = vmatpush1.bf16.msra.mxu1 %v7922_v51  ;;  %v7997_v40 = vld [vmem:[%s9642_s25 + $0x264] ss:$16 sps:$4 sm:$0xff]   ;;  %v8000_v41 = vld [vmem:[%s9642_s25 + $0x26c] ss:$16 sps:$4 sm:$0xff]   ;;  %v7995_v42 = vld [vmem:[%s9642_s25 + $0x260] ss:$16 sps:$4 sm:$0xff]  }
  0xdd   : > { %3231 = vmatprep.subr.bf16.mxu0 %v7923_v52  ;;  %3559 = vmatprep.subr.bf16.mxu1 %v7925_v53  ;;  %v7998_v43 = vld [vmem:[%s9642_s25 + $0x268] ss:$16 sps:$4 sm:$0xff]   ;;  %v8003_v44 = vld [vmem:[%s9642_s25 + $0x284] ss:$16 sps:$4 sm:$0xff]   ;;  %v8006_v45 = vld [vmem:[%s9642_s25 + $0x28c] ss:$16 sps:$4 sm:$0xff]  }
  0xde   : > { %v8001_v46 = vld [vmem:[%s9642_s25 + $0x280] ss:$16 sps:$4 sm:$0xff]   ;;  %v8004_v47 = vld [vmem:[%s9642_s25 + $0x288] ss:$16 sps:$4 sm:$0xff]   ;;  %v8009_v48 = vld [vmem:[%s9642_s25 + $0x2a4] ss:$16 sps:$4 sm:$0xff]  }
  0xdf   : > { %v8012_v49 = vld [vmem:[%s9642_s25 + $0x2ac] ss:$16 sps:$4 sm:$0xff]   ;;  %v8007_v50 = vld [vmem:[%s9642_s25 + $0x2a0] ss:$16 sps:$4 sm:$0xff]   ;;  %v8010_v51 = vld [vmem:[%s9642_s25 + $0x2a8] ss:$16 sps:$4 sm:$0xff]  }
  0xe0   : > { %3232 = vmatpush1.bf16.msra.mxu0 %v7927_v54  ;;  %3560 = vmatpush1.bf16.msra.mxu1 %v7928_v55  ;;  %v8015_v52 = vld [vmem:[%s9642_s25 + $0x2c4] ss:$16 sps:$4 sm:$0xff]   ;;  %v8018_v53 = vld [vmem:[%s9642_s25 + $0x2cc] ss:$16 sps:$4 sm:$0xff]   ;;  %v8013_v55 = vld [vmem:[%s9642_s25 + $0x2c0] ss:$16 sps:$4 sm:$0xff]  }
  0xe1   : > { %3233 = vmatprep.subr.bf16.mxu0 %v7929_v56  ;;  %3561 = vmatprep.subr.bf16.mxu1 %v7931_v57  ;;  %v451_v54 = vld [vmem:[#allocation2 + $0x18] sm:$0xff]  ;;  %v8016_v57 = vld [vmem:[%s9642_s25 + $0x2c8] ss:$16 sps:$4 sm:$0xff]   ;;  %s9384_s21 = smov [#allocation11]   ;;  %p7822_p12 = scmp.eq.s32.totalorder %s9444_s24, 3 }
  0xe2   : > { %v466_v56 = vpack.c.bf16 %v451_v54, %v451_v54  ;;  %v8039_v6 = vld [vmem:[%s9642_s25 + $0x344] ss:$16 sps:$4 sm:$0xff]   ;;  %v8037_v8 = vld [vmem:[%s9642_s25 + $0x340] ss:$16 sps:$4 sm:$0xff]   ;;  %s6723_s26 = sshll.u32 %s9384_s21, 4  ;;  %s6724_s26 = int_to_ptr.vmem [resolvable:$true] %s6723_s26 }
  0xe3   : > { %v8069_v26 = vld [vmem:[%s9642_s25 + $0x3e4] ss:$16 sps:$4 sm:$0xff]   ;;  %s9279_s28 = scalar_lea.vmem %s6724_s26, 1536  ;;  %p9286_p10 = scmp.lt.s32.totalorder %s6724_s26, %s6724_s26 }
  0xe4   : > { %3234 = vmatpush1.bf16.msra.mxu0 %v7933_v58  ;;  %3562 = vmatpush1.bf16.msra.mxu1 %v7934_v59  ;;  %v8021_v58 = vld [vmem:[%s9642_s25 + $0x2e4] ss:$16 sps:$4 sm:$0xff]   ;;  %v8024_v59 = vld [vmem:[%s9642_s25 + $0x2ec] ss:$16 sps:$4 sm:$0xff]   ;;  %p9280_p11 = scmp.ne.s32.totalorder %s6724_s26, %s9279_s28  ;;  %p9287_p6 = scmp.lt.s32.totalorder %s9279_s28, %s9279_s28 }
  0xe5   : > { %3235 = vmatprep.subr.bf16.mxu0 %v7935_v60  ;;  %3563 = vmatprep.subr.bf16.mxu1 %v7937_v61  ;;  %v8019_v60 = vld [vmem:[%s9642_s25 + $0x2e0] ss:$16 sps:$4 sm:$0xff]   ;;  %v8022_v61 = vld [vmem:[%s9642_s25 + $0x2e8] ss:$16 sps:$4 sm:$0xff]   ;;  %v8105_v54 = vld [vmem:[%s9642_s25 + $0x4a4] ss:$16 sps:$4 sm:$0xff]  }
  0xe6   : > { %p9281_p0 = pnand %p9280_p11, %p7822_p12  ;;  %p9288_p8 = por %p9287_p6, %p9286_p10 }
  0xe8   : > { %3236 = vmatpush1.bf16.msra.mxu0 %v7939_v62  ;;  %3564 = vmatpush1.bf16.msra.mxu1 %v7940_v63  ;;  %v8027_v62 = vld [vmem:[%s9642_s25 + $0x304] ss:$16 sps:$4 sm:$0xff]   ;;  %v8030_v63 = vld [vmem:[%s9642_s25 + $0x30c] ss:$16 sps:$4 sm:$0xff]   ;;  %p9282_p7 = pneg %p9281_p0 }
  0xe9   : > { %3237 = vmatprep.subr.bf16.mxu0 %v7941_v0  ;;  %3565 = vmatprep.subr.bf16.mxu1 %v7943_v1  ;;  %v8025_v0 = vld [vmem:[%s9642_s25 + $0x300] ss:$16 sps:$4 sm:$0xff]   ;;  %v8028_v1 = vld [vmem:[%s9642_s25 + $0x308] ss:$16 sps:$4 sm:$0xff]  }
  0xea   : > { %p9289_p13 = pnand %p9288_p8, %p9282_p7 }
  0xec   : > { %3238 = vmatpush1.bf16.msra.mxu0 %v7945_v2  ;;  %3566 = vmatpush1.bf16.msra.mxu1 %v7946_v3  ;;  %v8033_v2 = vld [vmem:[%s9642_s25 + $0x324] ss:$16 sps:$4 sm:$0xff]   ;;  %v8036_v3 = vld [vmem:[%s9642_s25 + $0x32c] ss:$16 sps:$4 sm:$0xff]  }
  0xed   : > { %3239 = vmatprep.subr.bf16.mxu0 %v7947_v4  ;;  %3567 = vmatprep.subr.bf16.mxu1 %v7949_v5  ;;  %v8031_v4 = vld [vmem:[%s9642_s25 + $0x320] ss:$16 sps:$4 sm:$0xff]   ;;  %v8034_v5 = vld [vmem:[%s9642_s25 + $0x328] ss:$16 sps:$4 sm:$0xff]  }
  0xf0   : > { %3240 = vmatpush1.bf16.msra.mxu0 %v7951_v7  ;;  %3568 = vmatpush1.bf16.msra.mxu1 %v7952_v9  ;;  %v8042_v7 = vld [vmem:[%s9642_s25 + $0x34c] ss:$16 sps:$4 sm:$0xff]   ;;  %v8040_v9 = vld [vmem:[%s9642_s25 + $0x348] ss:$16 sps:$4 sm:$0xff]  }
  0xf1   : > { %3241 = vmatprep.subr.bf16.mxu0 %v7953_v10  ;;  %3569 = vmatprep.subr.bf16.mxu1 %v7955_v11  ;;  %v8045_v10 = vld [vmem:[%s9642_s25 + $0x364] ss:$16 sps:$4 sm:$0xff]   ;;  %v8048_v11 = vld [vmem:[%s9642_s25 + $0x36c] ss:$16 sps:$4 sm:$0xff]  }
  0xf4   : > { %3242 = vmatpush1.bf16.msra.mxu0 %v7957_v12  ;;  %3570 = vmatpush1.bf16.msra.mxu1 %v7958_v13  ;;  %v8043_v12 = vld [vmem:[%s9642_s25 + $0x360] ss:$16 sps:$4 sm:$0xff]   ;;  %v8046_v13 = vld [vmem:[%s9642_s25 + $0x368] ss:$16 sps:$4 sm:$0xff]  }
  0xf5   : > { %3243 = vmatprep.subr.bf16.mxu0 %v7959_v14  ;;  %3571 = vmatprep.subr.bf16.mxu1 %v7961_v15  ;;  %v8051_v14 = vld [vmem:[%s9642_s25 + $0x384] ss:$16 sps:$4 sm:$0xff]   ;;  %v8054_v15 = vld [vmem:[%s9642_s25 + $0x38c] ss:$16 sps:$4 sm:$0xff]  }
  0xf8   : > { %3244 = vmatpush1.bf16.msra.mxu0 %v7963_v16  ;;  %3572 = vmatpush1.bf16.msra.mxu1 %v7964_v17  ;;  %v8049_v16 = vld [vmem:[%s9642_s25 + $0x380] ss:$16 sps:$4 sm:$0xff]   ;;  %v8052_v17 = vld [vmem:[%s9642_s25 + $0x388] ss:$16 sps:$4 sm:$0xff]  }
  0xf9   : > { %3245 = vmatprep.subr.bf16.mxu0 %v7965_v18  ;;  %3573 = vmatprep.subr.bf16.mxu1 %v7967_v19  ;;  %v8057_v18 = vld [vmem:[%s9642_s25 + $0x3a4] ss:$16 sps:$4 sm:$0xff]   ;;  %v8060_v19 = vld [vmem:[%s9642_s25 + $0x3ac] ss:$16 sps:$4 sm:$0xff]  }
  0xfc   : > { %3246 = vmatpush1.bf16.msra.mxu0 %v7969_v20  ;;  %3574 = vmatpush1.bf16.msra.mxu1 %v7970_v21  ;;  %v8055_v20 = vld [vmem:[%s9642_s25 + $0x3a0] ss:$16 sps:$4 sm:$0xff]   ;;  %v8058_v21 = vld [vmem:[%s9642_s25 + $0x3a8] ss:$16 sps:$4 sm:$0xff]  }
  0xfd   : > { %3247 = vmatprep.subr.bf16.mxu0 %v7971_v22  ;;  %3575 = vmatprep.subr.bf16.mxu1 %v7973_v23  ;;  %v8063_v22 = vld [vmem:[%s9642_s25 + $0x3c4] ss:$16 sps:$4 sm:$0xff]   ;;  %v8066_v23 = vld [vmem:[%s9642_s25 + $0x3cc] ss:$16 sps:$4 sm:$0xff]  }
 0x100   : > { %3248 = vmatpush1.bf16.msra.mxu0 %v7975_v24  ;;  %3576 = vmatpush1.bf16.msra.mxu1 %v7976_v25  ;;  %v8061_v24 = vld [vmem:[%s9642_s25 + $0x3c0] ss:$16 sps:$4 sm:$0xff]   ;;  %v8064_v25 = vld [vmem:[%s9642_s25 + $0x3c8] ss:$16 sps:$4 sm:$0xff]  }
 0x101   : > { %3258 = vmatprep.subr.bf16.mxu0 %v7979_v27  ;;  %3586 = vmatprep.subr.bf16.mxu1 %v7982_v28  ;;  %v8072_v27 = vld [vmem:[%s9642_s25 + $0x3ec] ss:$16 sps:$4 sm:$0xff]   ;;  %v8067_v28 = vld [vmem:[%s9642_s25 + $0x3e0] ss:$16 sps:$4 sm:$0xff]  }
 0x103   : > { %3250 = vmatmul.mubr.bf16.vlgmr.msra.gmra.mrb[0].mxu0 %v463_v29  ;;  %3578 = vmatmul.mubr.bf16.vlgmr.msra.gmra.mrb[0].mxu1 %v463_v29  ;;  %v8070_v29 = vld [vmem:[%s9642_s25 + $0x3e8] ss:$16 sps:$4 sm:$0xff]  }
 0x104   : > { %3259 = vmatpush1.bf16.msra.mxu0 %v7977_v30  ;;  %3587 = vmatpush1.bf16.msra.mxu1 %v7980_v31  ;;  %v8075_v30 = vld [vmem:[%s9642_s25 + $0x404] ss:$16 sps:$4 sm:$0xff]   ;;  %v450_v31 = vld [vmem:[#allocation2 + $0x10] sm:$0xff] }
 0x105   : > { %3260 = vmatprep.subr.bf16.mxu0 %v7985_v32  ;;  %3588 = vmatprep.subr.bf16.mxu1 %v7988_v33  ;;  %v8078_v32 = vld [vmem:[%s9642_s25 + $0x40c] ss:$16 sps:$4 sm:$0xff]   ;;  %v8073_v33 = vld [vmem:[%s9642_s25 + $0x400] ss:$16 sps:$4 sm:$0xff]  }
 0x106   : > { %3290 = vmatprep.mubr.bf16.mxu0 %v466_v56  ;;  %3618 = vmatprep.mubr.bf16.mxu1 %v466_v56  ;;  %v8103_v56 = vld [vmem:[%s9642_s25 + $0x4a0] ss:$16 sps:$4 sm:$0xff]  }
 0x108   : > { %3261 = vmatpush1.bf16.msra.mxu0 %v7983_v34  ;;  %3589 = vmatpush1.bf16.msra.mxu1 %v7986_v35  ;;  %v8076_v34 = vld [vmem:[%s9642_s25 + $0x408] ss:$16 sps:$4 sm:$0xff]   ;;  %v465_v35 = vpack.c.bf16 %v450_v31, %v450_v31  ;;  %v8168_v31 = vld [vmem:[%s9642_s25 + $0x5ec] ss:$16 sps:$4 sm:$0xff]  }
 0x109   : > { %3262 = vmatprep.subr.bf16.mxu0 %v7991_v36  ;;  %3590 = vmatprep.subr.bf16.mxu1 %v7994_v37  ;;  %v8081_v36 = vld [vmem:[%s9642_s25 + $0x424] ss:$16 sps:$4 sm:$0xff]   ;;  %v8084_v37 = vld [vmem:[%s9642_s25 + $0x42c] ss:$16 sps:$4 sm:$0xff]  }
 0x10c   : > { %3263 = vmatpush1.bf16.msra.mxu0 %v7989_v38  ;;  %3591 = vmatpush1.bf16.msra.mxu1 %v7992_v39  ;;  %v453_v38 = vld [vmem:[#allocation2 + $0x28] sm:$0xff] }
 0x10d   : > { %3264 = vmatprep.subr.bf16.mxu0 %v7997_v40  ;;  %3592 = vmatprep.subr.bf16.mxu1 %v8000_v41  ;;  %v468_v39 = vpack.c.bf16 %v453_v38, %v453_v38  ;;  %v8079_v40 = vld [vmem:[%s9642_s25 + $0x420] ss:$16 sps:$4 sm:$0xff]   ;;  %v8082_v41 = vld [vmem:[%s9642_s25 + $0x428] ss:$16 sps:$4 sm:$0xff]  }
 0x10e   : > { %v8172_v38 = vld [vmem:[%s9642_s25 + $0x608] ss:$16 sps:$4 sm:$0xff]  }
 0x110   : > { %3265 = vmatpush1.bf16.msra.mxu0 %v7995_v42  ;;  %3593 = vmatpush1.bf16.msra.mxu1 %v7998_v43  ;;  %v8087_v42 = vld [vmem:[%s9642_s25 + $0x444] ss:$16 sps:$4 sm:$0xff]   ;;  %v8090_v43 = vld [vmem:[%s9642_s25 + $0x44c] ss:$16 sps:$4 sm:$0xff]  }
 0x111   : > { %3266 = vmatprep.subr.bf16.mxu0 %v8003_v44  ;;  %3594 = vmatprep.subr.bf16.mxu1 %v8006_v45  ;;  %v8085_v44 = vld [vmem:[%s9642_s25 + $0x440] ss:$16 sps:$4 sm:$0xff]   ;;  %v8088_v45 = vld [vmem:[%s9642_s25 + $0x448] ss:$16 sps:$4 sm:$0xff]  }
 0x114   : > { %3267 = vmatpush1.bf16.msra.mxu0 %v8001_v46  ;;  %3595 = vmatpush1.bf16.msra.mxu1 %v8004_v47  ;;  %v8093_v46 = vld [vmem:[%s9642_s25 + $0x464] ss:$16 sps:$4 sm:$0xff]   ;;  %v8096_v47 = vld [vmem:[%s9642_s25 + $0x46c] ss:$16 sps:$4 sm:$0xff]  }
 0x115   : > { %3268 = vmatprep.subr.bf16.mxu0 %v8009_v48  ;;  %3596 = vmatprep.subr.bf16.mxu1 %v8012_v49  ;;  %v8091_v48 = vld [vmem:[%s9642_s25 + $0x460] ss:$16 sps:$4 sm:$0xff]   ;;  %v8094_v49 = vld [vmem:[%s9642_s25 + $0x468] ss:$16 sps:$4 sm:$0xff]  }
 0x118   : > { %3269 = vmatpush1.bf16.msra.mxu0 %v8007_v50  ;;  %3597 = vmatpush1.bf16.msra.mxu1 %v8010_v51  ;;  %v8099_v50 = vld [vmem:[%s9642_s25 + $0x484] ss:$16 sps:$4 sm:$0xff]   ;;  %v8102_v51 = vld [vmem:[%s9642_s25 + $0x48c] ss:$16 sps:$4 sm:$0xff]  }
 0x119   : > { %3270 = vmatprep.subr.bf16.mxu0 %v8015_v52  ;;  %3598 = vmatprep.subr.bf16.mxu1 %v8018_v53  ;;  %v8097_v52 = vld [vmem:[%s9642_s25 + $0x480] ss:$16 sps:$4 sm:$0xff]   ;;  %v8100_v53 = vld [vmem:[%s9642_s25 + $0x488] ss:$16 sps:$4 sm:$0xff]  }
 0x11c   : > { %3271 = vmatpush1.bf16.msra.mxu0 %v8013_v55  ;;  %3599 = vmatpush1.bf16.msra.mxu1 %v8016_v57  ;;  %v8108_v55 = vld [vmem:[%s9642_s25 + $0x4ac] ss:$16 sps:$4 sm:$0xff]   ;;  %v8106_v57 = vld [vmem:[%s9642_s25 + $0x4a8] ss:$16 sps:$4 sm:$0xff]  }
 0x11d   : > { %3272 = vmatprep.subr.bf16.mxu0 %v8021_v58  ;;  %3600 = vmatprep.subr.bf16.mxu1 %v8024_v59  ;;  %v8111_v58 = vld [vmem:[%s9642_s25 + $0x4c4] ss:$16 sps:$4 sm:$0xff]   ;;  %v8114_v59 = vld [vmem:[%s9642_s25 + $0x4cc] ss:$16 sps:$4 sm:$0xff]  }
 0x120   : > { %3273 = vmatpush1.bf16.msra.mxu0 %v8019_v60  ;;  %3601 = vmatpush1.bf16.msra.mxu1 %v8022_v61  ;;  %v8109_v60 = vld [vmem:[%s9642_s25 + $0x4c0] ss:$16 sps:$4 sm:$0xff]   ;;  %v8112_v61 = vld [vmem:[%s9642_s25 + $0x4c8] ss:$16 sps:$4 sm:$0xff]  }
 0x121   : > { %3274 = vmatprep.subr.bf16.mxu0 %v8027_v62  ;;  %3602 = vmatprep.subr.bf16.mxu1 %v8030_v63  ;;  %v8117_v62 = vld [vmem:[%s9642_s25 + $0x4e4] ss:$16 sps:$4 sm:$0xff]   ;;  %v8120_v63 = vld [vmem:[%s9642_s25 + $0x4ec] ss:$16 sps:$4 sm:$0xff]  }
 0x124   : > { %3275 = vmatpush1.bf16.msra.mxu0 %v8025_v0  ;;  %3603 = vmatpush1.bf16.msra.mxu1 %v8028_v1  ;;  %v8115_v0 = vld [vmem:[%s9642_s25 + $0x4e0] ss:$16 sps:$4 sm:$0xff]   ;;  %v8118_v1 = vld [vmem:[%s9642_s25 + $0x4e8] ss:$16 sps:$4 sm:$0xff]  }
 0x125   : > { %3276 = vmatprep.subr.bf16.mxu0 %v8033_v2  ;;  %3604 = vmatprep.subr.bf16.mxu1 %v8036_v3  ;;  %v8123_v2 = vld [vmem:[%s9642_s25 + $0x504] ss:$16 sps:$4 sm:$0xff]   ;;  %v8126_v3 = vld [vmem:[%s9642_s25 + $0x50c] ss:$16 sps:$4 sm:$0xff]  }
 0x128   : > { %3277 = vmatpush1.bf16.msra.mxu0 %v8031_v4  ;;  %3605 = vmatpush1.bf16.msra.mxu1 %v8034_v5  ;;  %v8121_v4 = vld [vmem:[%s9642_s25 + $0x500] ss:$16 sps:$4 sm:$0xff]   ;;  %v8124_v5 = vld [vmem:[%s9642_s25 + $0x508] ss:$16 sps:$4 sm:$0xff]  }
 0x129   : > { %3278 = vmatprep.subr.bf16.mxu0 %v8039_v6  ;;  %3606 = vmatprep.subr.bf16.mxu1 %v8042_v7  ;;  %v8129_v6 = vld [vmem:[%s9642_s25 + $0x524] ss:$16 sps:$4 sm:$0xff]   ;;  %v8132_v7 = vld [vmem:[%s9642_s25 + $0x52c] ss:$16 sps:$4 sm:$0xff]  }
 0x12c   : > { %3279 = vmatpush1.bf16.msra.mxu0 %v8037_v8  ;;  %3607 = vmatpush1.bf16.msra.mxu1 %v8040_v9  ;;  %v8127_v8 = vld [vmem:[%s9642_s25 + $0x520] ss:$16 sps:$4 sm:$0xff]   ;;  %v8130_v9 = vld [vmem:[%s9642_s25 + $0x528] ss:$16 sps:$4 sm:$0xff]  }
 0x12d   : > { %3280 = vmatprep.subr.bf16.mxu0 %v8045_v10  ;;  %3608 = vmatprep.subr.bf16.mxu1 %v8048_v11  ;;  %v8135_v10 = vld [vmem:[%s9642_s25 + $0x544] ss:$16 sps:$4 sm:$0xff]   ;;  %v8138_v11 = vld [vmem:[%s9642_s25 + $0x54c] ss:$16 sps:$4 sm:$0xff]  }
 0x130   : > { %3281 = vmatpush1.bf16.msra.mxu0 %v8043_v12  ;;  %3609 = vmatpush1.bf16.msra.mxu1 %v8046_v13  ;;  %v8133_v12 = vld [vmem:[%s9642_s25 + $0x540] ss:$16 sps:$4 sm:$0xff]   ;;  %v8136_v13 = vld [vmem:[%s9642_s25 + $0x548] ss:$16 sps:$4 sm:$0xff]  }
 0x131   : > { %3282 = vmatprep.subr.bf16.mxu0 %v8051_v14  ;;  %3610 = vmatprep.subr.bf16.mxu1 %v8054_v15  ;;  %v8141_v14 = vld [vmem:[%s9642_s25 + $0x564] ss:$16 sps:$4 sm:$0xff]   ;;  %v8144_v15 = vld [vmem:[%s9642_s25 + $0x56c] ss:$16 sps:$4 sm:$0xff]  }
 0x134   : > { %3283 = vmatpush1.bf16.msra.mxu0 %v8049_v16  ;;  %3611 = vmatpush1.bf16.msra.mxu1 %v8052_v17  ;;  %v8139_v16 = vld [vmem:[%s9642_s25 + $0x560] ss:$16 sps:$4 sm:$0xff]   ;;  %v8142_v17 = vld [vmem:[%s9642_s25 + $0x568] ss:$16 sps:$4 sm:$0xff]  }
 0x135   : > { %3284 = vmatprep.subr.bf16.mxu0 %v8057_v18  ;;  %3612 = vmatprep.subr.bf16.mxu1 %v8060_v19  ;;  %v8147_v18 = vld [vmem:[%s9642_s25 + $0x584] ss:$16 sps:$4 sm:$0xff]   ;;  %v8150_v19 = vld [vmem:[%s9642_s25 + $0x58c] ss:$16 sps:$4 sm:$0xff]  }
 0x138   : > { %3285 = vmatpush1.bf16.msra.mxu0 %v8055_v20  ;;  %3613 = vmatpush1.bf16.msra.mxu1 %v8058_v21  ;;  %v8145_v20 = vld [vmem:[%s9642_s25 + $0x580] ss:$16 sps:$4 sm:$0xff]   ;;  %v8148_v21 = vld [vmem:[%s9642_s25 + $0x588] ss:$16 sps:$4 sm:$0xff]  }
 0x139   : > { %3286 = vmatprep.subr.bf16.mxu0 %v8063_v22  ;;  %3614 = vmatprep.subr.bf16.mxu1 %v8066_v23  ;;  %v8153_v22 = vld [vmem:[%s9642_s25 + $0x5a4] ss:$16 sps:$4 sm:$0xff]   ;;  %v8156_v23 = vld [vmem:[%s9642_s25 + $0x5ac] ss:$16 sps:$4 sm:$0xff]  }
 0x13c   : > { %3287 = vmatpush1.bf16.msra.mxu0 %v8061_v24  ;;  %3615 = vmatpush1.bf16.msra.mxu1 %v8064_v25  ;;  %v8151_v24 = vld [vmem:[%s9642_s25 + $0x5a0] ss:$16 sps:$4 sm:$0xff]   ;;  %v8154_v25 = vld [vmem:[%s9642_s25 + $0x5a8] ss:$16 sps:$4 sm:$0xff]  }
 0x13d   : > { %3288 = vmatprep.subr.bf16.mxu0 %v8069_v26  ;;  %3616 = vmatprep.subr.bf16.mxu1 %v8072_v27  ;;  %v8159_v26 = vld [vmem:[%s9642_s25 + $0x5c4] ss:$16 sps:$4 sm:$0xff]   ;;  %v8162_v27 = vld [vmem:[%s9642_s25 + $0x5cc] ss:$16 sps:$4 sm:$0xff]  }
 0x140   : > { %3289 = vmatpush1.bf16.msra.mxu0 %v8067_v28  ;;  %3617 = vmatpush1.bf16.msra.mxu1 %v8070_v29  ;;  %v8157_v28 = vld [vmem:[%s9642_s25 + $0x5c0] ss:$16 sps:$4 sm:$0xff]   ;;  %v8160_v29 = vld [vmem:[%s9642_s25 + $0x5c8] ss:$16 sps:$4 sm:$0xff]  }
 0x141   : > { %3299 = vmatprep.subr.bf16.mxu0 %v8075_v30  ;;  %3627 = vmatprep.subr.bf16.mxu1 %v8078_v32  ;;  %v8165_v30 = vld [vmem:[%s9642_s25 + $0x5e4] ss:$16 sps:$4 sm:$0xff]   ;;  %v8163_v32 = vld [vmem:[%s9642_s25 + $0x5e0] ss:$16 sps:$4 sm:$0xff]  }
 0x143   : > { %3291 = vmatmul.mubr.bf16.vlgmr.msra.gmra.mrb[0].mxu0 %v465_v35  ;;  %3619 = vmatmul.mubr.bf16.vlgmr.msra.gmra.mrb[0].mxu1 %v465_v35  ;;  %v452_v35 = vld [vmem:[#allocation2 + $0x20] sm:$0xff] }
 0x144   : > { %3300 = vmatpush1.bf16.msra.mxu0 %v8073_v33  ;;  %3628 = vmatpush1.bf16.msra.mxu1 %v8076_v34  ;;  %v8166_v33 = vld [vmem:[%s9642_s25 + $0x5e8] ss:$16 sps:$4 sm:$0xff]   ;;  %v8171_v34 = vld [vmem:[%s9642_s25 + $0x604] ss:$16 sps:$4 sm:$0xff]  }
 0x145   : > { %3301 = vmatprep.subr.bf16.mxu0 %v8081_v36  ;;  %3629 = vmatprep.subr.bf16.mxu1 %v8084_v37  ;;  %v8174_v36 = vld [vmem:[%s9642_s25 + $0x60c] ss:$16 sps:$4 sm:$0xff]   ;;  %v8169_v37 = vld [vmem:[%s9642_s25 + $0x600] ss:$16 sps:$4 sm:$0xff]  }
 0x146   : > { %3331 = vmatprep.mubr.bf16.mxu0 %v468_v39  ;;  %3659 = vmatprep.mubr.bf16.mxu1 %v468_v39  ;;  %v467_v39 = vpack.c.bf16 %v452_v35, %v452_v35  ;;  %v8264_v35 = vld [vmem:[%s9642_s25 + $0x7ec] ss:$16 sps:$4 sm:$0xff]  }
 0x148   : > { %3302 = vmatpush1.bf16.msra.mxu0 %v8079_v40  ;;  %3630 = vmatpush1.bf16.msra.mxu1 %v8082_v41  ;;  %v455_v40 = vld [vmem:[#allocation2 + $0x38] sm:$0xff] }
 0x149   : > { %3303 = vmatprep.subr.bf16.mxu0 %v8087_v42  ;;  %3631 = vmatprep.subr.bf16.mxu1 %v8090_v43  ;;  %v8177_v41 = vld [vmem:[%s9642_s25 + $0x624] ss:$16 sps:$4 sm:$0xff]   ;;  %v8180_v42 = vld [vmem:[%s9642_s25 + $0x62c] ss:$16 sps:$4 sm:$0xff]   ;;  %v470_v43 = vpack.c.bf16 %v455_v40, %v455_v40 }
 0x14a   : > { %v8270_v40 = vld [vmem:[%s9642_s25 + $0x80c] ss:$16 sps:$4 sm:$0xff]  }
 0x14c   : > { %3304 = vmatpush1.bf16.msra.mxu0 %v8085_v44  ;;  %3632 = vmatpush1.bf16.msra.mxu1 %v8088_v45  ;;  %v8175_v44 = vld [vmem:[%s9642_s25 + $0x620] ss:$16 sps:$4 sm:$0xff]   ;;  %v8178_v45 = vld [vmem:[%s9642_s25 + $0x628] ss:$16 sps:$4 sm:$0xff]  }
 0x14d   : > { %3305 = vmatprep.subr.bf16.mxu0 %v8093_v46  ;;  %3633 = vmatprep.subr.bf16.mxu1 %v8096_v47  ;;  %v8183_v46 = vld [vmem:[%s9642_s25 + $0x644] ss:$16 sps:$4 sm:$0xff]   ;;  %v8186_v47 = vld [vmem:[%s9642_s25 + $0x64c] ss:$16 sps:$4 sm:$0xff]  }
 0x150   : > { %3306 = vmatpush1.bf16.msra.mxu0 %v8091_v48  ;;  %3634 = vmatpush1.bf16.msra.mxu1 %v8094_v49  ;;  %v8181_v48 = vld [vmem:[%s9642_s25 + $0x640] ss:$16 sps:$4 sm:$0xff]   ;;  %v8184_v49 = vld [vmem:[%s9642_s25 + $0x648] ss:$16 sps:$4 sm:$0xff]  }
 0x151   : > { %3307 = vmatprep.subr.bf16.mxu0 %v8099_v50  ;;  %3635 = vmatprep.subr.bf16.mxu1 %v8102_v51  ;;  %v8189_v50 = vld [vmem:[%s9642_s25 + $0x664] ss:$16 sps:$4 sm:$0xff]   ;;  %v8192_v51 = vld [vmem:[%s9642_s25 + $0x66c] ss:$16 sps:$4 sm:$0xff]  }
 0x154   : > { %3308 = vmatpush1.bf16.msra.mxu0 %v8097_v52  ;;  %3636 = vmatpush1.bf16.msra.mxu1 %v8100_v53  ;;  %v8187_v52 = vld [vmem:[%s9642_s25 + $0x660] ss:$16 sps:$4 sm:$0xff]   ;;  %v8190_v53 = vld [vmem:[%s9642_s25 + $0x668] ss:$16 sps:$4 sm:$0xff]  }
 0x155   : > { %3309 = vmatprep.subr.bf16.mxu0 %v8105_v54  ;;  %3637 = vmatprep.subr.bf16.mxu1 %v8108_v55  ;;  %v8195_v54 = vld [vmem:[%s9642_s25 + $0x684] ss:$16 sps:$4 sm:$0xff]   ;;  %v8198_v55 = vld [vmem:[%s9642_s25 + $0x68c] ss:$16 sps:$4 sm:$0xff]  }
 0x158   : > { %3310 = vmatpush1.bf16.msra.mxu0 %v8103_v56  ;;  %3638 = vmatpush1.bf16.msra.mxu1 %v8106_v57  ;;  %v8193_v56 = vld [vmem:[%s9642_s25 + $0x680] ss:$16 sps:$4 sm:$0xff]   ;;  %v8196_v57 = vld [vmem:[%s9642_s25 + $0x688] ss:$16 sps:$4 sm:$0xff]  }
 0x159   : > { %3311 = vmatprep.subr.bf16.mxu0 %v8111_v58  ;;  %3639 = vmatprep.subr.bf16.mxu1 %v8114_v59  ;;  %v8201_v58 = vld [vmem:[%s9642_s25 + $0x6a4] ss:$16 sps:$4 sm:$0xff]   ;;  %v8204_v59 = vld [vmem:[%s9642_s25 + $0x6ac] ss:$16 sps:$4 sm:$0xff]  }
 0x15c   : > { %3312 = vmatpush1.bf16.msra.mxu0 %v8109_v60  ;;  %3640 = vmatpush1.bf16.msra.mxu1 %v8112_v61  ;;  %v8199_v60 = vld [vmem:[%s9642_s25 + $0x6a0] ss:$16 sps:$4 sm:$0xff]   ;;  %v8202_v61 = vld [vmem:[%s9642_s25 + $0x6a8] ss:$16 sps:$4 sm:$0xff]  }
 0x15d   : > { %3313 = vmatprep.subr.bf16.mxu0 %v8117_v62  ;;  %3641 = vmatprep.subr.bf16.mxu1 %v8120_v63  ;;  %v8207_v62 = vld [vmem:[%s9642_s25 + $0x6c4] ss:$16 sps:$4 sm:$0xff]   ;;  %v8210_v63 = vld [vmem:[%s9642_s25 + $0x6cc] ss:$16 sps:$4 sm:$0xff]  }
 0x160   : > { %3314 = vmatpush1.bf16.msra.mxu0 %v8115_v0  ;;  %3642 = vmatpush1.bf16.msra.mxu1 %v8118_v1  ;;  %v8205_v0 = vld [vmem:[%s9642_s25 + $0x6c0] ss:$16 sps:$4 sm:$0xff]   ;;  %v8208_v1 = vld [vmem:[%s9642_s25 + $0x6c8] ss:$16 sps:$4 sm:$0xff]  }
 0x161   : > { %3315 = vmatprep.subr.bf16.mxu0 %v8123_v2  ;;  %3643 = vmatprep.subr.bf16.mxu1 %v8126_v3  ;;  %v8213_v2 = vld [vmem:[%s9642_s25 + $0x6e4] ss:$16 sps:$4 sm:$0xff]   ;;  %v8216_v3 = vld [vmem:[%s9642_s25 + $0x6ec] ss:$16 sps:$4 sm:$0xff]  }
 0x164   : > { %3316 = vmatpush1.bf16.msra.mxu0 %v8121_v4  ;;  %3644 = vmatpush1.bf16.msra.mxu1 %v8124_v5  ;;  %v8211_v4 = vld [vmem:[%s9642_s25 + $0x6e0] ss:$16 sps:$4 sm:$0xff]   ;;  %v8214_v5 = vld [vmem:[%s9642_s25 + $0x6e8] ss:$16 sps:$4 sm:$0xff]  }
 0x165   : > { %3317 = vmatprep.subr.bf16.mxu0 %v8129_v6  ;;  %3645 = vmatprep.subr.bf16.mxu1 %v8132_v7  ;;  %v8219_v6 = vld [vmem:[%s9642_s25 + $0x704] ss:$16 sps:$4 sm:$0xff]   ;;  %v8222_v7 = vld [vmem:[%s9642_s25 + $0x70c] ss:$16 sps:$4 sm:$0xff]  }
 0x168   : > { %3318 = vmatpush1.bf16.msra.mxu0 %v8127_v8  ;;  %3646 = vmatpush1.bf16.msra.mxu1 %v8130_v9  ;;  %v8217_v8 = vld [vmem:[%s9642_s25 + $0x700] ss:$16 sps:$4 sm:$0xff]   ;;  %v8220_v9 = vld [vmem:[%s9642_s25 + $0x708] ss:$16 sps:$4 sm:$0xff]  }
 0x169   : > { %3319 = vmatprep.subr.bf16.mxu0 %v8135_v10  ;;  %3647 = vmatprep.subr.bf16.mxu1 %v8138_v11  ;;  %v8225_v10 = vld [vmem:[%s9642_s25 + $0x724] ss:$16 sps:$4 sm:$0xff]   ;;  %v8228_v11 = vld [vmem:[%s9642_s25 + $0x72c] ss:$16 sps:$4 sm:$0xff]  }
 0x16c   : > { %3320 = vmatpush1.bf16.msra.mxu0 %v8133_v12  ;;  %3648 = vmatpush1.bf16.msra.mxu1 %v8136_v13  ;;  %v8223_v12 = vld [vmem:[%s9642_s25 + $0x720] ss:$16 sps:$4 sm:$0xff]   ;;  %v8226_v13 = vld [vmem:[%s9642_s25 + $0x728] ss:$16 sps:$4 sm:$0xff]  }
 0x16d   : > { %3321 = vmatprep.subr.bf16.mxu0 %v8141_v14  ;;  %3649 = vmatprep.subr.bf16.mxu1 %v8144_v15  ;;  %v8231_v14 = vld [vmem:[%s9642_s25 + $0x744] ss:$16 sps:$4 sm:$0xff]   ;;  %v8234_v15 = vld [vmem:[%s9642_s25 + $0x74c] ss:$16 sps:$4 sm:$0xff]  }
 0x170   : > { %3322 = vmatpush1.bf16.msra.mxu0 %v8139_v16  ;;  %3650 = vmatpush1.bf16.msra.mxu1 %v8142_v17  ;;  %v8229_v16 = vld [vmem:[%s9642_s25 + $0x740] ss:$16 sps:$4 sm:$0xff]   ;;  %v8232_v17 = vld [vmem:[%s9642_s25 + $0x748] ss:$16 sps:$4 sm:$0xff]  }
 0x171   : > { %3323 = vmatprep.subr.bf16.mxu0 %v8147_v18  ;;  %3651 = vmatprep.subr.bf16.mxu1 %v8150_v19  ;;  %v8237_v18 = vld [vmem:[%s9642_s25 + $0x764] ss:$16 sps:$4 sm:$0xff]   ;;  %v8240_v19 = vld [vmem:[%s9642_s25 + $0x76c] ss:$16 sps:$4 sm:$0xff]  }
 0x174   : > { %3324 = vmatpush1.bf16.msra.mxu0 %v8145_v20  ;;  %3652 = vmatpush1.bf16.msra.mxu1 %v8148_v21  ;;  %v8235_v20 = vld [vmem:[%s9642_s25 + $0x760] ss:$16 sps:$4 sm:$0xff]   ;;  %v8238_v21 = vld [vmem:[%s9642_s25 + $0x768] ss:$16 sps:$4 sm:$0xff]  }
 0x175   : > { %3325 = vmatprep.subr.bf16.mxu0 %v8153_v22  ;;  %3653 = vmatprep.subr.bf16.mxu1 %v8156_v23  ;;  %v8243_v22 = vld [vmem:[%s9642_s25 + $0x784] ss:$16 sps:$4 sm:$0xff]   ;;  %v8246_v23 = vld [vmem:[%s9642_s25 + $0x78c] ss:$16 sps:$4 sm:$0xff]  }
 0x178   : > { %3326 = vmatpush1.bf16.msra.mxu0 %v8151_v24  ;;  %3654 = vmatpush1.bf16.msra.mxu1 %v8154_v25  ;;  %v8241_v24 = vld [vmem:[%s9642_s25 + $0x780] ss:$16 sps:$4 sm:$0xff]   ;;  %v8244_v25 = vld [vmem:[%s9642_s25 + $0x788] ss:$16 sps:$4 sm:$0xff]  }
 0x179   : > { %3327 = vmatprep.subr.bf16.mxu0 %v8159_v26  ;;  %3655 = vmatprep.subr.bf16.mxu1 %v8162_v27  ;;  %v8249_v26 = vld [vmem:[%s9642_s25 + $0x7a4] ss:$16 sps:$4 sm:$0xff]   ;;  %v8252_v27 = vld [vmem:[%s9642_s25 + $0x7ac] ss:$16 sps:$4 sm:$0xff]  }
 0x17c   : > { %3328 = vmatpush1.bf16.msra.mxu0 %v8157_v28  ;;  %3656 = vmatpush1.bf16.msra.mxu1 %v8160_v29  ;;  %v8247_v28 = vld [vmem:[%s9642_s25 + $0x7a0] ss:$16 sps:$4 sm:$0xff]   ;;  %v8250_v29 = vld [vmem:[%s9642_s25 + $0x7a8] ss:$16 sps:$4 sm:$0xff]  }
 0x17d   : > { %3329 = vmatprep.subr.bf16.mxu0 %v8165_v30  ;;  %3657 = vmatprep.subr.bf16.mxu1 %v8168_v31  ;;  %v8255_v30 = vld [vmem:[%s9642_s25 + $0x7c4] ss:$16 sps:$4 sm:$0xff]   ;;  %v8258_v31 = vld [vmem:[%s9642_s25 + $0x7cc] ss:$16 sps:$4 sm:$0xff]  }
 0x180   : > { %3330 = vmatpush1.bf16.msra.mxu0 %v8163_v32  ;;  %3658 = vmatpush1.bf16.msra.mxu1 %v8166_v33  ;;  %v8253_v32 = vld [vmem:[%s9642_s25 + $0x7c0] ss:$16 sps:$4 sm:$0xff]   ;;  %v8256_v33 = vld [vmem:[%s9642_s25 + $0x7c8] ss:$16 sps:$4 sm:$0xff]  }
 0x181   : > { %3340 = vmatprep.subr.bf16.mxu0 %v8171_v34  ;;  %3668 = vmatprep.subr.bf16.mxu1 %v8174_v36  ;;  %v8261_v34 = vld [vmem:[%s9642_s25 + $0x7e4] ss:$16 sps:$4 sm:$0xff]   ;;  %v8259_v36 = vld [vmem:[%s9642_s25 + $0x7e0] ss:$16 sps:$4 sm:$0xff]  }
 0x183   : > { %3332 = vmatmul.mubr.bf16.vlgmr.msra.gmra.mrb[0].mxu0 %v467_v39  ;;  %3660 = vmatmul.mubr.bf16.vlgmr.msra.gmra.mrb[0].mxu1 %v467_v39  ;;  %v8267_v39 = vld [vmem:[%s9642_s25 + $0x804] ss:$16 sps:$4 sm:$0xff]  }
 0x184   : > { %3341 = vmatpush1.bf16.msra.mxu0 %v8169_v37  ;;  %3669 = vmatpush1.bf16.msra.mxu1 %v8172_v38  ;;  %v8262_v37 = vld [vmem:[%s9642_s25 + $0x7e8] ss:$16 sps:$4 sm:$0xff]  }
 0x185   : > { %3342 = vmatprep.subr.bf16.mxu0 %v8177_v41  ;;  %3670 = vmatprep.subr.bf16.mxu1 %v8180_v42  ;;  %v454_v38 = vld [vmem:[#allocation2 + $0x30] sm:$0xff]  ;;  %v457_v42 = vld [vmem:[#allocation2 + $0x48] sm:$0xff] }
 0x186   : > { %3372 = vmatprep.mubr.bf16.mxu0 %v470_v43  ;;  %3700 = vmatprep.mubr.bf16.mxu1 %v470_v43  ;;  %v469_v41 = vpack.c.bf16 %v454_v38, %v454_v38  ;;  %v8265_v43 = vld [vmem:[%s9642_s25 + $0x800] ss:$16 sps:$4 sm:$0xff]   ;;  %v8357_v38 = vld [vmem:[%s9642_s25 + $0x9e4] ss:$16 sps:$4 sm:$0xff]  }
 0x188   : > { %3343 = vmatpush1.bf16.msra.mxu0 %v8175_v44  ;;  %3671 = vmatpush1.bf16.msra.mxu1 %v8178_v45  ;;  %v8268_v44 = vld [vmem:[%s9642_s25 + $0x808] ss:$16 sps:$4 sm:$0xff]   ;;  %v8273_v45 = vld [vmem:[%s9642_s25 + $0x824] ss:$16 sps:$4 sm:$0xff]  }
 0x189   : > { %3344 = vmatprep.subr.bf16.mxu0 %v8183_v46  ;;  %3672 = vmatprep.subr.bf16.mxu1 %v8186_v47  ;;  %v8276_v46 = vld [vmem:[%s9642_s25 + $0x82c] ss:$16 sps:$4 sm:$0xff]   ;;  %v472_v47 = vpack.c.bf16 %v457_v42, %v457_v42 }
 0x18a   : > { %v456_v42 = vld [vmem:[#allocation2 + $0x40] sm:$0xff] }
 0x18c   : > { %3345 = vmatpush1.bf16.msra.mxu0 %v8181_v48  ;;  %3673 = vmatpush1.bf16.msra.mxu1 %v8184_v49  ;;  %v8271_v48 = vld [vmem:[%s9642_s25 + $0x820] ss:$16 sps:$4 sm:$0xff]   ;;  %v8274_v49 = vld [vmem:[%s9642_s25 + $0x828] ss:$16 sps:$4 sm:$0xff]  }
 0x18d   : > { %3346 = vmatprep.subr.bf16.mxu0 %v8189_v50  ;;  %3674 = vmatprep.subr.bf16.mxu1 %v8192_v51  ;;  %v8279_v50 = vld [vmem:[%s9642_s25 + $0x844] ss:$16 sps:$4 sm:$0xff]   ;;  %v8282_v51 = vld [vmem:[%s9642_s25 + $0x84c] ss:$16 sps:$4 sm:$0xff]  }
 0x190   : > { %3347 = vmatpush1.bf16.msra.mxu0 %v8187_v52  ;;  %3675 = vmatpush1.bf16.msra.mxu1 %v8190_v53  ;;  %v8277_v52 = vld [vmem:[%s9642_s25 + $0x840] ss:$16 sps:$4 sm:$0xff]   ;;  %v8280_v53 = vld [vmem:[%s9642_s25 + $0x848] ss:$16 sps:$4 sm:$0xff]  }
 0x191   : > { %3348 = vmatprep.subr.bf16.mxu0 %v8195_v54  ;;  %3676 = vmatprep.subr.bf16.mxu1 %v8198_v55  ;;  %v8285_v54 = vld [vmem:[%s9642_s25 + $0x864] ss:$16 sps:$4 sm:$0xff]   ;;  %v8288_v55 = vld [vmem:[%s9642_s25 + $0x86c] ss:$16 sps:$4 sm:$0xff]  }
 0x194   : > { %3349 = vmatpush1.bf16.msra.mxu0 %v8193_v56  ;;  %3677 = vmatpush1.bf16.msra.mxu1 %v8196_v57  ;;  %v8283_v56 = vld [vmem:[%s9642_s25 + $0x860] ss:$16 sps:$4 sm:$0xff]   ;;  %v8286_v57 = vld [vmem:[%s9642_s25 + $0x868] ss:$16 sps:$4 sm:$0xff]  }
 0x195   : > { %3350 = vmatprep.subr.bf16.mxu0 %v8201_v58  ;;  %3678 = vmatprep.subr.bf16.mxu1 %v8204_v59  ;;  %v8291_v58 = vld [vmem:[%s9642_s25 + $0x884] ss:$16 sps:$4 sm:$0xff]   ;;  %v8294_v59 = vld [vmem:[%s9642_s25 + $0x88c] ss:$16 sps:$4 sm:$0xff]  }
 0x198   : > { %3351 = vmatpush1.bf16.msra.mxu0 %v8199_v60  ;;  %3679 = vmatpush1.bf16.msra.mxu1 %v8202_v61  ;;  %v8289_v60 = vld [vmem:[%s9642_s25 + $0x880] ss:$16 sps:$4 sm:$0xff]   ;;  %v8292_v61 = vld [vmem:[%s9642_s25 + $0x888] ss:$16 sps:$4 sm:$0xff]  }
 0x199   : > { %3352 = vmatprep.subr.bf16.mxu0 %v8207_v62  ;;  %3680 = vmatprep.subr.bf16.mxu1 %v8210_v63  ;;  %v8297_v62 = vld [vmem:[%s9642_s25 + $0x8a4] ss:$16 sps:$4 sm:$0xff]   ;;  %v8300_v63 = vld [vmem:[%s9642_s25 + $0x8ac] ss:$16 sps:$4 sm:$0xff]  }
 0x19c   : > { %3353 = vmatpush1.bf16.msra.mxu0 %v8205_v0  ;;  %3681 = vmatpush1.bf16.msra.mxu1 %v8208_v1  ;;  %v8295_v0 = vld [vmem:[%s9642_s25 + $0x8a0] ss:$16 sps:$4 sm:$0xff]   ;;  %v8298_v1 = vld [vmem:[%s9642_s25 + $0x8a8] ss:$16 sps:$4 sm:$0xff]  }
 0x19d   : > { %3354 = vmatprep.subr.bf16.mxu0 %v8213_v2  ;;  %3682 = vmatprep.subr.bf16.mxu1 %v8216_v3  ;;  %v8303_v2 = vld [vmem:[%s9642_s25 + $0x8c4] ss:$16 sps:$4 sm:$0xff]   ;;  %v8306_v3 = vld [vmem:[%s9642_s25 + $0x8cc] ss:$16 sps:$4 sm:$0xff]  }
 0x1a0   : > { %3355 = vmatpush1.bf16.msra.mxu0 %v8211_v4  ;;  %3683 = vmatpush1.bf16.msra.mxu1 %v8214_v5  ;;  %v8301_v4 = vld [vmem:[%s9642_s25 + $0x8c0] ss:$16 sps:$4 sm:$0xff]   ;;  %v8304_v5 = vld [vmem:[%s9642_s25 + $0x8c8] ss:$16 sps:$4 sm:$0xff]  }
 0x1a1   : > { %3356 = vmatprep.subr.bf16.mxu0 %v8219_v6  ;;  %3684 = vmatprep.subr.bf16.mxu1 %v8222_v7  ;;  %v8309_v6 = vld [vmem:[%s9642_s25 + $0x8e4] ss:$16 sps:$4 sm:$0xff]   ;;  %v8312_v7 = vld [vmem:[%s9642_s25 + $0x8ec] ss:$16 sps:$4 sm:$0xff]  }
 0x1a4   : > { %3357 = vmatpush1.bf16.msra.mxu0 %v8217_v8  ;;  %3685 = vmatpush1.bf16.msra.mxu1 %v8220_v9  ;;  %v8307_v8 = vld [vmem:[%s9642_s25 + $0x8e0] ss:$16 sps:$4 sm:$0xff]   ;;  %v8310_v9 = vld [vmem:[%s9642_s25 + $0x8e8] ss:$16 sps:$4 sm:$0xff]  }
 0x1a5   : > { %3358 = vmatprep.subr.bf16.mxu0 %v8225_v10  ;;  %3686 = vmatprep.subr.bf16.mxu1 %v8228_v11  ;;  %v8315_v10 = vld [vmem:[%s9642_s25 + $0x904] ss:$16 sps:$4 sm:$0xff]   ;;  %v8318_v11 = vld [vmem:[%s9642_s25 + $0x90c] ss:$16 sps:$4 sm:$0xff]  }
 0x1a8   : > { %3359 = vmatpush1.bf16.msra.mxu0 %v8223_v12  ;;  %3687 = vmatpush1.bf16.msra.mxu1 %v8226_v13  ;;  %v8313_v12 = vld [vmem:[%s9642_s25 + $0x900] ss:$16 sps:$4 sm:$0xff]   ;;  %v8316_v13 = vld [vmem:[%s9642_s25 + $0x908] ss:$16 sps:$4 sm:$0xff]  }
 0x1a9   : > { %3360 = vmatprep.subr.bf16.mxu0 %v8231_v14  ;;  %3688 = vmatprep.subr.bf16.mxu1 %v8234_v15  ;;  %v8321_v14 = vld [vmem:[%s9642_s25 + $0x924] ss:$16 sps:$4 sm:$0xff]   ;;  %v8324_v15 = vld [vmem:[%s9642_s25 + $0x92c] ss:$16 sps:$4 sm:$0xff]  }
 0x1ac   : > { %3361 = vmatpush1.bf16.msra.mxu0 %v8229_v16  ;;  %3689 = vmatpush1.bf16.msra.mxu1 %v8232_v17  ;;  %v8319_v16 = vld [vmem:[%s9642_s25 + $0x920] ss:$16 sps:$4 sm:$0xff]   ;;  %v8322_v17 = vld [vmem:[%s9642_s25 + $0x928] ss:$16 sps:$4 sm:$0xff]  }
 0x1ad   : > { %3362 = vmatprep.subr.bf16.mxu0 %v8237_v18  ;;  %3690 = vmatprep.subr.bf16.mxu1 %v8240_v19  ;;  %v8327_v18 = vld [vmem:[%s9642_s25 + $0x944] ss:$16 sps:$4 sm:$0xff]   ;;  %v8330_v19 = vld [vmem:[%s9642_s25 + $0x94c] ss:$16 sps:$4 sm:$0xff]  }
 0x1b0   : > { %3363 = vmatpush1.bf16.msra.mxu0 %v8235_v20  ;;  %3691 = vmatpush1.bf16.msra.mxu1 %v8238_v21  ;;  %v8325_v20 = vld [vmem:[%s9642_s25 + $0x940] ss:$16 sps:$4 sm:$0xff]   ;;  %v8328_v21 = vld [vmem:[%s9642_s25 + $0x948] ss:$16 sps:$4 sm:$0xff]  }
 0x1b1   : > { %3364 = vmatprep.subr.bf16.mxu0 %v8243_v22  ;;  %3692 = vmatprep.subr.bf16.mxu1 %v8246_v23  ;;  %v8333_v22 = vld [vmem:[%s9642_s25 + $0x964] ss:$16 sps:$4 sm:$0xff]   ;;  %v8336_v23 = vld [vmem:[%s9642_s25 + $0x96c] ss:$16 sps:$4 sm:$0xff]  }
 0x1b4   : > { %3365 = vmatpush1.bf16.msra.mxu0 %v8241_v24  ;;  %3693 = vmatpush1.bf16.msra.mxu1 %v8244_v25  ;;  %v8331_v24 = vld [vmem:[%s9642_s25 + $0x960] ss:$16 sps:$4 sm:$0xff]   ;;  %v8334_v25 = vld [vmem:[%s9642_s25 + $0x968] ss:$16 sps:$4 sm:$0xff]  }
 0x1b5   : > { %3366 = vmatprep.subr.bf16.mxu0 %v8249_v26  ;;  %3694 = vmatprep.subr.bf16.mxu1 %v8252_v27  ;;  %v8339_v26 = vld [vmem:[%s9642_s25 + $0x984] ss:$16 sps:$4 sm:$0xff]   ;;  %v8342_v27 = vld [vmem:[%s9642_s25 + $0x98c] ss:$16 sps:$4 sm:$0xff]  }
 0x1b8   : > { %3367 = vmatpush1.bf16.msra.mxu0 %v8247_v28  ;;  %3695 = vmatpush1.bf16.msra.mxu1 %v8250_v29  ;;  %v8337_v28 = vld [vmem:[%s9642_s25 + $0x980] ss:$16 sps:$4 sm:$0xff]   ;;  %v8340_v29 = vld [vmem:[%s9642_s25 + $0x988] ss:$16 sps:$4 sm:$0xff]  }
 0x1b9   : > { %3368 = vmatprep.subr.bf16.mxu0 %v8255_v30  ;;  %3696 = vmatprep.subr.bf16.mxu1 %v8258_v31  ;;  %v8345_v30 = vld [vmem:[%s9642_s25 + $0x9a4] ss:$16 sps:$4 sm:$0xff]   ;;  %v8348_v31 = vld [vmem:[%s9642_s25 + $0x9ac] ss:$16 sps:$4 sm:$0xff]  }
 0x1bc   : > { %3369 = vmatpush1.bf16.msra.mxu0 %v8253_v32  ;;  %3697 = vmatpush1.bf16.msra.mxu1 %v8256_v33  ;;  %v8343_v32 = vld [vmem:[%s9642_s25 + $0x9a0] ss:$16 sps:$4 sm:$0xff]   ;;  %v8346_v33 = vld [vmem:[%s9642_s25 + $0x9a8] ss:$16 sps:$4 sm:$0xff]  }
 0x1bd   : > { %3370 = vmatprep.subr.bf16.mxu0 %v8261_v34  ;;  %3698 = vmatprep.subr.bf16.mxu1 %v8264_v35  ;;  %v8351_v34 = vld [vmem:[%s9642_s25 + $0x9c4] ss:$16 sps:$4 sm:$0xff]   ;;  %v8354_v35 = vld [vmem:[%s9642_s25 + $0x9cc] ss:$16 sps:$4 sm:$0xff]  }
 0x1c0   : > { %3371 = vmatpush1.bf16.msra.mxu0 %v8259_v36  ;;  %3699 = vmatpush1.bf16.msra.mxu1 %v8262_v37  ;;  %v8349_v36 = vld [vmem:[%s9642_s25 + $0x9c0] ss:$16 sps:$4 sm:$0xff]   ;;  %v8352_v37 = vld [vmem:[%s9642_s25 + $0x9c8] ss:$16 sps:$4 sm:$0xff]  }
 0x1c1   : > { %3381 = vmatprep.subr.bf16.mxu0 %v8267_v39  ;;  %3709 = vmatprep.subr.bf16.mxu1 %v8270_v40  ;;  %v8360_v39 = vld [vmem:[%s9642_s25 + $0x9ec] ss:$16 sps:$4 sm:$0xff]   ;;  %v8355_v40 = vld [vmem:[%s9642_s25 + $0x9e0] ss:$16 sps:$4 sm:$0xff]  }
 0x1c3   : > { %3373 = vmatmul.mubr.bf16.vlgmr.msra.gmra.mrb[0].mxu0 %v469_v41  ;;  %3701 = vmatmul.mubr.bf16.vlgmr.msra.gmra.mrb[0].mxu1 %v469_v41  ;;  %v8358_v41 = vld [vmem:[%s9642_s25 + $0x9e8] ss:$16 sps:$4 sm:$0xff]  }
 0x1c4   : > { %3382 = vmatpush1.bf16.msra.mxu0 %v8265_v43  ;;  %3710 = vmatpush1.bf16.msra.mxu1 %v8268_v44  ;;  %v8363_v43 = vld [vmem:[%s9642_s25 + $0xa04] ss:$16 sps:$4 sm:$0xff]   ;;  %v8366_v44 = vld [vmem:[%s9642_s25 + $0xa0c] ss:$16 sps:$4 sm:$0xff]  }
 0x1c5   : > { %3383 = vmatprep.subr.bf16.mxu0 %v8273_v45  ;;  %3711 = vmatprep.subr.bf16.mxu1 %v8276_v46  ;;  %v8361_v45 = vld [vmem:[%s9642_s25 + $0xa00] ss:$16 sps:$4 sm:$0xff]   ;;  %v8364_v46 = vld [vmem:[%s9642_s25 + $0xa08] ss:$16 sps:$4 sm:$0xff]  }
 0x1c6   : > { %3413 = vmatprep.mubr.bf16.mxu0 %v472_v47  ;;  %3741 = vmatprep.mubr.bf16.mxu1 %v472_v47  ;;  %v471_v47 = vpack.c.bf16 %v456_v42, %v456_v42  ;;  %v8453_v42 = vld [vmem:[%s9642_s25 + $0xbe4] ss:$16 sps:$4 sm:$0xff]  }
 0x1c8   : > { %3384 = vmatpush1.bf16.msra.mxu0 %v8271_v48  ;;  %3712 = vmatpush1.bf16.msra.mxu1 %v8274_v49  ;;  %v8369_v48 = vld [vmem:[%s9642_s25 + $0xa24] ss:$16 sps:$4 sm:$0xff]  }
 0x1c9   : > { %3385 = vmatprep.subr.bf16.mxu0 %v8279_v50  ;;  %3713 = vmatprep.subr.bf16.mxu1 %v8282_v51  ;;  %v459_v49 = vld [vmem:[#allocation2 + $0x58] sm:$0xff]  ;;  %v8372_v50 = vld [vmem:[%s9642_s25 + $0xa2c] ss:$16 sps:$4 sm:$0xff]  }
 0x1ca   : > { %v8367_v51 = vld [vmem:[%s9642_s25 + $0xa20] ss:$16 sps:$4 sm:$0xff]  }
 0x1cc   : > { %3386 = vmatpush1.bf16.msra.mxu0 %v8277_v52  ;;  %3714 = vmatpush1.bf16.msra.mxu1 %v8280_v53  ;;  %v474_v52 = vpack.c.bf16 %v459_v49, %v459_v49  ;;  %v8370_v53 = vld [vmem:[%s9642_s25 + $0xa28] ss:$16 sps:$4 sm:$0xff]   ;;  %v461_v49 = vld [vmem:[#allocation2 + $0x68] sm:$0xff] }
 0x1cd   : > { %3387 = vmatprep.subr.bf16.mxu0 %v8285_v54  ;;  %3715 = vmatprep.subr.bf16.mxu1 %v8288_v55  ;;  %v8375_v54 = vld [vmem:[%s9642_s25 + $0xa44] ss:$16 sps:$4 sm:$0xff]   ;;  %v8378_v55 = vld [vmem:[%s9642_s25 + $0xa4c] ss:$16 sps:$4 sm:$0xff]  }
 0x1d0   : > { %3388 = vmatpush1.bf16.msra.mxu0 %v8283_v56  ;;  %3716 = vmatpush1.bf16.msra.mxu1 %v8286_v57  ;;  %v8373_v56 = vld [vmem:[%s9642_s25 + $0xa40] ss:$16 sps:$4 sm:$0xff]   ;;  %v8376_v57 = vld [vmem:[%s9642_s25 + $0xa48] ss:$16 sps:$4 sm:$0xff]  }
 0x1d1   : > { %3389 = vmatprep.subr.bf16.mxu0 %v8291_v58  ;;  %3717 = vmatprep.subr.bf16.mxu1 %v8294_v59  ;;  %v8381_v58 = vld [vmem:[%s9642_s25 + $0xa64] ss:$16 sps:$4 sm:$0xff]   ;;  %v8384_v59 = vld [vmem:[%s9642_s25 + $0xa6c] ss:$16 sps:$4 sm:$0xff]  }
 0x1d4   : > { %3390 = vmatpush1.bf16.msra.mxu0 %v8289_v60  ;;  %3718 = vmatpush1.bf16.msra.mxu1 %v8292_v61  ;;  %v8379_v60 = vld [vmem:[%s9642_s25 + $0xa60] ss:$16 sps:$4 sm:$0xff]   ;;  %v8382_v61 = vld [vmem:[%s9642_s25 + $0xa68] ss:$16 sps:$4 sm:$0xff]  }
 0x1d5   : > { %3391 = vmatprep.subr.bf16.mxu0 %v8297_v62  ;;  %3719 = vmatprep.subr.bf16.mxu1 %v8300_v63  ;;  %v8387_v62 = vld [vmem:[%s9642_s25 + $0xa84] ss:$16 sps:$4 sm:$0xff]   ;;  %v8390_v63 = vld [vmem:[%s9642_s25 + $0xa8c] ss:$16 sps:$4 sm:$0xff]  }
 0x1d8   : > { %3392 = vmatpush1.bf16.msra.mxu0 %v8295_v0  ;;  %3720 = vmatpush1.bf16.msra.mxu1 %v8298_v1  ;;  %v8385_v0 = vld [vmem:[%s9642_s25 + $0xa80] ss:$16 sps:$4 sm:$0xff]   ;;  %v8388_v1 = vld [vmem:[%s9642_s25 + $0xa88] ss:$16 sps:$4 sm:$0xff]  }
 0x1d9   : > { %3393 = vmatprep.subr.bf16.mxu0 %v8303_v2  ;;  %3721 = vmatprep.subr.bf16.mxu1 %v8306_v3  ;;  %v8393_v2 = vld [vmem:[%s9642_s25 + $0xaa4] ss:$16 sps:$4 sm:$0xff]   ;;  %v8396_v3 = vld [vmem:[%s9642_s25 + $0xaac] ss:$16 sps:$4 sm:$0xff]  }
 0x1dc   : > { %3394 = vmatpush1.bf16.msra.mxu0 %v8301_v4  ;;  %3722 = vmatpush1.bf16.msra.mxu1 %v8304_v5  ;;  %v8391_v4 = vld [vmem:[%s9642_s25 + $0xaa0] ss:$16 sps:$4 sm:$0xff]   ;;  %v8394_v5 = vld [vmem:[%s9642_s25 + $0xaa8] ss:$16 sps:$4 sm:$0xff]  }
 0x1dd   : > { %3395 = vmatprep.subr.bf16.mxu0 %v8309_v6  ;;  %3723 = vmatprep.subr.bf16.mxu1 %v8312_v7  ;;  %v8399_v6 = vld [vmem:[%s9642_s25 + $0xac4] ss:$16 sps:$4 sm:$0xff]   ;;  %v8402_v7 = vld [vmem:[%s9642_s25 + $0xacc] ss:$16 sps:$4 sm:$0xff]  }
 0x1e0   : > { %3396 = vmatpush1.bf16.msra.mxu0 %v8307_v8  ;;  %3724 = vmatpush1.bf16.msra.mxu1 %v8310_v9  ;;  %v8397_v8 = vld [vmem:[%s9642_s25 + $0xac0] ss:$16 sps:$4 sm:$0xff]   ;;  %v8400_v9 = vld [vmem:[%s9642_s25 + $0xac8] ss:$16 sps:$4 sm:$0xff]  }
 0x1e1   : > { %3397 = vmatprep.subr.bf16.mxu0 %v8315_v10  ;;  %3725 = vmatprep.subr.bf16.mxu1 %v8318_v11  ;;  %v8405_v10 = vld [vmem:[%s9642_s25 + $0xae4] ss:$16 sps:$4 sm:$0xff]   ;;  %v8408_v11 = vld [vmem:[%s9642_s25 + $0xaec] ss:$16 sps:$4 sm:$0xff]  }
 0x1e4   : > { %3398 = vmatpush1.bf16.msra.mxu0 %v8313_v12  ;;  %3726 = vmatpush1.bf16.msra.mxu1 %v8316_v13  ;;  %v8403_v12 = vld [vmem:[%s9642_s25 + $0xae0] ss:$16 sps:$4 sm:$0xff]   ;;  %v8406_v13 = vld [vmem:[%s9642_s25 + $0xae8] ss:$16 sps:$4 sm:$0xff]  }
 0x1e5   : > { %3399 = vmatprep.subr.bf16.mxu0 %v8321_v14  ;;  %3727 = vmatprep.subr.bf16.mxu1 %v8324_v15  ;;  %v8411_v14 = vld [vmem:[%s9642_s25 + $0xb04] ss:$16 sps:$4 sm:$0xff]   ;;  %v8414_v15 = vld [vmem:[%s9642_s25 + $0xb0c] ss:$16 sps:$4 sm:$0xff]  }
 0x1e8   : > { %3400 = vmatpush1.bf16.msra.mxu0 %v8319_v16  ;;  %3728 = vmatpush1.bf16.msra.mxu1 %v8322_v17  ;;  %v8409_v16 = vld [vmem:[%s9642_s25 + $0xb00] ss:$16 sps:$4 sm:$0xff]   ;;  %v8412_v17 = vld [vmem:[%s9642_s25 + $0xb08] ss:$16 sps:$4 sm:$0xff]  }
 0x1e9   : > { %3401 = vmatprep.subr.bf16.mxu0 %v8327_v18  ;;  %3729 = vmatprep.subr.bf16.mxu1 %v8330_v19  ;;  %v8417_v18 = vld [vmem:[%s9642_s25 + $0xb24] ss:$16 sps:$4 sm:$0xff]   ;;  %v8420_v19 = vld [vmem:[%s9642_s25 + $0xb2c] ss:$16 sps:$4 sm:$0xff]  }
 0x1ec   : > { %3402 = vmatpush1.bf16.msra.mxu0 %v8325_v20  ;;  %3730 = vmatpush1.bf16.msra.mxu1 %v8328_v21  ;;  %v8415_v20 = vld [vmem:[%s9642_s25 + $0xb20] ss:$16 sps:$4 sm:$0xff]   ;;  %v8418_v21 = vld [vmem:[%s9642_s25 + $0xb28] ss:$16 sps:$4 sm:$0xff]  }
 0x1ed   : > { %3403 = vmatprep.subr.bf16.mxu0 %v8333_v22  ;;  %3731 = vmatprep.subr.bf16.mxu1 %v8336_v23  ;;  %v8423_v22 = vld [vmem:[%s9642_s25 + $0xb44] ss:$16 sps:$4 sm:$0xff]   ;;  %v8426_v23 = vld [vmem:[%s9642_s25 + $0xb4c] ss:$16 sps:$4 sm:$0xff]  }
 0x1f0   : > { %3404 = vmatpush1.bf16.msra.mxu0 %v8331_v24  ;;  %3732 = vmatpush1.bf16.msra.mxu1 %v8334_v25  ;;  %v8421_v24 = vld [vmem:[%s9642_s25 + $0xb40] ss:$16 sps:$4 sm:$0xff]   ;;  %v8424_v25 = vld [vmem:[%s9642_s25 + $0xb48] ss:$16 sps:$4 sm:$0xff]  }
 0x1f1   : > { %3405 = vmatprep.subr.bf16.mxu0 %v8339_v26  ;;  %3733 = vmatprep.subr.bf16.mxu1 %v8342_v27  ;;  %v8429_v26 = vld [vmem:[%s9642_s25 + $0xb64] ss:$16 sps:$4 sm:$0xff]   ;;  %v8432_v27 = vld [vmem:[%s9642_s25 + $0xb6c] ss:$16 sps:$4 sm:$0xff]  }
 0x1f4   : > { %3406 = vmatpush1.bf16.msra.mxu0 %v8337_v28  ;;  %3734 = vmatpush1.bf16.msra.mxu1 %v8340_v29  ;;  %v8427_v28 = vld [vmem:[%s9642_s25 + $0xb60] ss:$16 sps:$4 sm:$0xff]   ;;  %v8430_v29 = vld [vmem:[%s9642_s25 + $0xb68] ss:$16 sps:$4 sm:$0xff]  }
 0x1f5   : > { %3407 = vmatprep.subr.bf16.mxu0 %v8345_v30  ;;  %3735 = vmatprep.subr.bf16.mxu1 %v8348_v31  ;;  %v8435_v30 = vld [vmem:[%s9642_s25 + $0xb84] ss:$16 sps:$4 sm:$0xff]   ;;  %v8438_v31 = vld [vmem:[%s9642_s25 + $0xb8c] ss:$16 sps:$4 sm:$0xff]  }
 0x1f8   : > { %3408 = vmatpush1.bf16.msra.mxu0 %v8343_v32  ;;  %3736 = vmatpush1.bf16.msra.mxu1 %v8346_v33  ;;  %v8433_v32 = vld [vmem:[%s9642_s25 + $0xb80] ss:$16 sps:$4 sm:$0xff]   ;;  %v8436_v33 = vld [vmem:[%s9642_s25 + $0xb88] ss:$16 sps:$4 sm:$0xff]  }
 0x1f9   : > { %3409 = vmatprep.subr.bf16.mxu0 %v8351_v34  ;;  %3737 = vmatprep.subr.bf16.mxu1 %v8354_v35  ;;  %v8441_v34 = vld [vmem:[%s9642_s25 + $0xba4] ss:$16 sps:$4 sm:$0xff]   ;;  %v8444_v35 = vld [vmem:[%s9642_s25 + $0xbac] ss:$16 sps:$4 sm:$0xff]  }
 0x1fc   : > { %3410 = vmatpush1.bf16.msra.mxu0 %v8349_v36  ;;  %3738 = vmatpush1.bf16.msra.mxu1 %v8352_v37  ;;  %v8439_v36 = vld [vmem:[%s9642_s25 + $0xba0] ss:$16 sps:$4 sm:$0xff]   ;;  %v8442_v37 = vld [vmem:[%s9642_s25 + $0xba8] ss:$16 sps:$4 sm:$0xff]  }
 0x1fd   : > { %3411 = vmatprep.subr.bf16.mxu0 %v8357_v38  ;;  %3739 = vmatprep.subr.bf16.mxu1 %v8360_v39  ;;  %v8447_v38 = vld [vmem:[%s9642_s25 + $0xbc4] ss:$16 sps:$4 sm:$0xff]   ;;  %v8450_v39 = vld [vmem:[%s9642_s25 + $0xbcc] ss:$16 sps:$4 sm:$0xff]  }
 0x200   : > { %3412 = vmatpush1.bf16.msra.mxu0 %v8355_v40  ;;  %3740 = vmatpush1.bf16.msra.mxu1 %v8358_v41  ;;  %v8445_v40 = vld [vmem:[%s9642_s25 + $0xbc0] ss:$16 sps:$4 sm:$0xff]   ;;  %v8448_v41 = vld [vmem:[%s9642_s25 + $0xbc8] ss:$16 sps:$4 sm:$0xff]  }
 0x201   : > { %3422 = vmatprep.subr.bf16.mxu0 %v8363_v43  ;;  %3750 = vmatprep.subr.bf16.mxu1 %v8366_v44  ;;  %v8456_v43 = vld [vmem:[%s9642_s25 + $0xbec] ss:$16 sps:$4 sm:$0xff]   ;;  %v8451_v44 = vld [vmem:[%s9642_s25 + $0xbe0] ss:$16 sps:$4 sm:$0xff]  }
 0x203   : > { %3414 = vmatmul.mubr.bf16.vlgmr.msra.gmra.mrb[0].mxu0 %v471_v47  ;;  %3742 = vmatmul.mubr.bf16.vlgmr.msra.gmra.mrb[0].mxu1 %v471_v47  ;;  %v458_v47 = vld [vmem:[#allocation2 + $0x50] sm:$0xff] }
 0x204   : > { %3423 = vmatpush1.bf16.msra.mxu0 %v8361_v45  ;;  %3751 = vmatpush1.bf16.msra.mxu1 %v8364_v46  ;;  %v8454_v45 = vld [vmem:[%s9642_s25 + $0xbe8] ss:$16 sps:$4 sm:$0xff]   ;;  %v8459_v46 = vld [vmem:[%s9642_s25 + $0xc04] ss:$16 sps:$4 sm:$0xff]  }
 0x205   : > { %3424 = vmatprep.subr.bf16.mxu0 %v8369_v48  ;;  %3752 = vmatprep.subr.bf16.mxu1 %v8372_v50  ;;  %v8462_v48 = vld [vmem:[%s9642_s25 + $0xc0c] ss:$16 sps:$4 sm:$0xff]   ;;  %v473_v50 = vpack.c.bf16 %v458_v47, %v458_v47 }
 0x206   : > { %3454 = vmatprep.mubr.bf16.mxu0 %v474_v52  ;;  %3782 = vmatprep.mubr.bf16.mxu1 %v474_v52  ;;  %v8460_v52 = vld [vmem:[%s9642_s25 + $0xc08] ss:$16 sps:$4 sm:$0xff]   ;;  %v8552_v47 = vld [vmem:[%s9642_s25 + $0xdec] ss:$16 sps:$4 sm:$0xff]  }
 0x208   : > { %3425 = vmatpush1.bf16.msra.mxu0 %v8367_v51  ;;  %3753 = vmatpush1.bf16.msra.mxu1 %v8370_v53  ;;  %v8457_v51 = vld [vmem:[%s9642_s25 + $0xc00] ss:$16 sps:$4 sm:$0xff]   ;;  %v8465_v53 = vld [vmem:[%s9642_s25 + $0xc24] ss:$16 sps:$4 sm:$0xff]  }
 0x209   : > { %3426 = vmatprep.subr.bf16.mxu0 %v8375_v54  ;;  %3754 = vmatprep.subr.bf16.mxu1 %v8378_v55  ;;  %v8468_v54 = vld [vmem:[%s9642_s25 + $0xc2c] ss:$16 sps:$4 sm:$0xff]   ;;  %v8463_v55 = vld [vmem:[%s9642_s25 + $0xc20] ss:$16 sps:$4 sm:$0xff]  }
 0x20c   : > { %3427 = vmatpush1.bf16.msra.mxu0 %v8373_v56  ;;  %3755 = vmatpush1.bf16.msra.mxu1 %v8376_v57  ;;  %v8466_v56 = vld [vmem:[%s9642_s25 + $0xc28] ss:$16 sps:$4 sm:$0xff]   ;;  %v476_v57 = vpack.c.bf16 %v461_v49, %v461_v49 }
 0x20d   : > { %3428 = vmatprep.subr.bf16.mxu0 %v8381_v58  ;;  %3756 = vmatprep.subr.bf16.mxu1 %v8384_v59  ;;  %v8471_v58 = vld [vmem:[%s9642_s25 + $0xc44] ss:$16 sps:$4 sm:$0xff]   ;;  %v8474_v59 = vld [vmem:[%s9642_s25 + $0xc4c] ss:$16 sps:$4 sm:$0xff]  }
 0x20e   : > { %v927_v49 = vld [vmem:[%s9642_s25 + $0xe08] sm:$0xff] }
 0x210   : > { %3429 = vmatpush1.bf16.msra.mxu0 %v8379_v60  ;;  %3757 = vmatpush1.bf16.msra.mxu1 %v8382_v61  ;;  %v8469_v60 = vld [vmem:[%s9642_s25 + $0xc40] ss:$16 sps:$4 sm:$0xff]   ;;  %v8472_v61 = vld [vmem:[%s9642_s25 + $0xc48] ss:$16 sps:$4 sm:$0xff]  }
 0x211   : > { %3430 = vmatprep.subr.bf16.mxu0 %v8387_v62  ;;  %3758 = vmatprep.subr.bf16.mxu1 %v8390_v63  ;;  %v8477_v62 = vld [vmem:[%s9642_s25 + $0xc64] ss:$16 sps:$4 sm:$0xff]   ;;  %v8480_v63 = vld [vmem:[%s9642_s25 + $0xc6c] ss:$16 sps:$4 sm:$0xff]  }
 0x214   : > { %3431 = vmatpush1.bf16.msra.mxu0 %v8385_v0  ;;  %3759 = vmatpush1.bf16.msra.mxu1 %v8388_v1  ;;  %v8475_v0 = vld [vmem:[%s9642_s25 + $0xc60] ss:$16 sps:$4 sm:$0xff]   ;;  %v8478_v1 = vld [vmem:[%s9642_s25 + $0xc68] ss:$16 sps:$4 sm:$0xff]  }
 0x215   : > { %3432 = vmatprep.subr.bf16.mxu0 %v8393_v2  ;;  %3760 = vmatprep.subr.bf16.mxu1 %v8396_v3  ;;  %v8483_v2 = vld [vmem:[%s9642_s25 + $0xc84] ss:$16 sps:$4 sm:$0xff]   ;;  %v8486_v3 = vld [vmem:[%s9642_s25 + $0xc8c] ss:$16 sps:$4 sm:$0xff]  }
 0x218   : > { %3433 = vmatpush1.bf16.msra.mxu0 %v8391_v4  ;;  %3761 = vmatpush1.bf16.msra.mxu1 %v8394_v5  ;;  %v8481_v4 = vld [vmem:[%s9642_s25 + $0xc80] ss:$16 sps:$4 sm:$0xff]   ;;  %v8484_v5 = vld [vmem:[%s9642_s25 + $0xc88] ss:$16 sps:$4 sm:$0xff]  }
 0x219   : > { %3434 = vmatprep.subr.bf16.mxu0 %v8399_v6  ;;  %3762 = vmatprep.subr.bf16.mxu1 %v8402_v7  ;;  %v8489_v6 = vld [vmem:[%s9642_s25 + $0xca4] ss:$16 sps:$4 sm:$0xff]   ;;  %v8492_v7 = vld [vmem:[%s9642_s25 + $0xcac] ss:$16 sps:$4 sm:$0xff]  }
 0x21c   : > { %3435 = vmatpush1.bf16.msra.mxu0 %v8397_v8  ;;  %3763 = vmatpush1.bf16.msra.mxu1 %v8400_v9  ;;  %v8487_v8 = vld [vmem:[%s9642_s25 + $0xca0] ss:$16 sps:$4 sm:$0xff]   ;;  %v8490_v9 = vld [vmem:[%s9642_s25 + $0xca8] ss:$16 sps:$4 sm:$0xff]  }
 0x21d   : > { %3436 = vmatprep.subr.bf16.mxu0 %v8405_v10  ;;  %3764 = vmatprep.subr.bf16.mxu1 %v8408_v11  ;;  %v8495_v10 = vld [vmem:[%s9642_s25 + $0xcc4] ss:$16 sps:$4 sm:$0xff]   ;;  %v8498_v11 = vld [vmem:[%s9642_s25 + $0xccc] ss:$16 sps:$4 sm:$0xff]  }
 0x220   : > { %3437 = vmatpush1.bf16.msra.mxu0 %v8403_v12  ;;  %3765 = vmatpush1.bf16.msra.mxu1 %v8406_v13  ;;  %v8493_v12 = vld [vmem:[%s9642_s25 + $0xcc0] ss:$16 sps:$4 sm:$0xff]   ;;  %v8496_v13 = vld [vmem:[%s9642_s25 + $0xcc8] ss:$16 sps:$4 sm:$0xff]  }
 0x221   : > { %3438 = vmatprep.subr.bf16.mxu0 %v8411_v14  ;;  %3766 = vmatprep.subr.bf16.mxu1 %v8414_v15  ;;  %v8501_v14 = vld [vmem:[%s9642_s25 + $0xce4] ss:$16 sps:$4 sm:$0xff]   ;;  %v8504_v15 = vld [vmem:[%s9642_s25 + $0xcec] ss:$16 sps:$4 sm:$0xff]  }
 0x224   : > { %3439 = vmatpush1.bf16.msra.mxu0 %v8409_v16  ;;  %3767 = vmatpush1.bf16.msra.mxu1 %v8412_v17  ;;  %v8499_v16 = vld [vmem:[%s9642_s25 + $0xce0] ss:$16 sps:$4 sm:$0xff]   ;;  %v8502_v17 = vld [vmem:[%s9642_s25 + $0xce8] ss:$16 sps:$4 sm:$0xff]  }
 0x225   : > { %3440 = vmatprep.subr.bf16.mxu0 %v8417_v18  ;;  %3768 = vmatprep.subr.bf16.mxu1 %v8420_v19  ;;  %v8507_v18 = vld [vmem:[%s9642_s25 + $0xd04] ss:$16 sps:$4 sm:$0xff]   ;;  %v8510_v19 = vld [vmem:[%s9642_s25 + $0xd0c] ss:$16 sps:$4 sm:$0xff]  }
 0x228   : > { %3441 = vmatpush1.bf16.msra.mxu0 %v8415_v20  ;;  %3769 = vmatpush1.bf16.msra.mxu1 %v8418_v21  ;;  %v8505_v20 = vld [vmem:[%s9642_s25 + $0xd00] ss:$16 sps:$4 sm:$0xff]   ;;  %v8508_v21 = vld [vmem:[%s9642_s25 + $0xd08] ss:$16 sps:$4 sm:$0xff]  }
 0x229   : > { %3442 = vmatprep.subr.bf16.mxu0 %v8423_v22  ;;  %3770 = vmatprep.subr.bf16.mxu1 %v8426_v23  ;;  %v8513_v22 = vld [vmem:[%s9642_s25 + $0xd24] ss:$16 sps:$4 sm:$0xff]   ;;  %v8516_v23 = vld [vmem:[%s9642_s25 + $0xd2c] ss:$16 sps:$4 sm:$0xff]  }
 0x22c   : > { %3443 = vmatpush1.bf16.msra.mxu0 %v8421_v24  ;;  %3771 = vmatpush1.bf16.msra.mxu1 %v8424_v25  ;;  %v8511_v24 = vld [vmem:[%s9642_s25 + $0xd20] ss:$16 sps:$4 sm:$0xff]   ;;  %v8514_v25 = vld [vmem:[%s9642_s25 + $0xd28] ss:$16 sps:$4 sm:$0xff]  }
 0x22d   : > { %3444 = vmatprep.subr.bf16.mxu0 %v8429_v26  ;;  %3772 = vmatprep.subr.bf16.mxu1 %v8432_v27  ;;  %v8519_v26 = vld [vmem:[%s9642_s25 + $0xd44] ss:$16 sps:$4 sm:$0xff]   ;;  %v8522_v27 = vld [vmem:[%s9642_s25 + $0xd4c] ss:$16 sps:$4 sm:$0xff]  }
 0x230   : > { %3445 = vmatpush1.bf16.msra.mxu0 %v8427_v28  ;;  %3773 = vmatpush1.bf16.msra.mxu1 %v8430_v29  ;;  %v8517_v28 = vld [vmem:[%s9642_s25 + $0xd40] ss:$16 sps:$4 sm:$0xff]   ;;  %v8520_v29 = vld [vmem:[%s9642_s25 + $0xd48] ss:$16 sps:$4 sm:$0xff]  }
 0x231   : > { %3446 = vmatprep.subr.bf16.mxu0 %v8435_v30  ;;  %3774 = vmatprep.subr.bf16.mxu1 %v8438_v31  ;;  %v8525_v30 = vld [vmem:[%s9642_s25 + $0xd64] ss:$16 sps:$4 sm:$0xff]   ;;  %v8528_v31 = vld [vmem:[%s9642_s25 + $0xd6c] ss:$16 sps:$4 sm:$0xff]  }
 0x234   : > { %3447 = vmatpush1.bf16.msra.mxu0 %v8433_v32  ;;  %3775 = vmatpush1.bf16.msra.mxu1 %v8436_v33  ;;  %v8523_v32 = vld [vmem:[%s9642_s25 + $0xd60] ss:$16 sps:$4 sm:$0xff]   ;;  %v8526_v33 = vld [vmem:[%s9642_s25 + $0xd68] ss:$16 sps:$4 sm:$0xff]  }
 0x235   : > { %3448 = vmatprep.subr.bf16.mxu0 %v8441_v34  ;;  %3776 = vmatprep.subr.bf16.mxu1 %v8444_v35  ;;  %v8531_v34 = vld [vmem:[%s9642_s25 + $0xd84] ss:$16 sps:$4 sm:$0xff]   ;;  %v8534_v35 = vld [vmem:[%s9642_s25 + $0xd8c] ss:$16 sps:$4 sm:$0xff]  }
 0x238   : > { %3449 = vmatpush1.bf16.msra.mxu0 %v8439_v36  ;;  %3777 = vmatpush1.bf16.msra.mxu1 %v8442_v37  ;;  %v8529_v36 = vld [vmem:[%s9642_s25 + $0xd80] ss:$16 sps:$4 sm:$0xff]   ;;  %v8532_v37 = vld [vmem:[%s9642_s25 + $0xd88] ss:$16 sps:$4 sm:$0xff]  }
 0x239   : > { %3450 = vmatprep.subr.bf16.mxu0 %v8447_v38  ;;  %3778 = vmatprep.subr.bf16.mxu1 %v8450_v39  ;;  %v8537_v38 = vld [vmem:[%s9642_s25 + $0xda4] ss:$16 sps:$4 sm:$0xff]   ;;  %v8540_v39 = vld [vmem:[%s9642_s25 + $0xdac] ss:$16 sps:$4 sm:$0xff]  }
 0x23c   : > { %3451 = vmatpush1.bf16.msra.mxu0 %v8445_v40  ;;  %3779 = vmatpush1.bf16.msra.mxu1 %v8448_v41  ;;  %v8535_v40 = vld [vmem:[%s9642_s25 + $0xda0] ss:$16 sps:$4 sm:$0xff]   ;;  %v8538_v41 = vld [vmem:[%s9642_s25 + $0xda8] ss:$16 sps:$4 sm:$0xff]  }
 0x23d   : > { %3452 = vmatprep.subr.bf16.mxu0 %v8453_v42  ;;  %3780 = vmatprep.subr.bf16.mxu1 %v8456_v43  ;;  %v8543_v42 = vld [vmem:[%s9642_s25 + $0xdc4] ss:$16 sps:$4 sm:$0xff]   ;;  %v8546_v43 = vld [vmem:[%s9642_s25 + $0xdcc] ss:$16 sps:$4 sm:$0xff]  }
 0x240   : > { %3453 = vmatpush1.bf16.msra.mxu0 %v8451_v44  ;;  %3781 = vmatpush1.bf16.msra.mxu1 %v8454_v45  ;;  %v8541_v44 = vld [vmem:[%s9642_s25 + $0xdc0] ss:$16 sps:$4 sm:$0xff]   ;;  %v8544_v45 = vld [vmem:[%s9642_s25 + $0xdc8] ss:$16 sps:$4 sm:$0xff]  }
 0x241   : > { %3463 = vmatprep.subr.bf16.mxu0 %v8459_v46  ;;  %3791 = vmatprep.subr.bf16.mxu1 %v8462_v48  ;;  %v8549_v46 = vld [vmem:[%s9642_s25 + $0xde4] ss:$16 sps:$4 sm:$0xff]  }
 0x242   : > { %v926_v48 = vld [vmem:[%s9642_s25 + $0xe00] sm:$0xff] }
 0x243   : > { %3455 = vmatmul.mubr.bf16.vlgmr.msra.gmra.mrb[0].mxu0 %v473_v50  ;;  %3783 = vmatmul.mubr.bf16.vlgmr.msra.gmra.mrb[0].mxu1 %v473_v50  ;;  %v8547_v50 = vld [vmem:[%s9642_s25 + $0xde0] ss:$16 sps:$4 sm:$0xff]  }
 0x244   : > { %3464 = vmatpush1.bf16.msra.mxu0 %v8457_v51  ;;  %3792 = vmatpush1.bf16.msra.mxu1 %v8460_v52  ;;  %v8550_v51 = vld [vmem:[%s9642_s25 + $0xde8] ss:$16 sps:$4 sm:$0xff]  }
 0x245   : > { %3465 = vmatprep.subr.bf16.mxu0 %v8465_v53  ;;  %3793 = vmatprep.subr.bf16.mxu1 %v8468_v54  ;;  %v460_v52 = vld [vmem:[#allocation2 + $0x60] sm:$0xff]  ;;  %v7320_v53 = vcombine.high %v926_v48, %v926_v48  ;;  %v7322_v54 = vcombine.high %v927_v49, %v927_v49 }
 0x246   : > { %3495 = vmatprep.mubr.bf16.mxu0 %v476_v57  ;;  %3823 = vmatprep.mubr.bf16.mxu1 %v476_v57  ;;  %v475_v57 = vpack.c.bf16 %v460_v52, %v460_v52  ;;  %v8640_v52 = vld [vmem:[%s9650_s13 + $0xae4] ss:$48 sps:$4 sm:$0xff]  }
 0x248   : > { %3466 = vmatpush1.bf16.msra.mxu0 %v8463_v55  ;;  %3794 = vmatpush1.bf16.msra.mxu1 %v8466_v56  ;;  %v7319_v55 = vcombine.low %v926_v48, %v926_v48  ;;  %v7321_v56 = vcombine.low %v927_v49, %v927_v49  ;;  %v8634_v48 = vld [vmem:[%s9650_s13 + $0xa84] ss:$48 sps:$4 sm:$0xff]   ;;  %v8629_v49 = vld [vmem:[%s9650_s13 + $0x480] ss:$48 sps:$4 sm:$0xff]  }
 0x249   : > { %3467 = vmatprep.subr.bf16.mxu0 %v8471_v58  ;;  %3795 = vmatprep.subr.bf16.mxu1 %v8474_v59  ;;  %v8559_v58 = vld [vmem:[%s9650_s13 + $0x4] ss:$48 sps:$4 sm:$0xff]  }
 0x24a   : > { %v8562_v59 = vld [vmem:[%s9650_s13 + $0x604] ss:$48 sps:$4 sm:$0xff]  }
 0x24c   : > { %3468 = vmatpush1.bf16.msra.mxu0 %v8469_v60  ;;  %3796 = vmatpush1.bf16.msra.mxu1 %v8472_v61  ;;  %v3206_v60 = vsel %vm3204_vm0, %v7319_v55, 0  ;;  %v3212_v61 = vsel %vm3204_vm0, %v7321_v56, 0  ;;  %v8643_v55 = vld [vmem:[%s9650_s13 + $0x544] ss:$48 sps:$4 sm:$0xff]  }
 0x24d   : > { %3469 = vmatprep.subr.bf16.mxu0 %v8477_v62  ;;  %3797 = vmatprep.subr.bf16.mxu1 %v8480_v63  ;;  %v9383_v62 = vmov 0   ;;  %v462_v63 = vld [vmem:[#allocation2 + $0x70] sm:$0xff] }
 0x24e   : > { %v8646_v56 = vld [vmem:[%s9650_s13 + $0xb44] ss:$48 sps:$4 sm:$0xff]  }
 0x250   : > { %3470 = vmatpush1.bf16.msra.mxu0 %v8475_v0  ;;  %3798 = vmatpush1.bf16.msra.mxu1 %v8478_v1  ;;  %v477_v0 = vpack.c.bf16 %v462_v63, %v462_v63  ;;  %v8557_v1 = vld [vmem:[%s9650_s13] ss:$48 sps:$4 sm:$0xff]   ;;  %v8655_v63 = vld [vmem:[%s9650_s13 + $0xc] ss:$48 sps:$4 sm:$0xff]  }
 0x251   : > { %3471 = vmatprep.subr.bf16.mxu0 %v8483_v2  ;;  %3799 = vmatprep.subr.bf16.mxu1 %v8486_v3  ;;  %v8560_v2 = vld [vmem:[%s9650_s13 + $0x600] ss:$48 sps:$4 sm:$0xff]   ;;  %v8565_v3 = vld [vmem:[%s9650_s13 + $0x64] ss:$48 sps:$4 sm:$0xff]  }
 0x254   : > { %3472 = vmatpush1.bf16.msra.mxu0 %v8481_v4  ;;  %3800 = vmatpush1.bf16.msra.mxu1 %v8484_v5  ;;  %v8568_v4 = vld [vmem:[%s9650_s13 + $0x664] ss:$48 sps:$4 sm:$0xff]   ;;  %v8563_v5 = vld [vmem:[%s9650_s13 + $0x60] ss:$48 sps:$4 sm:$0xff]  }
 0x255   : > { %3473 = vmatprep.subr.bf16.mxu0 %v8489_v6  ;;  %3801 = vmatprep.subr.bf16.mxu1 %v8492_v7  ;;  %v8566_v6 = vld [vmem:[%s9650_s13 + $0x660] ss:$48 sps:$4 sm:$0xff]   ;;  %v8571_v7 = vld [vmem:[%s9650_s13 + $0xc4] ss:$48 sps:$4 sm:$0xff]  }
 0x258   : > { %3474 = vmatpush1.bf16.msra.mxu0 %v8487_v8  ;;  %3802 = vmatpush1.bf16.msra.mxu1 %v8490_v9  ;;  %v8574_v8 = vld [vmem:[%s9650_s13 + $0x6c4] ss:$48 sps:$4 sm:$0xff]   ;;  %v8569_v9 = vld [vmem:[%s9650_s13 + $0xc0] ss:$48 sps:$4 sm:$0xff]  }
 0x259   : > { %3475 = vmatprep.subr.bf16.mxu0 %v8495_v10  ;;  %3803 = vmatprep.subr.bf16.mxu1 %v8498_v11  ;;  %v8572_v10 = vld [vmem:[%s9650_s13 + $0x6c0] ss:$48 sps:$4 sm:$0xff]   ;;  %v8577_v11 = vld [vmem:[%s9650_s13 + $0x124] ss:$48 sps:$4 sm:$0xff]  }
 0x25c   : > { %3476 = vmatpush1.bf16.msra.mxu0 %v8493_v12  ;;  %3804 = vmatpush1.bf16.msra.mxu1 %v8496_v13  ;;  %v8580_v12 = vld [vmem:[%s9650_s13 + $0x724] ss:$48 sps:$4 sm:$0xff]   ;;  %v8575_v13 = vld [vmem:[%s9650_s13 + $0x120] ss:$48 sps:$4 sm:$0xff]  }
 0x25d   : > { %3477 = vmatprep.subr.bf16.mxu0 %v8501_v14  ;;  %3805 = vmatprep.subr.bf16.mxu1 %v8504_v15  ;;  %v8578_v14 = vld [vmem:[%s9650_s13 + $0x720] ss:$48 sps:$4 sm:$0xff]   ;;  %v8583_v15 = vld [vmem:[%s9650_s13 + $0x184] ss:$48 sps:$4 sm:$0xff]  }
 0x260   : > { %3478 = vmatpush1.bf16.msra.mxu0 %v8499_v16  ;;  %3806 = vmatpush1.bf16.msra.mxu1 %v8502_v17  ;;  %v8586_v16 = vld [vmem:[%s9650_s13 + $0x784] ss:$48 sps:$4 sm:$0xff]   ;;  %v8581_v17 = vld [vmem:[%s9650_s13 + $0x180] ss:$48 sps:$4 sm:$0xff]  }
 0x261   : > { %3479 = vmatprep.subr.bf16.mxu0 %v8507_v18  ;;  %3807 = vmatprep.subr.bf16.mxu1 %v8510_v19  ;;  %v8584_v18 = vld [vmem:[%s9650_s13 + $0x780] ss:$48 sps:$4 sm:$0xff]   ;;  %v8589_v19 = vld [vmem:[%s9650_s13 + $0x1e4] ss:$48 sps:$4 sm:$0xff]  }
 0x264   : > { %3480 = vmatpush1.bf16.msra.mxu0 %v8505_v20  ;;  %3808 = vmatpush1.bf16.msra.mxu1 %v8508_v21  ;;  %v8592_v20 = vld [vmem:[%s9650_s13 + $0x7e4] ss:$48 sps:$4 sm:$0xff]   ;;  %v8587_v21 = vld [vmem:[%s9650_s13 + $0x1e0] ss:$48 sps:$4 sm:$0xff]  }
 0x265   : > { %3481 = vmatprep.subr.bf16.mxu0 %v8513_v22  ;;  %3809 = vmatprep.subr.bf16.mxu1 %v8516_v23  ;;  %v8590_v22 = vld [vmem:[%s9650_s13 + $0x7e0] ss:$48 sps:$4 sm:$0xff]   ;;  %v8595_v23 = vld [vmem:[%s9650_s13 + $0x244] ss:$48 sps:$4 sm:$0xff]  }
 0x268   : > { %3482 = vmatpush1.bf16.msra.mxu0 %v8511_v24  ;;  %3810 = vmatpush1.bf16.msra.mxu1 %v8514_v25  ;;  %v8598_v24 = vld [vmem:[%s9650_s13 + $0x844] ss:$48 sps:$4 sm:$0xff]   ;;  %v8593_v25 = vld [vmem:[%s9650_s13 + $0x240] ss:$48 sps:$4 sm:$0xff]  }
 0x269   : > { %3483 = vmatprep.subr.bf16.mxu0 %v8519_v26  ;;  %3811 = vmatprep.subr.bf16.mxu1 %v8522_v27  ;;  %v8596_v26 = vld [vmem:[%s9650_s13 + $0x840] ss:$48 sps:$4 sm:$0xff]   ;;  %v8601_v27 = vld [vmem:[%s9650_s13 + $0x2a4] ss:$48 sps:$4 sm:$0xff]  }
 0x26c   : > { %3484 = vmatpush1.bf16.msra.mxu0 %v8517_v28  ;;  %3812 = vmatpush1.bf16.msra.mxu1 %v8520_v29  ;;  %v8604_v28 = vld [vmem:[%s9650_s13 + $0x8a4] ss:$48 sps:$4 sm:$0xff]   ;;  %v8599_v29 = vld [vmem:[%s9650_s13 + $0x2a0] ss:$48 sps:$4 sm:$0xff]  }
 0x26d   : > { %3485 = vmatprep.subr.bf16.mxu0 %v8525_v30  ;;  %3813 = vmatprep.subr.bf16.mxu1 %v8528_v31  ;;  %v8602_v30 = vld [vmem:[%s9650_s13 + $0x8a0] ss:$48 sps:$4 sm:$0xff]   ;;  %v8607_v31 = vld [vmem:[%s9650_s13 + $0x304] ss:$48 sps:$4 sm:$0xff]  }
 0x270   : > { %3486 = vmatpush1.bf16.msra.mxu0 %v8523_v32  ;;  %3814 = vmatpush1.bf16.msra.mxu1 %v8526_v33  ;;  %v8610_v32 = vld [vmem:[%s9650_s13 + $0x904] ss:$48 sps:$4 sm:$0xff]   ;;  %v8605_v33 = vld [vmem:[%s9650_s13 + $0x300] ss:$48 sps:$4 sm:$0xff]  }
 0x271   : > { %3487 = vmatprep.subr.bf16.mxu0 %v8531_v34  ;;  %3815 = vmatprep.subr.bf16.mxu1 %v8534_v35  ;;  %v8608_v34 = vld [vmem:[%s9650_s13 + $0x900] ss:$48 sps:$4 sm:$0xff]   ;;  %v8613_v35 = vld [vmem:[%s9650_s13 + $0x364] ss:$48 sps:$4 sm:$0xff]  }
 0x274   : > { %3488 = vmatpush1.bf16.msra.mxu0 %v8529_v36  ;;  %3816 = vmatpush1.bf16.msra.mxu1 %v8532_v37  ;;  %v8616_v36 = vld [vmem:[%s9650_s13 + $0x964] ss:$48 sps:$4 sm:$0xff]   ;;  %v8611_v37 = vld [vmem:[%s9650_s13 + $0x360] ss:$48 sps:$4 sm:$0xff]  }
 0x275   : > { %3489 = vmatprep.subr.bf16.mxu0 %v8537_v38  ;;  %3817 = vmatprep.subr.bf16.mxu1 %v8540_v39  ;;  %v8614_v38 = vld [vmem:[%s9650_s13 + $0x960] ss:$48 sps:$4 sm:$0xff]   ;;  %v8619_v39 = vld [vmem:[%s9650_s13 + $0x3c4] ss:$48 sps:$4 sm:$0xff]  }
 0x278   : > { %3490 = vmatpush1.bf16.msra.mxu0 %v8535_v40  ;;  %3818 = vmatpush1.bf16.msra.mxu1 %v8538_v41  ;;  %v8622_v40 = vld [vmem:[%s9650_s13 + $0x9c4] ss:$48 sps:$4 sm:$0xff]   ;;  %v8617_v41 = vld [vmem:[%s9650_s13 + $0x3c0] ss:$48 sps:$4 sm:$0xff]  }
 0x279   : > { %3491 = vmatprep.subr.bf16.mxu0 %v8543_v42  ;;  %3819 = vmatprep.subr.bf16.mxu1 %v8546_v43  ;;  %v8620_v42 = vld [vmem:[%s9650_s13 + $0x9c0] ss:$48 sps:$4 sm:$0xff]   ;;  %v8625_v43 = vld [vmem:[%s9650_s13 + $0x424] ss:$48 sps:$4 sm:$0xff]  }
 0x27c   : > { %3492 = vmatpush1.bf16.msra.mxu0 %v8541_v44  ;;  %3820 = vmatpush1.bf16.msra.mxu1 %v8544_v45  ;;  %v8628_v44 = vld [vmem:[%s9650_s13 + $0xa24] ss:$48 sps:$4 sm:$0xff]   ;;  %v8623_v45 = vld [vmem:[%s9650_s13 + $0x420] ss:$48 sps:$4 sm:$0xff]  }
 0x27d   : > { %3493 = vmatprep.subr.bf16.mxu0 %v8549_v46  ;;  %3821 = vmatprep.subr.bf16.mxu1 %v8552_v47  ;;  %v8626_v46 = vld [vmem:[%s9650_s13 + $0xa20] ss:$48 sps:$4 sm:$0xff]   ;;  %v8631_v47 = vld [vmem:[%s9650_s13 + $0x484] ss:$48 sps:$4 sm:$0xff]  }
 0x280   : > { %3494 = vmatpush1.bf16.msra.mxu0 %v8547_v50  ;;  %3822 = vmatpush1.bf16.msra.mxu1 %v8550_v51  ;;  %v8632_v50 = vld [vmem:[%s9650_s13 + $0xa80] ss:$48 sps:$4 sm:$0xff]   ;;  %v8637_v51 = vld [vmem:[%s9650_s13 + $0x4e4] ss:$48 sps:$4 sm:$0xff]  }
 0x281   : > { %7323 = vmatprep.subr.msk.bf16.mxu0 %vm3204_vm0, %v7320_v53  ;;  %7325 = vmatprep.subr.msk.bf16.mxu1 %vm3204_vm0, %v7322_v54  ;;  %v8635_v53 = vld [vmem:[%s9650_s13 + $0x4e0] ss:$48 sps:$4 sm:$0xff]  }
 0x282   : > { %v8638_v54 = vld [vmem:[%s9650_s13 + $0xae0] ss:$48 sps:$4 sm:$0xff]  }
 0x283   : > { %3496 = vmatmul.mubr.bf16.vlgmr.msra.gmra.mrb[0].mxu0 %v475_v57  ;;  %3824 = vmatmul.mubr.bf16.vlgmr.msra.gmra.mrb[0].mxu1 %v475_v57  ;;  %v8641_v57 = vld [vmem:[%s9650_s13 + $0x540] ss:$48 sps:$4 sm:$0xff]  }
 0x284   : > { %3505 = vmatpush1.bf16.msra.mxu0 %v3206_v60  ;;  %3833 = vmatpush1.bf16.msra.mxu1 %v3212_v61  ;;  %v8652_v60 = vld [vmem:[%s9650_s13 + $0xba4] ss:$48 sps:$4 sm:$0xff]   ;;  %v8647_v61 = vld [vmem:[%s9650_s13 + $0x5a0] ss:$48 sps:$4 sm:$0xff]  }
 0x285   : > { %3536 = vmatprep.mubr.bf16.mxu0 %v9383_v62  ;;  %3864 = vmatprep.mubr.bf16.mxu1 %v9383_v62  ;;  %v8650_v62 = vld [vmem:[%s9650_s13 + $0xba0] ss:$48 sps:$4 sm:$0xff]  }
 0x286   : > { %6197 = vmatprep.subr.bf16.mxu0 %v8559_v58  ;;  %6238 = vmatprep.subr.bf16.mxu1 %v8562_v59  ;;  %v8644_v58 = vld [vmem:[%s9650_s13 + $0xb40] ss:$48 sps:$4 sm:$0xff]   ;;  %v8649_v59 = vld [vmem:[%s9650_s13 + $0x5a4] ss:$48 sps:$4 sm:$0xff]  }
 0x28f   : > { %7324 = vmatmul.mubr.msk.bf16.vlgmr.msra.gmra.mrb[0].mxu0 %vm3200_vm1, %v477_v0  ;;  %7326 = vmatmul.mubr.msk.bf16.vlgmr.msra.gmra.mrb[0].mxu1 %vm3200_vm1, %v477_v0  ;;  %v8658_v0 = vld [vmem:[%s9650_s13 + $0x60c] ss:$48 sps:$4 sm:$0xff]  }
 0x290   : > { %6198 = vmatpush1.bf16.msra.mxu0 %v8557_v1  ;;  %6239 = vmatpush1.bf16.msra.mxu1 %v8560_v2  ;;  %v930_v1 = vlaneseq }
 0x291   : > { %6199 = vmatprep.subr.bf16.mxu0 %v8565_v3  ;;  %6240 = vmatprep.subr.bf16.mxu1 %v8568_v4 }
 0x292   : > { %v931_v2 = vshrl.u32 %v930_v1, 7  ;;  %v8704_v1 = vld [vmem:[%s9650_s13 + $0x908] ss:$48 sps:$4 sm:$0xff]  }
 0x294   : > { %6200 = vmatpush1.bf16.msra.mxu0 %v8563_v5  ;;  %6241 = vmatpush1.bf16.msra.mxu1 %v8566_v6  ;;  %v932_v3 = vsub.s32 0, %v931_v2  ;;  %v940_v4 = vsub.s32 2, %v931_v2  ;;  %v928_v5 = vld [vmem:[%s9648_s6] sm:$0xf]  ;;  %v936_v6 = vsub.s32 1, %v931_v2 }
 0x295   : > { %6201 = vmatprep.subr.bf16.mxu0 %v8571_v7  ;;  %6242 = vmatprep.subr.bf16.mxu1 %v8574_v8  ;;  %v944_v7 = vsub.s32 3, %v931_v2  ;;  %v8709_v2 = vld [vmem:[%s9650_s13 + $0x36c] ss:$48 sps:$4 sm:$0xff]  }
 0x296   : > { %v933_v8 = vrot.slane %v928_v5, %v932_v3  ;;  %v8712_v3 = vld [vmem:[%s9650_s13 + $0x96c] ss:$48 sps:$4 sm:$0xff]  }
 0x298   : > { %6202 = vmatpush1.bf16.msra.mxu0 %v8569_v9  ;;  %6243 = vmatpush1.bf16.msra.mxu1 %v8572_v10  ;;  %v941_v9 = vrot.slane %v928_v5, %v940_v4  ;;  %v937_v10 = vrot.slane %v928_v5, %v936_v6  ;;  %v8707_v4 = vld [vmem:[%s9650_s13 + $0x368] ss:$48 sps:$4 sm:$0xff]   ;;  %v8715_v6 = vld [vmem:[%s9650_s13 + $0x3cc] ss:$48 sps:$4 sm:$0xff]  }
 0x299   : > { %6203 = vmatprep.subr.bf16.mxu0 %v8577_v11  ;;  %6244 = vmatprep.subr.bf16.mxu1 %v8580_v12  ;;  %v945_v11 = vrot.slane %v928_v5, %v944_v7  ;;  %v8710_v5 = vld [vmem:[%s9650_s13 + $0x968] ss:$48 sps:$4 sm:$0xff]   ;;  %v8718_v7 = vld [vmem:[%s9650_s13 + $0x9cc] ss:$48 sps:$4 sm:$0xff]  }
 0x29c   : > { %6204 = vmatpush1.bf16.msra.mxu0 %v8575_v13  ;;  %6245 = vmatpush1.bf16.msra.mxu1 %v8578_v14 }
 0x29d   : > { %6205 = vmatprep.subr.bf16.mxu0 %v8583_v15  ;;  %6246 = vmatprep.subr.bf16.mxu1 %v8586_v16 }
 0x2a0   : > { %6206 = vmatpush1.bf16.msra.mxu0 %v8581_v17  ;;  %6247 = vmatpush1.bf16.msra.mxu1 %v8584_v18 }
 0x2a1   : > { %6207 = vmatprep.subr.bf16.mxu0 %v8589_v19  ;;  %6248 = vmatprep.subr.bf16.mxu1 %v8592_v20 }
 0x2a4   : > { %6208 = vmatpush1.bf16.msra.mxu0 %v8587_v21  ;;  %6249 = vmatpush1.bf16.msra.mxu1 %v8590_v22 }
 0x2a5   : > { %6209 = vmatprep.subr.bf16.mxu0 %v8595_v23  ;;  %6250 = vmatprep.subr.bf16.mxu1 %v8598_v24 }
 0x2a8   : > { %6210 = vmatpush1.bf16.msra.mxu0 %v8593_v25  ;;  %6251 = vmatpush1.bf16.msra.mxu1 %v8596_v26 }
 0x2a9   : > { %6211 = vmatprep.subr.bf16.mxu0 %v8601_v27  ;;  %6252 = vmatprep.subr.bf16.mxu1 %v8604_v28 }
 0x2ac   : > { %6212 = vmatpush1.bf16.msra.mxu0 %v8599_v29  ;;  %6253 = vmatpush1.bf16.msra.mxu1 %v8602_v30  ;;  %v8653_v30 = vld [vmem:[%s9650_s13 + $0x8] ss:$48 sps:$4 sm:$0xff]  }
 0x2ad   : > { %6213 = vmatprep.subr.bf16.mxu0 %v8607_v31  ;;  %6254 = vmatprep.subr.bf16.mxu1 %v8610_v32  ;;  %v8656_v31 = vld [vmem:[%s9650_s13 + $0x608] ss:$48 sps:$4 sm:$0xff]  }
 0x2b0   : > { %6214 = vmatpush1.bf16.msra.mxu0 %v8605_v33  ;;  %6255 = vmatpush1.bf16.msra.mxu1 %v8608_v34  ;;  %v8661_v34 = vld [vmem:[%s9650_s13 + $0x6c] ss:$48 sps:$4 sm:$0xff]  }
 0x2b1   : > { %6215 = vmatprep.subr.bf16.mxu0 %v8613_v35  ;;  %6256 = vmatprep.subr.bf16.mxu1 %v8616_v36  ;;  %v8664_v35 = vld [vmem:[%s9650_s13 + $0x66c] ss:$48 sps:$4 sm:$0xff]   ;;  %v8659_v36 = vld [vmem:[%s9650_s13 + $0x68] ss:$48 sps:$4 sm:$0xff]  }
 0x2b4   : > { %6216 = vmatpush1.bf16.msra.mxu0 %v8611_v37  ;;  %6257 = vmatpush1.bf16.msra.mxu1 %v8614_v38  ;;  %v8662_v37 = vld [vmem:[%s9650_s13 + $0x668] ss:$48 sps:$4 sm:$0xff]   ;;  %v8667_v38 = vld [vmem:[%s9650_s13 + $0xcc] ss:$48 sps:$4 sm:$0xff]  }
 0x2b5   : > { %6217 = vmatprep.subr.bf16.mxu0 %v8619_v39  ;;  %6258 = vmatprep.subr.bf16.mxu1 %v8622_v40  ;;  %v8670_v39 = vld [vmem:[%s9650_s13 + $0x6cc] ss:$48 sps:$4 sm:$0xff]   ;;  %v8665_v40 = vld [vmem:[%s9650_s13 + $0xc8] ss:$48 sps:$4 sm:$0xff]  }
 0x2b8   : > { %6218 = vmatpush1.bf16.msra.mxu0 %v8617_v41  ;;  %6259 = vmatpush1.bf16.msra.mxu1 %v8620_v42  ;;  %v8668_v41 = vld [vmem:[%s9650_s13 + $0x6c8] ss:$48 sps:$4 sm:$0xff]   ;;  %v8673_v42 = vld [vmem:[%s9650_s13 + $0x12c] ss:$48 sps:$4 sm:$0xff]  }
 0x2b9   : > { %6219 = vmatprep.subr.bf16.mxu0 %v8625_v43  ;;  %6260 = vmatprep.subr.bf16.mxu1 %v8628_v44  ;;  %v8676_v43 = vld [vmem:[%s9650_s13 + $0x72c] ss:$48 sps:$4 sm:$0xff]   ;;  %v8671_v44 = vld [vmem:[%s9650_s13 + $0x128] ss:$48 sps:$4 sm:$0xff]  }
 0x2bc   : > { %6220 = vmatpush1.bf16.msra.mxu0 %v8623_v45  ;;  %6261 = vmatpush1.bf16.msra.mxu1 %v8626_v46  ;;  %v8674_v45 = vld [vmem:[%s9650_s13 + $0x728] ss:$48 sps:$4 sm:$0xff]   ;;  %v8679_v46 = vld [vmem:[%s9650_s13 + $0x18c] ss:$48 sps:$4 sm:$0xff]  }
 0x2bd   : > { %6221 = vmatprep.subr.bf16.mxu0 %v8631_v47  ;;  %6262 = vmatprep.subr.bf16.mxu1 %v8634_v48  ;;  %v8682_v47 = vld [vmem:[%s9650_s13 + $0x78c] ss:$48 sps:$4 sm:$0xff]   ;;  %v8677_v48 = vld [vmem:[%s9650_s13 + $0x188] ss:$48 sps:$4 sm:$0xff]  }
 0x2c0   : > { %6222 = vmatpush1.bf16.msra.mxu0 %v8629_v49  ;;  %6263 = vmatpush1.bf16.msra.mxu1 %v8632_v50  ;;  %v8680_v49 = vld [vmem:[%s9650_s13 + $0x788] ss:$48 sps:$4 sm:$0xff]   ;;  %v8685_v50 = vld [vmem:[%s9650_s13 + $0x1ec] ss:$48 sps:$4 sm:$0xff]  }
 0x2c1   : > { %6223 = vmatprep.subr.bf16.mxu0 %v8637_v51  ;;  %6264 = vmatprep.subr.bf16.mxu1 %v8640_v52  ;;  %v8688_v51 = vld [vmem:[%s9650_s13 + $0x7ec] ss:$48 sps:$4 sm:$0xff]   ;;  %v8683_v52 = vld [vmem:[%s9650_s13 + $0x1e8] ss:$48 sps:$4 sm:$0xff]  }
 0x2c4   : > { %6224 = vmatpush1.bf16.msra.mxu0 %v8635_v53  ;;  %6265 = vmatpush1.bf16.msra.mxu1 %v8638_v54  ;;  %v8686_v53 = vld [vmem:[%s9650_s13 + $0x7e8] ss:$48 sps:$4 sm:$0xff]   ;;  %v8691_v54 = vld [vmem:[%s9650_s13 + $0x24c] ss:$48 sps:$4 sm:$0xff]  }
 0x2c5   : > { %6225 = vmatprep.subr.bf16.mxu0 %v8643_v55  ;;  %6266 = vmatprep.subr.bf16.mxu1 %v8646_v56  ;;  %v8694_v55 = vld [vmem:[%s9650_s13 + $0x84c] ss:$48 sps:$4 sm:$0xff]   ;;  %v8689_v56 = vld [vmem:[%s9650_s13 + $0x248] ss:$48 sps:$4 sm:$0xff]  }
 0x2c8   : > { %6226 = vmatpush1.bf16.msra.mxu0 %v8641_v57  ;;  %6267 = vmatpush1.bf16.msra.mxu1 %v8644_v58  ;;  %v8692_v57 = vld [vmem:[%s9650_s13 + $0x848] ss:$48 sps:$4 sm:$0xff]   ;;  %v8697_v58 = vld [vmem:[%s9650_s13 + $0x2ac] ss:$48 sps:$4 sm:$0xff]  }
 0x2c9   : > { %6227 = vmatprep.subr.bf16.mxu0 %v8649_v59  ;;  %6268 = vmatprep.subr.bf16.mxu1 %v8652_v60  ;;  %v8700_v59 = vld [vmem:[%s9650_s13 + $0x8ac] ss:$48 sps:$4 sm:$0xff]   ;;  %v8695_v60 = vld [vmem:[%s9650_s13 + $0x2a8] ss:$48 sps:$4 sm:$0xff]  }
 0x2cc   : > { %6228 = vmatpush1.bf16.msra.mxu0 %v8647_v61  ;;  %6269 = vmatpush1.bf16.msra.mxu1 %v8650_v62  ;;  %v8698_v61 = vld [vmem:[%s9650_s13 + $0x8a8] ss:$48 sps:$4 sm:$0xff]   ;;  %v8703_v62 = vld [vmem:[%s9650_s13 + $0x30c] ss:$48 sps:$4 sm:$0xff]  }
 0x2cd   : > { %6279 = vmatprep.subr.bf16.mxu0 %v8655_v63  ;;  %6320 = vmatprep.subr.bf16.mxu1 %v8658_v0  ;;  %v8706_v63 = vld [vmem:[%s9650_s13 + $0x90c] ss:$48 sps:$4 sm:$0xff]   ;;  %v8701_v0 = vld [vmem:[%s9650_s13 + $0x308] ss:$48 sps:$4 sm:$0xff]  }
 0x362   : > { %v3538_v12 = vpop.f32.mrb[0].mxu0  ;;  %v3866_v13 = vpop.f32.mrb[0].mxu1 }
 0x363   : > { %v7717_v14 = vadd.f32 %v3538_v12, %v933_v8  ;;  %v7719_v15 = vadd.f32 %v3866_v13, %v941_v9  ;;  %v3540_v16 = vpop.f32.mrb[1].mxu0  ;;  %v3868_v17 = vpop.f32.mrb[1].mxu1  ;;  %v8713_v8 = vld [vmem:[%s9650_s13 + $0x3c8] ss:$48 sps:$4 sm:$0xff]  }
 0x364   : > { %v7718_v18 = vadd.f32 %v3540_v16, %v937_v10  ;;  %v7720_v19 = vadd.f32 %v3868_v17, %v945_v11  ;;  %v3542_v20 = vpop.f32.mrb[2].mxu0  ;;  %v3870_v21 = vpop.f32.mrb[2].mxu1  ;;  %v8716_v9 = vld [vmem:[%s9650_s13 + $0x9c8] ss:$48 sps:$4 sm:$0xff]   ;;  %v8721_v10 = vld [vmem:[%s9650_s13 + $0x42c] ss:$48 sps:$4 sm:$0xff]  }
 0x365   : > { %v3873_v22 = vmax.f32 %v7717_v14, 0.0  ;;  %v3875_v23 = vmax.f32 %v7719_v15, 0.0  ;;  %v3543_v24 = vpop.f32.mrb[3].mxu0  ;;  %v3871_v25 = vpop.f32.mrb[3].mxu1  ;;  %v8724_v11 = vld [vmem:[%s9650_s13 + $0xa2c] ss:$48 sps:$4 sm:$0xff]  }
 0x366   : > { %v3874_v26 = vmax.f32 %v7718_v18, 0.0  ;;  %v3876_v27 = vmax.f32 %v7720_v19, 0.0  ;;  %v8719_v12 = vld [vmem:[%s9650_s13 + $0x428] ss:$48 sps:$4 sm:$0xff]   ;;  %v8727_v14 = vld [vmem:[%s9650_s13 + $0x48c] ss:$48 sps:$4 sm:$0xff]  }
 0x367   : > { %v10184_v32 = vpack.c.bf16 %v3873_v22, %v3873_v22  ;;  %v10186_v33 = vpack.c.bf16 %v3875_v23, %v3875_v23  ;;  %v8722_v13 = vld [vmem:[%s9650_s13 + $0xa28] ss:$48 sps:$4 sm:$0xff]   ;;  %v8730_v15 = vld [vmem:[%s9650_s13 + $0xa8c] ss:$48 sps:$4 sm:$0xff]  }
 0x368   : > { %v10178_v28 = vpack.c.bf16 %v3874_v26, %v3874_v26  ;;  %v10180_v29 = vpack.c.bf16 %v3876_v27, %v3876_v27  ;;  %v8725_v16 = vld [vmem:[%s9650_s13 + $0x488] ss:$48 sps:$4 sm:$0xff]   ;;  %v8733_v18 = vld [vmem:[%s9650_s13 + $0x4ec] ss:$48 sps:$4 sm:$0xff]  }
 0x369   : > { %v8728_v17 = vld [vmem:[%s9650_s13 + $0xa88] ss:$48 sps:$4 sm:$0xff]   ;;  %v8736_v19 = vld [vmem:[%s9650_s13 + $0xaec] ss:$48 sps:$4 sm:$0xff]  }
 0x36a   : > { %6229 = vmatprep.mubr.bf16.mxu0 %v10178_v28  ;;  %6270 = vmatprep.mubr.bf16.mxu1 %v10180_v29  ;;  %v8731_v20 = vld [vmem:[%s9650_s13 + $0x4e8] ss:$48 sps:$4 sm:$0xff]   ;;  %v8739_v22 = vld [vmem:[%s9650_s13 + $0x54c] ss:$48 sps:$4 sm:$0xff]  }
 0x36b   : > { %6230 = vmatmul.mubr.bf16.vlgmr.msra.gmra.mrb[4].mxu0 %v10184_v32  ;;  %6271 = vmatmul.mubr.bf16.vlgmr.msra.gmra.mrb[4].mxu1 %v10186_v33  ;;  %v8734_v21 = vld [vmem:[%s9650_s13 + $0xae8] ss:$48 sps:$4 sm:$0xff]   ;;  %v8742_v23 = vld [vmem:[%s9650_s13 + $0xb4c] ss:$48 sps:$4 sm:$0xff]  }
 0x36c   : > { %6280 = vmatpush1.bf16.msra.mxu0 %v8653_v30  ;;  %6321 = vmatpush1.bf16.msra.mxu1 %v8656_v31  ;;  %v8737_v24 = vld [vmem:[%s9650_s13 + $0x548] ss:$48 sps:$4 sm:$0xff]   ;;  %v8745_v26 = vld [vmem:[%s9650_s13 + $0x5ac] ss:$48 sps:$4 sm:$0xff]  }
 0x36d   : > { %6311 = vmatprep.mubr.bf16.mxu0 %v10178_v28  ;;  %6352 = vmatprep.mubr.bf16.mxu1 %v10180_v29  ;;  %v8740_v25 = vld [vmem:[%s9650_s13 + $0xb48] ss:$48 sps:$4 sm:$0xff]   ;;  %v8748_v27 = vld [vmem:[%s9650_s13 + $0xbac] ss:$48 sps:$4 sm:$0xff]  }
 0x36e   : > { %6281 = vmatprep.subr.bf16.mxu0 %v8661_v34  ;;  %6322 = vmatprep.subr.bf16.mxu1 %v8664_v35  ;;  %v8743_v30 = vld [vmem:[%s9650_s13 + $0x5a8] ss:$48 sps:$4 sm:$0xff]   ;;  %v8751_v34 = vld [vmem:[%s9650_s13 + $0x14] ss:$48 sps:$4 sm:$0xff]  }
 0x36f   : > { %v8746_v31 = vld [vmem:[%s9650_s13 + $0xba8] ss:$48 sps:$4 sm:$0xff]   ;;  %v8754_v35 = vld [vmem:[%s9650_s13 + $0x614] ss:$48 sps:$4 sm:$0xff]  }
 0x370   : > { %6282 = vmatpush1.bf16.msra.mxu0 %v8659_v36  ;;  %6323 = vmatpush1.bf16.msra.mxu1 %v8662_v37  ;;  %v8749_v36 = vld [vmem:[%s9650_s13 + $0x10] ss:$48 sps:$4 sm:$0xff]  }
 0x371   : > { %6283 = vmatprep.subr.bf16.mxu0 %v8667_v38  ;;  %6324 = vmatprep.subr.bf16.mxu1 %v8670_v39  ;;  %v8752_v37 = vld [vmem:[%s9650_s13 + $0x610] ss:$48 sps:$4 sm:$0xff]   ;;  %v8757_v38 = vld [vmem:[%s9650_s13 + $0x74] ss:$48 sps:$4 sm:$0xff]  }
 0x372   : > { %v8760_v39 = vld [vmem:[%s9650_s13 + $0x674] ss:$48 sps:$4 sm:$0xff]  }
 0x374   : > { %6284 = vmatpush1.bf16.msra.mxu0 %v8665_v40  ;;  %6325 = vmatpush1.bf16.msra.mxu1 %v8668_v41  ;;  %v8755_v40 = vld [vmem:[%s9650_s13 + $0x70] ss:$48 sps:$4 sm:$0xff]  }
 0x375   : > { %6285 = vmatprep.subr.bf16.mxu0 %v8673_v42  ;;  %6326 = vmatprep.subr.bf16.mxu1 %v8676_v43  ;;  %v8758_v41 = vld [vmem:[%s9650_s13 + $0x670] ss:$48 sps:$4 sm:$0xff]   ;;  %v8763_v42 = vld [vmem:[%s9650_s13 + $0xd4] ss:$48 sps:$4 sm:$0xff]  }
 0x376   : > { %v8766_v43 = vld [vmem:[%s9650_s13 + $0x6d4] ss:$48 sps:$4 sm:$0xff]  }
 0x378   : > { %6286 = vmatpush1.bf16.msra.mxu0 %v8671_v44  ;;  %6327 = vmatpush1.bf16.msra.mxu1 %v8674_v45  ;;  %v8761_v44 = vld [vmem:[%s9650_s13 + $0xd0] ss:$48 sps:$4 sm:$0xff]  }
 0x379   : > { %6287 = vmatprep.subr.bf16.mxu0 %v8679_v46  ;;  %6328 = vmatprep.subr.bf16.mxu1 %v8682_v47  ;;  %v8764_v45 = vld [vmem:[%s9650_s13 + $0x6d0] ss:$48 sps:$4 sm:$0xff]   ;;  %v8769_v46 = vld [vmem:[%s9650_s13 + $0x134] ss:$48 sps:$4 sm:$0xff]  }
 0x37a   : > { %v8772_v47 = vld [vmem:[%s9650_s13 + $0x734] ss:$48 sps:$4 sm:$0xff]  }
 0x37c   : > { %6288 = vmatpush1.bf16.msra.mxu0 %v8677_v48  ;;  %6329 = vmatpush1.bf16.msra.mxu1 %v8680_v49  ;;  %v8767_v48 = vld [vmem:[%s9650_s13 + $0x130] ss:$48 sps:$4 sm:$0xff]  }
 0x37d   : > { %6289 = vmatprep.subr.bf16.mxu0 %v8685_v50  ;;  %6330 = vmatprep.subr.bf16.mxu1 %v8688_v51  ;;  %v8770_v49 = vld [vmem:[%s9650_s13 + $0x730] ss:$48 sps:$4 sm:$0xff]   ;;  %v8775_v50 = vld [vmem:[%s9650_s13 + $0x194] ss:$48 sps:$4 sm:$0xff]  }
 0x37e   : > { %v8778_v51 = vld [vmem:[%s9650_s13 + $0x794] ss:$48 sps:$4 sm:$0xff]  }
 0x380   : > { %6290 = vmatpush1.bf16.msra.mxu0 %v8683_v52  ;;  %6331 = vmatpush1.bf16.msra.mxu1 %v8686_v53  ;;  %v8773_v52 = vld [vmem:[%s9650_s13 + $0x190] ss:$48 sps:$4 sm:$0xff]  }
 0x381   : > { %6291 = vmatprep.subr.bf16.mxu0 %v8691_v54  ;;  %6332 = vmatprep.subr.bf16.mxu1 %v8694_v55  ;;  %v8776_v53 = vld [vmem:[%s9650_s13 + $0x790] ss:$48 sps:$4 sm:$0xff]   ;;  %v8781_v54 = vld [vmem:[%s9650_s13 + $0x1f4] ss:$48 sps:$4 sm:$0xff]  }
 0x382   : > { %v8784_v55 = vld [vmem:[%s9650_s13 + $0x7f4] ss:$48 sps:$4 sm:$0xff]  }
 0x384   : > { %6292 = vmatpush1.bf16.msra.mxu0 %v8689_v56  ;;  %6333 = vmatpush1.bf16.msra.mxu1 %v8692_v57  ;;  %v8779_v56 = vld [vmem:[%s9650_s13 + $0x1f0] ss:$48 sps:$4 sm:$0xff]  }
 0x385   : > { %6293 = vmatprep.subr.bf16.mxu0 %v8697_v58  ;;  %6334 = vmatprep.subr.bf16.mxu1 %v8700_v59  ;;  %v8782_v57 = vld [vmem:[%s9650_s13 + $0x7f0] ss:$48 sps:$4 sm:$0xff]   ;;  %v8787_v58 = vld [vmem:[%s9650_s13 + $0x254] ss:$48 sps:$4 sm:$0xff]  }
 0x386   : > { %v8790_v59 = vld [vmem:[%s9650_s13 + $0x854] ss:$48 sps:$4 sm:$0xff]  }
 0x388   : > { %6294 = vmatpush1.bf16.msra.mxu0 %v8695_v60  ;;  %6335 = vmatpush1.bf16.msra.mxu1 %v8698_v61  ;;  %v8785_v60 = vld [vmem:[%s9650_s13 + $0x250] ss:$48 sps:$4 sm:$0xff]  }
 0x389   : > { %6295 = vmatprep.subr.bf16.mxu0 %v8703_v62  ;;  %6336 = vmatprep.subr.bf16.mxu1 %v8706_v63  ;;  %v8788_v61 = vld [vmem:[%s9650_s13 + $0x850] ss:$48 sps:$4 sm:$0xff]   ;;  %v8793_v62 = vld [vmem:[%s9650_s13 + $0x2b4] ss:$48 sps:$4 sm:$0xff]  }
 0x38a   : > { %v8796_v63 = vld [vmem:[%s9650_s13 + $0x8b4] ss:$48 sps:$4 sm:$0xff]  }
 0x38c   : > { %6296 = vmatpush1.bf16.msra.mxu0 %v8701_v0  ;;  %6337 = vmatpush1.bf16.msra.mxu1 %v8704_v1  ;;  %v8791_v0 = vld [vmem:[%s9650_s13 + $0x2b0] ss:$48 sps:$4 sm:$0xff]  }
 0x38d   : > { %6297 = vmatprep.subr.bf16.mxu0 %v8709_v2  ;;  %6338 = vmatprep.subr.bf16.mxu1 %v8712_v3  ;;  %v8794_v1 = vld [vmem:[%s9650_s13 + $0x8b0] ss:$48 sps:$4 sm:$0xff]   ;;  %v8799_v2 = vld [vmem:[%s9650_s13 + $0x314] ss:$48 sps:$4 sm:$0xff]  }
 0x38e   : > { %v8802_v3 = vld [vmem:[%s9650_s13 + $0x914] ss:$48 sps:$4 sm:$0xff]  }
 0x390   : > { %6298 = vmatpush1.bf16.msra.mxu0 %v8707_v4  ;;  %6339 = vmatpush1.bf16.msra.mxu1 %v8710_v5  ;;  %v8797_v4 = vld [vmem:[%s9650_s13 + $0x310] ss:$48 sps:$4 sm:$0xff]  }
 0x391   : > { %6299 = vmatprep.subr.bf16.mxu0 %v8715_v6  ;;  %6340 = vmatprep.subr.bf16.mxu1 %v8718_v7  ;;  %v8800_v5 = vld [vmem:[%s9650_s13 + $0x910] ss:$48 sps:$4 sm:$0xff]   ;;  %v8805_v6 = vld [vmem:[%s9650_s13 + $0x374] ss:$48 sps:$4 sm:$0xff]  }
 0x392   : > { %v8808_v7 = vld [vmem:[%s9650_s13 + $0x974] ss:$48 sps:$4 sm:$0xff]  }
 0x394   : > { %6300 = vmatpush1.bf16.msra.mxu0 %v8713_v8  ;;  %6341 = vmatpush1.bf16.msra.mxu1 %v8716_v9  ;;  %v8803_v8 = vld [vmem:[%s9650_s13 + $0x370] ss:$48 sps:$4 sm:$0xff]  }
 0x395   : > { %6301 = vmatprep.subr.bf16.mxu0 %v8721_v10  ;;  %6342 = vmatprep.subr.bf16.mxu1 %v8724_v11  ;;  %v8806_v9 = vld [vmem:[%s9650_s13 + $0x970] ss:$48 sps:$4 sm:$0xff]   ;;  %v8811_v10 = vld [vmem:[%s9650_s13 + $0x3d4] ss:$48 sps:$4 sm:$0xff]  }
 0x396   : > { %v8814_v11 = vld [vmem:[%s9650_s13 + $0x9d4] ss:$48 sps:$4 sm:$0xff]  }
 0x398   : > { %6302 = vmatpush1.bf16.msra.mxu0 %v8719_v12  ;;  %6343 = vmatpush1.bf16.msra.mxu1 %v8722_v13  ;;  %v8809_v12 = vld [vmem:[%s9650_s13 + $0x3d0] ss:$48 sps:$4 sm:$0xff]  }
 0x399   : > { %6303 = vmatprep.subr.bf16.mxu0 %v8727_v14  ;;  %6344 = vmatprep.subr.bf16.mxu1 %v8730_v15  ;;  %v8812_v13 = vld [vmem:[%s9650_s13 + $0x9d0] ss:$48 sps:$4 sm:$0xff]   ;;  %v8817_v14 = vld [vmem:[%s9650_s13 + $0x434] ss:$48 sps:$4 sm:$0xff]  }
 0x39a   : > { %v8820_v15 = vld [vmem:[%s9650_s13 + $0xa34] ss:$48 sps:$4 sm:$0xff]  }
 0x39c   : > { %6304 = vmatpush1.bf16.msra.mxu0 %v8725_v16  ;;  %6345 = vmatpush1.bf16.msra.mxu1 %v8728_v17  ;;  %v8815_v16 = vld [vmem:[%s9650_s13 + $0x430] ss:$48 sps:$4 sm:$0xff]  }
 0x39d   : > { %6305 = vmatprep.subr.bf16.mxu0 %v8733_v18  ;;  %6346 = vmatprep.subr.bf16.mxu1 %v8736_v19  ;;  %v8818_v17 = vld [vmem:[%s9650_s13 + $0xa30] ss:$48 sps:$4 sm:$0xff]   ;;  %v8823_v18 = vld [vmem:[%s9650_s13 + $0x494] ss:$48 sps:$4 sm:$0xff]  }
 0x39e   : > { %v8826_v19 = vld [vmem:[%s9650_s13 + $0xa94] ss:$48 sps:$4 sm:$0xff]  }
 0x3a0   : > { %6306 = vmatpush1.bf16.msra.mxu0 %v8731_v20  ;;  %6347 = vmatpush1.bf16.msra.mxu1 %v8734_v21  ;;  %v8821_v20 = vld [vmem:[%s9650_s13 + $0x490] ss:$48 sps:$4 sm:$0xff]  }
 0x3a1   : > { %6307 = vmatprep.subr.bf16.mxu0 %v8739_v22  ;;  %6348 = vmatprep.subr.bf16.mxu1 %v8742_v23  ;;  %v8824_v21 = vld [vmem:[%s9650_s13 + $0xa90] ss:$48 sps:$4 sm:$0xff]   ;;  %v8829_v22 = vld [vmem:[%s9650_s13 + $0x4f4] ss:$48 sps:$4 sm:$0xff]  }
 0x3a2   : > { %v8832_v23 = vld [vmem:[%s9650_s13 + $0xaf4] ss:$48 sps:$4 sm:$0xff]  }
 0x3a4   : > { %6308 = vmatpush1.bf16.msra.mxu0 %v8737_v24  ;;  %6349 = vmatpush1.bf16.msra.mxu1 %v8740_v25  ;;  %v8827_v24 = vld [vmem:[%s9650_s13 + $0x4f0] ss:$48 sps:$4 sm:$0xff]  }
 0x3a5   : > { %6309 = vmatprep.subr.bf16.mxu0 %v8745_v26  ;;  %6350 = vmatprep.subr.bf16.mxu1 %v8748_v27  ;;  %v8830_v25 = vld [vmem:[%s9650_s13 + $0xaf0] ss:$48 sps:$4 sm:$0xff]   ;;  %v8835_v26 = vld [vmem:[%s9650_s13 + $0x554] ss:$48 sps:$4 sm:$0xff]  }
 0x3a6   : > { %v8838_v27 = vld [vmem:[%s9650_s13 + $0xb54] ss:$48 sps:$4 sm:$0xff]  }
 0x3a8   : > { %6310 = vmatpush1.bf16.msra.mxu0 %v8743_v30  ;;  %6351 = vmatpush1.bf16.msra.mxu1 %v8746_v31  ;;  %v8833_v30 = vld [vmem:[%s9650_s13 + $0x550] ss:$48 sps:$4 sm:$0xff]  }
 0x3a9   : > { %6361 = vmatprep.subr.bf16.mxu0 %v8751_v34  ;;  %6402 = vmatprep.subr.bf16.mxu1 %v8754_v35  ;;  %v8836_v31 = vld [vmem:[%s9650_s13 + $0xb50] ss:$48 sps:$4 sm:$0xff]   ;;  %v8841_v34 = vld [vmem:[%s9650_s13 + $0x5b4] ss:$48 sps:$4 sm:$0xff]  }
 0x3aa   : > { %v8844_v35 = vld [vmem:[%s9650_s13 + $0xbb4] ss:$48 sps:$4 sm:$0xff]  }
 0x3ab   : > { %6312 = vmatmul.mubr.bf16.vlgmr.msra.gmra.mrb[8].mxu0 %v10184_v32  ;;  %6353 = vmatmul.mubr.bf16.vlgmr.msra.gmra.mrb[8].mxu1 %v10186_v33 }
 0x3ac   : > { %6362 = vmatpush1.bf16.msra.mxu0 %v8749_v36  ;;  %6393 = vmatprep.mubr.bf16.mxu0 %v10178_v28  ;;  %v8839_v36 = vld [vmem:[%s9650_s13 + $0x5b0] ss:$48 sps:$4 sm:$0xff]  }
 0x3ad   : > { %6403 = vmatpush1.bf16.msra.mxu1 %v8752_v37  ;;  %6434 = vmatprep.mubr.bf16.mxu1 %v10180_v29  ;;  %v8842_v37 = vld [vmem:[%s9650_s13 + $0xbb0] ss:$48 sps:$4 sm:$0xff]  }
 0x3ae   : > { %6363 = vmatprep.subr.bf16.mxu0 %v8757_v38  ;;  %6404 = vmatprep.subr.bf16.mxu1 %v8760_v39  ;;  %v8847_v38 = vld [vmem:[%s9650_s13 + $0x1c] ss:$48 sps:$4 sm:$0xff]  }
 0x3af   : > { %v8850_v39 = vld [vmem:[%s9650_s13 + $0x61c] ss:$48 sps:$4 sm:$0xff]  }
 0x3b0   : > { %6364 = vmatpush1.bf16.msra.mxu0 %v8755_v40  ;;  %v8845_v40 = vld [vmem:[%s9650_s13 + $0x18] ss:$48 sps:$4 sm:$0xff]  }
 0x3b1   : > { %6405 = vmatpush1.bf16.msra.mxu1 %v8758_v41  ;;  %6365 = vmatprep.subr.bf16.mxu0 %v8763_v42  ;;  %v8848_v41 = vld [vmem:[%s9650_s13 + $0x618] ss:$48 sps:$4 sm:$0xff]   ;;  %v8853_v42 = vld [vmem:[%s9650_s13 + $0x7c] ss:$48 sps:$4 sm:$0xff]  }
 0x3b2   : > { %6406 = vmatprep.subr.bf16.mxu1 %v8766_v43  ;;  %v8856_v43 = vld [vmem:[%s9650_s13 + $0x67c] ss:$48 sps:$4 sm:$0xff]  }
 0x3b4   : > { %6366 = vmatpush1.bf16.msra.mxu0 %v8761_v44  ;;  %v8851_v44 = vld [vmem:[%s9650_s13 + $0x78] ss:$48 sps:$4 sm:$0xff]  }
 0x3b5   : > { %6407 = vmatpush1.bf16.msra.mxu1 %v8764_v45  ;;  %6367 = vmatprep.subr.bf16.mxu0 %v8769_v46  ;;  %v8854_v45 = vld [vmem:[%s9650_s13 + $0x678] ss:$48 sps:$4 sm:$0xff]   ;;  %v8859_v46 = vld [vmem:[%s9650_s13 + $0xdc] ss:$48 sps:$4 sm:$0xff]  }
 0x3b6   : > { %6408 = vmatprep.subr.bf16.mxu1 %v8772_v47  ;;  %v8862_v47 = vld [vmem:[%s9650_s13 + $0x6dc] ss:$48 sps:$4 sm:$0xff]  }
 0x3b8   : > { %6368 = vmatpush1.bf16.msra.mxu0 %v8767_v48  ;;  %v8857_v48 = vld [vmem:[%s9650_s13 + $0xd8] ss:$48 sps:$4 sm:$0xff]  }
 0x3b9   : > { %6409 = vmatpush1.bf16.msra.mxu1 %v8770_v49  ;;  %6369 = vmatprep.subr.bf16.mxu0 %v8775_v50  ;;  %v8860_v49 = vld [vmem:[%s9650_s13 + $0x6d8] ss:$48 sps:$4 sm:$0xff]   ;;  %v8865_v50 = vld [vmem:[%s9650_s13 + $0x13c] ss:$48 sps:$4 sm:$0xff]  }
 0x3ba   : > { %6410 = vmatprep.subr.bf16.mxu1 %v8778_v51  ;;  %v8868_v51 = vld [vmem:[%s9650_s13 + $0x73c] ss:$48 sps:$4 sm:$0xff]  }
 0x3bc   : > { %6370 = vmatpush1.bf16.msra.mxu0 %v8773_v52  ;;  %v8863_v52 = vld [vmem:[%s9650_s13 + $0x138] ss:$48 sps:$4 sm:$0xff]  }
 0x3bd   : > { %6411 = vmatpush1.bf16.msra.mxu1 %v8776_v53  ;;  %6371 = vmatprep.subr.bf16.mxu0 %v8781_v54  ;;  %v8866_v53 = vld [vmem:[%s9650_s13 + $0x738] ss:$48 sps:$4 sm:$0xff]   ;;  %v8871_v54 = vld [vmem:[%s9650_s13 + $0x19c] ss:$48 sps:$4 sm:$0xff]  }
 0x3be   : > { %6412 = vmatprep.subr.bf16.mxu1 %v8784_v55  ;;  %v8874_v55 = vld [vmem:[%s9650_s13 + $0x79c] ss:$48 sps:$4 sm:$0xff]  }
 0x3c0   : > { %6372 = vmatpush1.bf16.msra.mxu0 %v8779_v56  ;;  %v8869_v56 = vld [vmem:[%s9650_s13 + $0x198] ss:$48 sps:$4 sm:$0xff]  }
 0x3c1   : > { %6413 = vmatpush1.bf16.msra.mxu1 %v8782_v57  ;;  %6373 = vmatprep.subr.bf16.mxu0 %v8787_v58  ;;  %v8872_v57 = vld [vmem:[%s9650_s13 + $0x798] ss:$48 sps:$4 sm:$0xff]   ;;  %v8877_v58 = vld [vmem:[%s9650_s13 + $0x1fc] ss:$48 sps:$4 sm:$0xff]  }
 0x3c2   : > { %6414 = vmatprep.subr.bf16.mxu1 %v8790_v59  ;;  %v8880_v59 = vld [vmem:[%s9650_s13 + $0x7fc] ss:$48 sps:$4 sm:$0xff]  }
 0x3c4   : > { %6374 = vmatpush1.bf16.msra.mxu0 %v8785_v60  ;;  %v8875_v60 = vld [vmem:[%s9650_s13 + $0x1f8] ss:$48 sps:$4 sm:$0xff]  }
 0x3c5   : > { %6415 = vmatpush1.bf16.msra.mxu1 %v8788_v61  ;;  %6375 = vmatprep.subr.bf16.mxu0 %v8793_v62  ;;  %v8878_v61 = vld [vmem:[%s9650_s13 + $0x7f8] ss:$48 sps:$4 sm:$0xff]   ;;  %v8883_v62 = vld [vmem:[%s9650_s13 + $0x25c] ss:$48 sps:$4 sm:$0xff]  }
 0x3c6   : > { %6416 = vmatprep.subr.bf16.mxu1 %v8796_v63  ;;  %v8886_v63 = vld [vmem:[%s9650_s13 + $0x85c] ss:$48 sps:$4 sm:$0xff]  }
 0x3c8   : > { %6376 = vmatpush1.bf16.msra.mxu0 %v8791_v0  ;;  %v8881_v0 = vld [vmem:[%s9650_s13 + $0x258] ss:$48 sps:$4 sm:$0xff]  }
 0x3c9   : > { %6417 = vmatpush1.bf16.msra.mxu1 %v8794_v1  ;;  %6377 = vmatprep.subr.bf16.mxu0 %v8799_v2  ;;  %v8884_v1 = vld [vmem:[%s9650_s13 + $0x858] ss:$48 sps:$4 sm:$0xff]   ;;  %v8889_v2 = vld [vmem:[%s9650_s13 + $0x2bc] ss:$48 sps:$4 sm:$0xff]  }
 0x3ca   : > { %6418 = vmatprep.subr.bf16.mxu1 %v8802_v3  ;;  %v8892_v3 = vld [vmem:[%s9650_s13 + $0x8bc] ss:$48 sps:$4 sm:$0xff]  }
 0x3cc   : > { %6378 = vmatpush1.bf16.msra.mxu0 %v8797_v4  ;;  %v8887_v4 = vld [vmem:[%s9650_s13 + $0x2b8] ss:$48 sps:$4 sm:$0xff]  }
 0x3cd   : > { %6419 = vmatpush1.bf16.msra.mxu1 %v8800_v5  ;;  %6379 = vmatprep.subr.bf16.mxu0 %v8805_v6  ;;  %v8890_v5 = vld [vmem:[%s9650_s13 + $0x8b8] ss:$48 sps:$4 sm:$0xff]   ;;  %v8895_v6 = vld [vmem:[%s9650_s13 + $0x31c] ss:$48 sps:$4 sm:$0xff]  }
 0x3ce   : > { %6420 = vmatprep.subr.bf16.mxu1 %v8808_v7  ;;  %v8898_v7 = vld [vmem:[%s9650_s13 + $0x91c] ss:$48 sps:$4 sm:$0xff]  }
 0x3d0   : > { %6380 = vmatpush1.bf16.msra.mxu0 %v8803_v8  ;;  %v8893_v8 = vld [vmem:[%s9650_s13 + $0x318] ss:$48 sps:$4 sm:$0xff]  }
 0x3d1   : > { %6421 = vmatpush1.bf16.msra.mxu1 %v8806_v9  ;;  %6381 = vmatprep.subr.bf16.mxu0 %v8811_v10  ;;  %v8896_v9 = vld [vmem:[%s9650_s13 + $0x918] ss:$48 sps:$4 sm:$0xff]   ;;  %v8901_v10 = vld [vmem:[%s9650_s13 + $0x37c] ss:$48 sps:$4 sm:$0xff]  }
 0x3d2   : > { %6422 = vmatprep.subr.bf16.mxu1 %v8814_v11  ;;  %v8904_v11 = vld [vmem:[%s9650_s13 + $0x97c] ss:$48 sps:$4 sm:$0xff]  }
 0x3d4   : > { %6382 = vmatpush1.bf16.msra.mxu0 %v8809_v12  ;;  %v8899_v12 = vld [vmem:[%s9650_s13 + $0x378] ss:$48 sps:$4 sm:$0xff]  }
 0x3d5   : > { %6423 = vmatpush1.bf16.msra.mxu1 %v8812_v13  ;;  %6383 = vmatprep.subr.bf16.mxu0 %v8817_v14  ;;  %v8902_v13 = vld [vmem:[%s9650_s13 + $0x978] ss:$48 sps:$4 sm:$0xff]   ;;  %v8907_v14 = vld [vmem:[%s9650_s13 + $0x3dc] ss:$48 sps:$4 sm:$0xff]  }
 0x3d6   : > { %6424 = vmatprep.subr.bf16.mxu1 %v8820_v15  ;;  %v8910_v15 = vld [vmem:[%s9650_s13 + $0x9dc] ss:$48 sps:$4 sm:$0xff]  }
 0x3d8   : > { %6384 = vmatpush1.bf16.msra.mxu0 %v8815_v16  ;;  %v8905_v16 = vld [vmem:[%s9650_s13 + $0x3d8] ss:$48 sps:$4 sm:$0xff]  }
 0x3d9   : > { %6425 = vmatpush1.bf16.msra.mxu1 %v8818_v17  ;;  %6385 = vmatprep.subr.bf16.mxu0 %v8823_v18  ;;  %v8908_v17 = vld [vmem:[%s9650_s13 + $0x9d8] ss:$48 sps:$4 sm:$0xff]   ;;  %v8913_v18 = vld [vmem:[%s9650_s13 + $0x43c] ss:$48 sps:$4 sm:$0xff]  }
 0x3da   : > { %6426 = vmatprep.subr.bf16.mxu1 %v8826_v19  ;;  %v8916_v19 = vld [vmem:[%s9650_s13 + $0xa3c] ss:$48 sps:$4 sm:$0xff]  }
 0x3dc   : > { %6386 = vmatpush1.bf16.msra.mxu0 %v8821_v20  ;;  %v8911_v20 = vld [vmem:[%s9650_s13 + $0x438] ss:$48 sps:$4 sm:$0xff]  }
 0x3dd   : > { %6427 = vmatpush1.bf16.msra.mxu1 %v8824_v21  ;;  %6387 = vmatprep.subr.bf16.mxu0 %v8829_v22  ;;  %v8914_v21 = vld [vmem:[%s9650_s13 + $0xa38] ss:$48 sps:$4 sm:$0xff]   ;;  %v8919_v22 = vld [vmem:[%s9650_s13 + $0x49c] ss:$48 sps:$4 sm:$0xff]  }
 0x3de   : > { %6428 = vmatprep.subr.bf16.mxu1 %v8832_v23  ;;  %v8922_v23 = vld [vmem:[%s9650_s13 + $0xa9c] ss:$48 sps:$4 sm:$0xff]  }
 0x3e0   : > { %6388 = vmatpush1.bf16.msra.mxu0 %v8827_v24  ;;  %v8917_v24 = vld [vmem:[%s9650_s13 + $0x498] ss:$48 sps:$4 sm:$0xff]  }
 0x3e1   : > { %6429 = vmatpush1.bf16.msra.mxu1 %v8830_v25  ;;  %6389 = vmatprep.subr.bf16.mxu0 %v8835_v26  ;;  %v8920_v25 = vld [vmem:[%s9650_s13 + $0xa98] ss:$48 sps:$4 sm:$0xff]   ;;  %v8925_v26 = vld [vmem:[%s9650_s13 + $0x4fc] ss:$48 sps:$4 sm:$0xff]  }
 0x3e2   : > { %6430 = vmatprep.subr.bf16.mxu1 %v8838_v27  ;;  %v8928_v27 = vld [vmem:[%s9650_s13 + $0xafc] ss:$48 sps:$4 sm:$0xff]  }
 0x3e4   : > { %6390 = vmatpush1.bf16.msra.mxu0 %v8833_v30  ;;  %v8923_v30 = vld [vmem:[%s9650_s13 + $0x4f8] ss:$48 sps:$4 sm:$0xff]  }
 0x3e5   : > { %6431 = vmatpush1.bf16.msra.mxu1 %v8836_v31  ;;  %6391 = vmatprep.subr.bf16.mxu0 %v8841_v34  ;;  %v8926_v31 = vld [vmem:[%s9650_s13 + $0xaf8] ss:$48 sps:$4 sm:$0xff]   ;;  %v8931_v34 = vld [vmem:[%s9650_s13 + $0x55c] ss:$48 sps:$4 sm:$0xff]  }
 0x3e6   : > { %6432 = vmatprep.subr.bf16.mxu1 %v8844_v35  ;;  %v8934_v35 = vld [vmem:[%s9650_s13 + $0xb5c] ss:$48 sps:$4 sm:$0xff]  }
 0x3e8   : > { %6392 = vmatpush1.bf16.msra.mxu0 %v8839_v36  ;;  %v8929_v36 = vld [vmem:[%s9650_s13 + $0x558] ss:$48 sps:$4 sm:$0xff]  }
 0x3e9   : > { %6433 = vmatpush1.bf16.msra.mxu1 %v8842_v37  ;;  %6443 = vmatprep.subr.bf16.mxu0 %v8847_v38  ;;  %v8932_v37 = vld [vmem:[%s9650_s13 + $0xb58] ss:$48 sps:$4 sm:$0xff]   ;;  %v8937_v38 = vld [vmem:[%s9650_s13 + $0x5bc] ss:$48 sps:$4 sm:$0xff]  }
 0x3ea   : > { %6484 = vmatprep.subr.bf16.mxu1 %v8850_v39  ;;  %v8940_v39 = vld [vmem:[%s9650_s13 + $0xbbc] ss:$48 sps:$4 sm:$0xff]  }
 0x3eb   : > { %6394 = vmatmul.mubr.bf16.vlgmr.msra.gmra.mrb[12].mxu0 %v10184_v32 }
 0x3ec   : > { %6435 = vmatmul.mubr.bf16.vlgmr.msra.gmra.mrb[12].mxu1 %v10186_v33  ;;  %6444 = vmatpush1.bf16.msra.mxu0 %v8845_v40  ;;  %v8935_v40 = vld [vmem:[%s9650_s13 + $0x5b8] ss:$48 sps:$4 sm:$0xff]  }
 0x3ed   : > { %6475 = vmatprep.mubr.bf16.mxu0 %v10178_v28  ;;  %6485 = vmatpush1.bf16.msra.mxu1 %v8848_v41  ;;  %v8938_v41 = vld [vmem:[%s9650_s13 + $0xbb8] ss:$48 sps:$4 sm:$0xff]  }
 0x3ee   : > { %6516 = vmatprep.mubr.bf16.mxu1 %v10180_v29  ;;  %6445 = vmatprep.subr.bf16.mxu0 %v8853_v42  ;;  %v8943_v42 = vld [vmem:[%s9650_s13 + $0x24] ss:$48 sps:$4 sm:$0xff]  }
 0x3ef   : > { %6486 = vmatprep.subr.bf16.mxu1 %v8856_v43  ;;  %v8946_v43 = vld [vmem:[%s9650_s13 + $0x624] ss:$48 sps:$4 sm:$0xff]  }
 0x3f0   : > { %6446 = vmatpush1.bf16.msra.mxu0 %v8851_v44  ;;  %v8941_v44 = vld [vmem:[%s9650_s13 + $0x20] ss:$48 sps:$4 sm:$0xff]  }
 0x3f1   : > { %6487 = vmatpush1.bf16.msra.mxu1 %v8854_v45  ;;  %6447 = vmatprep.subr.bf16.mxu0 %v8859_v46  ;;  %v8944_v45 = vld [vmem:[%s9650_s13 + $0x620] ss:$48 sps:$4 sm:$0xff]   ;;  %v8949_v46 = vld [vmem:[%s9650_s13 + $0x84] ss:$48 sps:$4 sm:$0xff]  }
 0x3f2   : > { %6488 = vmatprep.subr.bf16.mxu1 %v8862_v47  ;;  %v8952_v47 = vld [vmem:[%s9650_s13 + $0x684] ss:$48 sps:$4 sm:$0xff]  }
 0x3f4   : > { %6448 = vmatpush1.bf16.msra.mxu0 %v8857_v48  ;;  %v8947_v48 = vld [vmem:[%s9650_s13 + $0x80] ss:$48 sps:$4 sm:$0xff]  }
 0x3f5   : > { %6489 = vmatpush1.bf16.msra.mxu1 %v8860_v49  ;;  %6449 = vmatprep.subr.bf16.mxu0 %v8865_v50  ;;  %v8950_v49 = vld [vmem:[%s9650_s13 + $0x680] ss:$48 sps:$4 sm:$0xff]   ;;  %v8955_v50 = vld [vmem:[%s9650_s13 + $0xe4] ss:$48 sps:$4 sm:$0xff]  }
 0x3f6   : > { %6490 = vmatprep.subr.bf16.mxu1 %v8868_v51  ;;  %v8958_v51 = vld [vmem:[%s9650_s13 + $0x6e4] ss:$48 sps:$4 sm:$0xff]  }
 0x3f8   : > { %6450 = vmatpush1.bf16.msra.mxu0 %v8863_v52  ;;  %v8953_v52 = vld [vmem:[%s9650_s13 + $0xe0] ss:$48 sps:$4 sm:$0xff]  }
 0x3f9   : > { %6491 = vmatpush1.bf16.msra.mxu1 %v8866_v53  ;;  %6451 = vmatprep.subr.bf16.mxu0 %v8871_v54  ;;  %v8956_v53 = vld [vmem:[%s9650_s13 + $0x6e0] ss:$48 sps:$4 sm:$0xff]   ;;  %v8961_v54 = vld [vmem:[%s9650_s13 + $0x144] ss:$48 sps:$4 sm:$0xff]  }
 0x3fa   : > { %6492 = vmatprep.subr.bf16.mxu1 %v8874_v55  ;;  %v8964_v55 = vld [vmem:[%s9650_s13 + $0x744] ss:$48 sps:$4 sm:$0xff]  }
 0x3fc   : > { %6452 = vmatpush1.bf16.msra.mxu0 %v8869_v56  ;;  %v8959_v56 = vld [vmem:[%s9650_s13 + $0x140] ss:$48 sps:$4 sm:$0xff]  }
 0x3fd   : > { %6493 = vmatpush1.bf16.msra.mxu1 %v8872_v57  ;;  %6453 = vmatprep.subr.bf16.mxu0 %v8877_v58  ;;  %v8962_v57 = vld [vmem:[%s9650_s13 + $0x740] ss:$48 sps:$4 sm:$0xff]   ;;  %v8967_v58 = vld [vmem:[%s9650_s13 + $0x1a4] ss:$48 sps:$4 sm:$0xff]  }
 0x3fe   : > { %6494 = vmatprep.subr.bf16.mxu1 %v8880_v59  ;;  %v8970_v59 = vld [vmem:[%s9650_s13 + $0x7a4] ss:$48 sps:$4 sm:$0xff]  }
 0x400   : > { %6454 = vmatpush1.bf16.msra.mxu0 %v8875_v60  ;;  %v8965_v60 = vld [vmem:[%s9650_s13 + $0x1a0] ss:$48 sps:$4 sm:$0xff]  }
 0x401   : > { %6495 = vmatpush1.bf16.msra.mxu1 %v8878_v61  ;;  %6455 = vmatprep.subr.bf16.mxu0 %v8883_v62  ;;  %v8968_v61 = vld [vmem:[%s9650_s13 + $0x7a0] ss:$48 sps:$4 sm:$0xff]   ;;  %v8973_v62 = vld [vmem:[%s9650_s13 + $0x204] ss:$48 sps:$4 sm:$0xff]  }
 0x402   : > { %6496 = vmatprep.subr.bf16.mxu1 %v8886_v63  ;;  %v8976_v63 = vld [vmem:[%s9650_s13 + $0x804] ss:$48 sps:$4 sm:$0xff]  }
 0x404   : > { %6456 = vmatpush1.bf16.msra.mxu0 %v8881_v0  ;;  %v8971_v0 = vld [vmem:[%s9650_s13 + $0x200] ss:$48 sps:$4 sm:$0xff]  }
 0x405   : > { %6497 = vmatpush1.bf16.msra.mxu1 %v8884_v1  ;;  %6457 = vmatprep.subr.bf16.mxu0 %v8889_v2  ;;  %v8974_v1 = vld [vmem:[%s9650_s13 + $0x800] ss:$48 sps:$4 sm:$0xff]   ;;  %v8979_v2 = vld [vmem:[%s9650_s13 + $0x264] ss:$48 sps:$4 sm:$0xff]  }
 0x406   : > { %6498 = vmatprep.subr.bf16.mxu1 %v8892_v3 }
 0x408   : > { %6458 = vmatpush1.bf16.msra.mxu0 %v8887_v4  ;;  %v3877_v4 = vld [vmem:[#allocation11] sm:$0xff] }
 0x409   : > { %6499 = vmatpush1.bf16.msra.mxu1 %v8890_v5  ;;  %6459 = vmatprep.subr.bf16.mxu0 %v8895_v6  ;;  %v8982_v6 = vld [vmem:[%s9650_s13 + $0x864] ss:$48 sps:$4 sm:$0xff]  }
 0x40a   : > { %6500 = vmatprep.subr.bf16.mxu1 %v8898_v7 }
 0x40c   : > { %6460 = vmatpush1.bf16.msra.mxu0 %v8893_v8 }
 0x40d   : > { %6501 = vmatpush1.bf16.msra.mxu1 %v8896_v9  ;;  %6461 = vmatprep.subr.bf16.mxu0 %v8901_v10  ;;  %v3878_v9 = vld [vmem:[#allocation11 + $0x8] sm:$0xff] }
 0x40e   : > { %6502 = vmatprep.subr.bf16.mxu1 %v8904_v11 }
 0x410   : > { %6462 = vmatpush1.bf16.msra.mxu0 %v8899_v12 }
 0x411   : > { %6503 = vmatpush1.bf16.msra.mxu1 %v8902_v13  ;;  %6463 = vmatprep.subr.bf16.mxu0 %v8907_v14  ;;  %v8977_v14 = vld [vmem:[%s9650_s13 + $0x260] ss:$48 sps:$4 sm:$0xff]  }
 0x412   : > { %6504 = vmatprep.subr.bf16.mxu1 %v8910_v15 }
 0x414   : > { %6464 = vmatpush1.bf16.msra.mxu0 %v8905_v16 }
 0x415   : > { %6505 = vmatpush1.bf16.msra.mxu1 %v8908_v17  ;;  %6465 = vmatprep.subr.bf16.mxu0 %v8913_v18  ;;  %v8980_v18 = vld [vmem:[%s9650_s13 + $0x860] ss:$48 sps:$4 sm:$0xff]  }
 0x416   : > { %6506 = vmatprep.subr.bf16.mxu1 %v8916_v19  ;;  %v8985_v19 = vld [vmem:[%s9650_s13 + $0x2c4] ss:$48 sps:$4 sm:$0xff]  }
 0x418   : > { %6466 = vmatpush1.bf16.msra.mxu0 %v8911_v20 }
 0x419   : > { %6507 = vmatpush1.bf16.msra.mxu1 %v8914_v21  ;;  %6467 = vmatprep.subr.bf16.mxu0 %v8919_v22  ;;  %v8988_v21 = vld [vmem:[%s9650_s13 + $0x8c4] ss:$48 sps:$4 sm:$0xff]   ;;  %v8983_v22 = vld [vmem:[%s9650_s13 + $0x2c0] ss:$48 sps:$4 sm:$0xff]  }
 0x41a   : > { %6508 = vmatprep.subr.bf16.mxu1 %v8922_v23  ;;  %v8986_v23 = vld [vmem:[%s9650_s13 + $0x8c0] ss:$48 sps:$4 sm:$0xff]  }
 0x41c   : > { %6468 = vmatpush1.bf16.msra.mxu0 %v8917_v24  ;;  %v8991_v24 = vld [vmem:[%s9650_s13 + $0x324] ss:$48 sps:$4 sm:$0xff]  }
 0x41d   : > { %6509 = vmatpush1.bf16.msra.mxu1 %v8920_v25  ;;  %6469 = vmatprep.subr.bf16.mxu0 %v8925_v26  ;;  %v8994_v25 = vld [vmem:[%s9650_s13 + $0x924] ss:$48 sps:$4 sm:$0xff]   ;;  %v8989_v26 = vld [vmem:[%s9650_s13 + $0x320] ss:$48 sps:$4 sm:$0xff]  }
 0x41e   : > { %6510 = vmatprep.subr.bf16.mxu1 %v8928_v27  ;;  %v8992_v27 = vld [vmem:[%s9650_s13 + $0x920] ss:$48 sps:$4 sm:$0xff]  }
 0x420   : > { %6470 = vmatpush1.bf16.msra.mxu0 %v8923_v30  ;;  %v8997_v30 = vld [vmem:[%s9650_s13 + $0x384] ss:$48 sps:$4 sm:$0xff]  }
 0x421   : > { %6511 = vmatpush1.bf16.msra.mxu1 %v8926_v31  ;;  %6471 = vmatprep.subr.bf16.mxu0 %v8931_v34  ;;  %v9000_v31 = vld [vmem:[%s9650_s13 + $0x984] ss:$48 sps:$4 sm:$0xff]   ;;  %v8995_v34 = vld [vmem:[%s9650_s13 + $0x380] ss:$48 sps:$4 sm:$0xff]  }
 0x422   : > { %6512 = vmatprep.subr.bf16.mxu1 %v8934_v35  ;;  %v8998_v35 = vld [vmem:[%s9650_s13 + $0x980] ss:$48 sps:$4 sm:$0xff]  }
 0x424   : > { %6472 = vmatpush1.bf16.msra.mxu0 %v8929_v36  ;;  %v9003_v36 = vld [vmem:[%s9650_s13 + $0x3e4] ss:$48 sps:$4 sm:$0xff]  }
 0x425   : > { %6513 = vmatpush1.bf16.msra.mxu1 %v8932_v37  ;;  %6473 = vmatprep.subr.bf16.mxu0 %v8937_v38  ;;  %v9006_v37 = vld [vmem:[%s9650_s13 + $0x9e4] ss:$48 sps:$4 sm:$0xff]   ;;  %v9001_v38 = vld [vmem:[%s9650_s13 + $0x3e0] ss:$48 sps:$4 sm:$0xff]  }
 0x426   : > { %6514 = vmatprep.subr.bf16.mxu1 %v8940_v39  ;;  %v9004_v39 = vld [vmem:[%s9650_s13 + $0x9e0] ss:$48 sps:$4 sm:$0xff]  }
 0x428   : > { %6474 = vmatpush1.bf16.msra.mxu0 %v8935_v40  ;;  %v9009_v40 = vld [vmem:[%s9650_s13 + $0x444] ss:$48 sps:$4 sm:$0xff]  }
 0x429   : > { %6515 = vmatpush1.bf16.msra.mxu1 %v8938_v41  ;;  %6525 = vmatprep.subr.bf16.mxu0 %v8943_v42  ;;  %v9012_v41 = vld [vmem:[%s9650_s13 + $0xa44] ss:$48 sps:$4 sm:$0xff]   ;;  %v9007_v42 = vld [vmem:[%s9650_s13 + $0x440] ss:$48 sps:$4 sm:$0xff]  }
 0x42a   : > { %6566 = vmatprep.subr.bf16.mxu1 %v8946_v43  ;;  %v9010_v43 = vld [vmem:[%s9650_s13 + $0xa40] ss:$48 sps:$4 sm:$0xff]  }
 0x42b   : > { %6476 = vmatmul.mubr.bf16.vlgmr.msra.gmra.mrb[16].mxu0 %v10184_v32 }
 0x42c   : > { %6517 = vmatmul.mubr.bf16.vlgmr.msra.gmra.mrb[16].mxu1 %v10186_v33  ;;  %6526 = vmatpush1.bf16.msra.mxu0 %v8941_v44  ;;  %v9015_v44 = vld [vmem:[%s9650_s13 + $0x4a4] ss:$48 sps:$4 sm:$0xff]  }
 0x42d   : > { %6557 = vmatprep.mubr.bf16.mxu0 %v10178_v28  ;;  %6567 = vmatpush1.bf16.msra.mxu1 %v8944_v45  ;;  %v9018_v45 = vld [vmem:[%s9650_s13 + $0xaa4] ss:$48 sps:$4 sm:$0xff]  }
 0x42e   : > { %6598 = vmatprep.mubr.bf16.mxu1 %v10180_v29  ;;  %6527 = vmatprep.subr.bf16.mxu0 %v8949_v46  ;;  %v9013_v46 = vld [vmem:[%s9650_s13 + $0x4a0] ss:$48 sps:$4 sm:$0xff]  }
 0x42f   : > { %6568 = vmatprep.subr.bf16.mxu1 %v8952_v47  ;;  %v9016_v47 = vld [vmem:[%s9650_s13 + $0xaa0] ss:$48 sps:$4 sm:$0xff]  }
 0x430   : > { %6528 = vmatpush1.bf16.msra.mxu0 %v8947_v48  ;;  %v9021_v48 = vld [vmem:[%s9650_s13 + $0x504] ss:$48 sps:$4 sm:$0xff]  }
 0x431   : > { %6569 = vmatpush1.bf16.msra.mxu1 %v8950_v49  ;;  %6529 = vmatprep.subr.bf16.mxu0 %v8955_v50  ;;  %v9024_v49 = vld [vmem:[%s9650_s13 + $0xb04] ss:$48 sps:$4 sm:$0xff]   ;;  %v9019_v50 = vld [vmem:[%s9650_s13 + $0x500] ss:$48 sps:$4 sm:$0xff]  }
 0x432   : > { %6570 = vmatprep.subr.bf16.mxu1 %v8958_v51  ;;  %v9022_v51 = vld [vmem:[%s9650_s13 + $0xb00] ss:$48 sps:$4 sm:$0xff]  }
 0x434   : > { %6530 = vmatpush1.bf16.msra.mxu0 %v8953_v52  ;;  %v9027_v52 = vld [vmem:[%s9650_s13 + $0x564] ss:$48 sps:$4 sm:$0xff]  }
 0x435   : > { %6571 = vmatpush1.bf16.msra.mxu1 %v8956_v53  ;;  %6531 = vmatprep.subr.bf16.mxu0 %v8961_v54  ;;  %v9030_v53 = vld [vmem:[%s9650_s13 + $0xb64] ss:$48 sps:$4 sm:$0xff]   ;;  %v9025_v54 = vld [vmem:[%s9650_s13 + $0x560] ss:$48 sps:$4 sm:$0xff]  }
 0x436   : > { %6572 = vmatprep.subr.bf16.mxu1 %v8964_v55  ;;  %v9028_v55 = vld [vmem:[%s9650_s13 + $0xb60] ss:$48 sps:$4 sm:$0xff]  }
 0x438   : > { %6532 = vmatpush1.bf16.msra.mxu0 %v8959_v56  ;;  %v9033_v56 = vld [vmem:[%s9650_s13 + $0x5c4] ss:$48 sps:$4 sm:$0xff]  }
 0x439   : > { %6573 = vmatpush1.bf16.msra.mxu1 %v8962_v57  ;;  %6533 = vmatprep.subr.bf16.mxu0 %v8967_v58  ;;  %v9036_v57 = vld [vmem:[%s9650_s13 + $0xbc4] ss:$48 sps:$4 sm:$0xff]   ;;  %v9031_v58 = vld [vmem:[%s9650_s13 + $0x5c0] ss:$48 sps:$4 sm:$0xff]  }
 0x43a   : > { %6574 = vmatprep.subr.bf16.mxu1 %v8970_v59  ;;  %v9034_v59 = vld [vmem:[%s9650_s13 + $0xbc0] ss:$48 sps:$4 sm:$0xff]  }
 0x43c   : > { %6534 = vmatpush1.bf16.msra.mxu0 %v8965_v60  ;;  %v9039_v60 = vld [vmem:[%s9650_s13 + $0x2c] ss:$48 sps:$4 sm:$0xff]  }
 0x43d   : > { %6575 = vmatpush1.bf16.msra.mxu1 %v8968_v61  ;;  %6535 = vmatprep.subr.bf16.mxu0 %v8973_v62  ;;  %v9042_v61 = vld [vmem:[%s9650_s13 + $0x62c] ss:$48 sps:$4 sm:$0xff]   ;;  %v9037_v62 = vld [vmem:[%s9650_s13 + $0x28] ss:$48 sps:$4 sm:$0xff]  }
 0x43e   : > { %v6231_v3 = vpop.f32.mrb[4].mxu0  ;;  %v6272_v5 = vpop.f32.mrb[4].mxu1  ;;  %6576 = vmatprep.subr.bf16.mxu1 %v8976_v63  ;;  %v9040_v63 = vld [vmem:[%s9650_s13 + $0x628] ss:$48 sps:$4 sm:$0xff]  }
 0x43f   : > { %v6273_v7 = vadd.f32 %v6272_v5, %v6231_v3  ;;  %v6233_v8 = vpop.f32.mrb[5].mxu0  ;;  %v6274_v10 = vpop.f32.mrb[5].mxu1  ;;  %v9046_v3 = vld [vmem:[%s9650_s13 + $0x688] ss:$48 sps:$4 sm:$0xff]   ;;  %v9054_v5 = vld [vmem:[%s9650_s13 + $0x6ec] ss:$48 sps:$4 sm:$0xff]  }
 0x440   : > { %v6275_v11 = vadd.f32 %v6274_v10, %v6233_v8  ;;  %6536 = vmatpush1.bf16.msra.mxu0 %v8971_v0  ;;  %v6235_v12 = vpop.f32.mrb[6].mxu0  ;;  %v6276_v13 = vpop.f32.mrb[6].mxu1  ;;  %v9045_v0 = vld [vmem:[%s9650_s13 + $0x8c] ss:$48 sps:$4 sm:$0xff]  }
 0x441   : > { %v6689_v15 = vadd.f32 %v6273_v7, %v3877_v4  ;;  %6577 = vmatpush1.bf16.msra.mxu1 %v8974_v1  ;;  %v6236_v16 = vpop.f32.mrb[7].mxu0  ;;  %v6277_v17 = vpop.f32.mrb[7].mxu1  ;;  %6537 = vmatprep.subr.bf16.mxu0 %v8979_v2  ;;  %v9048_v1 = vld [vmem:[%s9650_s13 + $0x68c] ss:$48 sps:$4 sm:$0xff]   ;;  %v9043_v2 = vld [vmem:[%s9650_s13 + $0x88] ss:$48 sps:$4 sm:$0xff]  }
 0x442   : > { %v6690_v20 = vadd.f32 %v6275_v11, %v3878_v9  ;;  %6578 = vmatprep.subr.bf16.mxu1 %v8982_v6  ;;  %v9051_v4 = vld [vmem:[%s9650_s13 + $0xec] ss:$48 sps:$4 sm:$0xff]   ;;  %v9049_v6 = vld [vmem:[%s9650_s13 + $0xe8] ss:$48 sps:$4 sm:$0xff]  }
 0x443   : > { %6701 = vst [vmem:[#allocation11] sm:$0xff] %v6689_v15  ;;  %v9052_v7 = vld [vmem:[%s9650_s13 + $0x6e8] ss:$48 sps:$4 sm:$0xff]   ;;  %v9060_v8 = vld [vmem:[%s9650_s13 + $0x74c] ss:$48 sps:$4 sm:$0xff]  }
 0x444   : > { %6702 = vst [vmem:[#allocation11 + $0x8] sm:$0xff] %v6690_v20  ;;  %6538 = vmatpush1.bf16.msra.mxu0 %v8977_v14  ;;  %v9058_v9 = vld [vmem:[%s9650_s13 + $0x748] ss:$48 sps:$4 sm:$0xff]   ;;  %v9063_v10 = vld [vmem:[%s9650_s13 + $0x1ac] ss:$48 sps:$4 sm:$0xff]  }
 0x445   : > { %6579 = vmatpush1.bf16.msra.mxu1 %v8980_v18  ;;  %6539 = vmatprep.subr.bf16.mxu0 %v8985_v19  ;;  %v9066_v11 = vld [vmem:[%s9650_s13 + $0x7ac] ss:$48 sps:$4 sm:$0xff]   ;;  %v9061_v12 = vld [vmem:[%s9650_s13 + $0x1a8] ss:$48 sps:$4 sm:$0xff]  }
 0x446   : > { %6580 = vmatprep.subr.bf16.mxu1 %v8988_v21  ;;  %v9064_v13 = vld [vmem:[%s9650_s13 + $0x7a8] ss:$48 sps:$4 sm:$0xff]   ;;  %v9069_v14 = vld [vmem:[%s9650_s13 + $0x20c] ss:$48 sps:$4 sm:$0xff]  }
 0x447   : > { %v9072_v15 = vld [vmem:[%s9650_s13 + $0x80c] ss:$48 sps:$4 sm:$0xff]   ;;  %v9067_v16 = vld [vmem:[%s9650_s13 + $0x208] ss:$48 sps:$4 sm:$0xff]  }
 0x448   : > { %6540 = vmatpush1.bf16.msra.mxu0 %v8983_v22  ;;  %v9070_v17 = vld [vmem:[%s9650_s13 + $0x808] ss:$48 sps:$4 sm:$0xff]   ;;  %v9075_v18 = vld [vmem:[%s9650_s13 + $0x26c] ss:$48 sps:$4 sm:$0xff]  }
 0x449   : > { %6581 = vmatpush1.bf16.msra.mxu1 %v8986_v23  ;;  %6541 = vmatprep.subr.bf16.mxu0 %v8991_v24  ;;  %v3879_v20 = vld [vmem:[#allocation11 + $0x10] sm:$0xff] }
 0x44a   : > { %6582 = vmatprep.subr.bf16.mxu1 %v8994_v25  ;;  %v9078_v22 = vld [vmem:[%s9650_s13 + $0x86c] ss:$48 sps:$4 sm:$0xff]   ;;  %v3880_v25 = vld [vmem:[#allocation11 + $0x18] sm:$0xff] }
 0x44c   : > { %6542 = vmatpush1.bf16.msra.mxu0 %v8989_v26 }
 0x44d   : > { %6583 = vmatpush1.bf16.msra.mxu1 %v8992_v27  ;;  %6543 = vmatprep.subr.bf16.mxu0 %v8997_v30 }
 0x44e   : > { %6584 = vmatprep.subr.bf16.mxu1 %v9000_v31 }
 0x450   : > { %6544 = vmatpush1.bf16.msra.mxu0 %v8995_v34  ;;  %v9073_v34 = vld [vmem:[%s9650_s13 + $0x268] ss:$48 sps:$4 sm:$0xff]  }
 0x451   : > { %6585 = vmatpush1.bf16.msra.mxu1 %v8998_v35  ;;  %6545 = vmatprep.subr.bf16.mxu0 %v9003_v36 }
 0x452   : > { %6586 = vmatprep.subr.bf16.mxu1 %v9006_v37 }
 0x454   : > { %6546 = vmatpush1.bf16.msra.mxu0 %v9001_v38  ;;  %v9076_v38 = vld [vmem:[%s9650_s13 + $0x868] ss:$48 sps:$4 sm:$0xff]  }
 0x455   : > { %6587 = vmatpush1.bf16.msra.mxu1 %v9004_v39  ;;  %6547 = vmatprep.subr.bf16.mxu0 %v9009_v40  ;;  %v9081_v39 = vld [vmem:[%s9650_s13 + $0x2cc] ss:$48 sps:$4 sm:$0xff]  }
 0x456   : > { %6588 = vmatprep.subr.bf16.mxu1 %v9012_v41  ;;  %v9084_v41 = vld [vmem:[%s9650_s13 + $0x8cc] ss:$48 sps:$4 sm:$0xff]  }
 0x458   : > { %6548 = vmatpush1.bf16.msra.mxu0 %v9007_v42  ;;  %v9079_v42 = vld [vmem:[%s9650_s13 + $0x2c8] ss:$48 sps:$4 sm:$0xff]  }
 0x459   : > { %6589 = vmatpush1.bf16.msra.mxu1 %v9010_v43  ;;  %6549 = vmatprep.subr.bf16.mxu0 %v9015_v44  ;;  %v9082_v43 = vld [vmem:[%s9650_s13 + $0x8c8] ss:$48 sps:$4 sm:$0xff]   ;;  %v9087_v44 = vld [vmem:[%s9650_s13 + $0x32c] ss:$48 sps:$4 sm:$0xff]  }
 0x45a   : > { %6590 = vmatprep.subr.bf16.mxu1 %v9018_v45  ;;  %v9090_v45 = vld [vmem:[%s9650_s13 + $0x92c] ss:$48 sps:$4 sm:$0xff]  }
 0x45c   : > { %6550 = vmatpush1.bf16.msra.mxu0 %v9013_v46  ;;  %v9085_v46 = vld [vmem:[%s9650_s13 + $0x328] ss:$48 sps:$4 sm:$0xff]  }
 0x45d   : > { %6591 = vmatpush1.bf16.msra.mxu1 %v9016_v47  ;;  %6551 = vmatprep.subr.bf16.mxu0 %v9021_v48  ;;  %v9088_v47 = vld [vmem:[%s9650_s13 + $0x928] ss:$48 sps:$4 sm:$0xff]   ;;  %v9093_v48 = vld [vmem:[%s9650_s13 + $0x38c] ss:$48 sps:$4 sm:$0xff]  }
 0x45e   : > { %6592 = vmatprep.subr.bf16.mxu1 %v9024_v49  ;;  %v9096_v49 = vld [vmem:[%s9650_s13 + $0x98c] ss:$48 sps:$4 sm:$0xff]  }
 0x460   : > { %6552 = vmatpush1.bf16.msra.mxu0 %v9019_v50  ;;  %v9091_v50 = vld [vmem:[%s9650_s13 + $0x388] ss:$48 sps:$4 sm:$0xff]  }
 0x461   : > { %6593 = vmatpush1.bf16.msra.mxu1 %v9022_v51  ;;  %6553 = vmatprep.subr.bf16.mxu0 %v9027_v52  ;;  %v9094_v51 = vld [vmem:[%s9650_s13 + $0x988] ss:$48 sps:$4 sm:$0xff]   ;;  %v9099_v52 = vld [vmem:[%s9650_s13 + $0x3ec] ss:$48 sps:$4 sm:$0xff]  }
 0x462   : > { %6594 = vmatprep.subr.bf16.mxu1 %v9030_v53  ;;  %v9102_v53 = vld [vmem:[%s9650_s13 + $0x9ec] ss:$48 sps:$4 sm:$0xff]  }
 0x464   : > { %6554 = vmatpush1.bf16.msra.mxu0 %v9025_v54  ;;  %v9097_v54 = vld [vmem:[%s9650_s13 + $0x3e8] ss:$48 sps:$4 sm:$0xff]  }
 0x465   : > { %6595 = vmatpush1.bf16.msra.mxu1 %v9028_v55  ;;  %6555 = vmatprep.subr.bf16.mxu0 %v9033_v56  ;;  %v9100_v55 = vld [vmem:[%s9650_s13 + $0x9e8] ss:$48 sps:$4 sm:$0xff]   ;;  %v9105_v56 = vld [vmem:[%s9650_s13 + $0x44c] ss:$48 sps:$4 sm:$0xff]  }
 0x466   : > { %6596 = vmatprep.subr.bf16.mxu1 %v9036_v57  ;;  %v9108_v57 = vld [vmem:[%s9650_s13 + $0xa4c] ss:$48 sps:$4 sm:$0xff]  }
 0x468   : > { %6556 = vmatpush1.bf16.msra.mxu0 %v9031_v58  ;;  %v9103_v58 = vld [vmem:[%s9650_s13 + $0x448] ss:$48 sps:$4 sm:$0xff]  }
 0x469   : > { %6597 = vmatpush1.bf16.msra.mxu1 %v9034_v59  ;;  %6607 = vmatprep.subr.bf16.mxu0 %v9039_v60  ;;  %v9106_v59 = vld [vmem:[%s9650_s13 + $0xa48] ss:$48 sps:$4 sm:$0xff]   ;;  %v9111_v60 = vld [vmem:[%s9650_s13 + $0x4ac] ss:$48 sps:$4 sm:$0xff]  }
 0x46a   : > { %6648 = vmatprep.subr.bf16.mxu1 %v9042_v61  ;;  %v9114_v61 = vld [vmem:[%s9650_s13 + $0xaac] ss:$48 sps:$4 sm:$0xff]  }
 0x46b   : > { %6558 = vmatmul.mubr.bf16.vlgmr.msra.gmra.mrb[20].mxu0 %v10184_v32 }
 0x46c   : > { %6599 = vmatmul.mubr.bf16.vlgmr.msra.gmra.mrb[20].mxu1 %v10186_v33  ;;  %6608 = vmatpush1.bf16.msra.mxu0 %v9037_v62  ;;  %v9109_v62 = vld [vmem:[%s9650_s13 + $0x4a8] ss:$48 sps:$4 sm:$0xff]  }
 0x46d   : > { %6639 = vmatprep.mubr.bf16.mxu0 %v10178_v28  ;;  %6649 = vmatpush1.bf16.msra.mxu1 %v9040_v63  ;;  %v9057_v28 = vld [vmem:[%s9650_s13 + $0x14c] ss:$48 sps:$4 sm:$0xff]   ;;  %v9112_v63 = vld [vmem:[%s9650_s13 + $0xaa8] ss:$48 sps:$4 sm:$0xff]  }
 0x46e   : > { %6680 = vmatprep.mubr.bf16.mxu1 %v10180_v29  ;;  %6609 = vmatprep.subr.bf16.mxu0 %v9045_v0  ;;  %v9055_v29 = vld [vmem:[%s9650_s13 + $0x148] ss:$48 sps:$4 sm:$0xff]   ;;  %v9117_v0 = vld [vmem:[%s9650_s13 + $0x50c] ss:$48 sps:$4 sm:$0xff]  }
 0x46f   : > { %6650 = vmatprep.subr.bf16.mxu1 %v9048_v1  ;;  %v9120_v1 = vld [vmem:[%s9650_s13 + $0xb0c] ss:$48 sps:$4 sm:$0xff]  }
 0x470   : > { %6610 = vmatpush1.bf16.msra.mxu0 %v9043_v2  ;;  %v9115_v2 = vld [vmem:[%s9650_s13 + $0x508] ss:$48 sps:$4 sm:$0xff]  }
 0x471   : > { %6651 = vmatpush1.bf16.msra.mxu1 %v9046_v3  ;;  %6611 = vmatprep.subr.bf16.mxu0 %v9051_v4  ;;  %v9118_v3 = vld [vmem:[%s9650_s13 + $0xb08] ss:$48 sps:$4 sm:$0xff]   ;;  %v9123_v4 = vld [vmem:[%s9650_s13 + $0x56c] ss:$48 sps:$4 sm:$0xff]  }
 0x472   : > { %6652 = vmatprep.subr.bf16.mxu1 %v9054_v5  ;;  %v9126_v5 = vld [vmem:[%s9650_s13 + $0xb6c] ss:$48 sps:$4 sm:$0xff]  }
 0x474   : > { %6612 = vmatpush1.bf16.msra.mxu0 %v9049_v6  ;;  %v9121_v6 = vld [vmem:[%s9650_s13 + $0x568] ss:$48 sps:$4 sm:$0xff]  }
 0x475   : > { %6653 = vmatpush1.bf16.msra.mxu1 %v9052_v7  ;;  %6613 = vmatprep.subr.bf16.mxu0 %v9057_v28  ;;  %v9124_v7 = vld [vmem:[%s9650_s13 + $0xb68] ss:$48 sps:$4 sm:$0xff]   ;;  %v9129_v28 = vld [vmem:[%s9650_s13 + $0x5cc] ss:$48 sps:$4 sm:$0xff]  }
 0x476   : > { %6654 = vmatprep.subr.bf16.mxu1 %v9060_v8  ;;  %v9132_v8 = vld [vmem:[%s9650_s13 + $0xbcc] ss:$48 sps:$4 sm:$0xff]  }
 0x478   : > { %6614 = vmatpush1.bf16.msra.mxu0 %v9055_v29  ;;  %v9127_v29 = vld [vmem:[%s9650_s13 + $0x5c8] ss:$48 sps:$4 sm:$0xff]  }
 0x479   : > { %6655 = vmatpush1.bf16.msra.mxu1 %v9058_v9  ;;  %6615 = vmatprep.subr.bf16.mxu0 %v9063_v10  ;;  %v9130_v9 = vld [vmem:[%s9650_s13 + $0xbc8] ss:$48 sps:$4 sm:$0xff]  }
 0x47a   : > { %6656 = vmatprep.subr.bf16.mxu1 %v9066_v11  ;;  %v3881_v11 = vld [vmem:[#allocation11 + $0x20] sm:$0xff] }
 0x47c   : > { %6616 = vmatpush1.bf16.msra.mxu0 %v9061_v12 }
 0x47d   : > { %6657 = vmatpush1.bf16.msra.mxu1 %v9064_v13  ;;  %6617 = vmatprep.subr.bf16.mxu0 %v9069_v14 }
 0x47e   : > { %v6313_v19 = vpop.f32.mrb[8].mxu0  ;;  %v6354_v21 = vpop.f32.mrb[8].mxu1  ;;  %6658 = vmatprep.subr.bf16.mxu1 %v9072_v15  ;;  %v3882_v15 = vld [vmem:[#allocation11 + $0x28] sm:$0xff] }
 0x47f   : > { %v6355_v23 = vadd.f32 %v6354_v21, %v6313_v19  ;;  %v6315_v24 = vpop.f32.mrb[9].mxu0  ;;  %v6356_v26 = vpop.f32.mrb[9].mxu1 }
 0x480   : > { %v6357_v27 = vadd.f32 %v6356_v26, %v6315_v24  ;;  %v6317_v30 = vpop.f32.mrb[10].mxu0  ;;  %v6358_v31 = vpop.f32.mrb[10].mxu1  ;;  %6618 = vmatpush1.bf16.msra.mxu0 %v9067_v16 }
 0x481   : > { %v6691_v35 = vadd.f32 %v6355_v23, %v3879_v20  ;;  %6659 = vmatpush1.bf16.msra.mxu1 %v9070_v17  ;;  %v6318_v36 = vpop.f32.mrb[11].mxu0  ;;  %v6359_v37 = vpop.f32.mrb[11].mxu1  ;;  %6619 = vmatprep.subr.bf16.mxu0 %v9075_v18 }
 0x482   : > { %v6692_v40 = vadd.f32 %v6357_v27, %v3880_v25  ;;  %6660 = vmatprep.subr.bf16.mxu1 %v9078_v22  ;;  %v3884_v27 = vld [vmem:[#allocation11 + $0x38] sm:$0xff] }
 0x483   : > { %6703 = vst [vmem:[#allocation11 + $0x10] sm:$0xff] %v6691_v35 }
 0x484   : > { %6704 = vst [vmem:[#allocation11 + $0x18] sm:$0xff] %v6692_v40  ;;  %6620 = vmatpush1.bf16.msra.mxu0 %v9073_v34 }
 0x485   : > { %6661 = vmatpush1.bf16.msra.mxu1 %v9076_v38  ;;  %6621 = vmatprep.subr.bf16.mxu0 %v9081_v39 }
 0x486   : > { %6662 = vmatprep.subr.bf16.mxu1 %v9084_v41  ;;  %v3885_v41 = vld [vmem:[#allocation11 + $0x40] sm:$0xff] }
 0x488   : > { %6622 = vmatpush1.bf16.msra.mxu0 %v9079_v42 }
 0x489   : > { %6663 = vmatpush1.bf16.msra.mxu1 %v9082_v43  ;;  %6623 = vmatprep.subr.bf16.mxu0 %v9087_v44 }
 0x48a   : > { %6664 = vmatprep.subr.bf16.mxu1 %v9090_v45  ;;  %v3886_v45 = vld [vmem:[#allocation11 + $0x48] sm:$0xff] }
 0x48c   : > { %6624 = vmatpush1.bf16.msra.mxu0 %v9085_v46 }
 0x48d   : > { %6665 = vmatpush1.bf16.msra.mxu1 %v9088_v47  ;;  %6625 = vmatprep.subr.bf16.mxu0 %v9093_v48 }
 0x48e   : > { %6666 = vmatprep.subr.bf16.mxu1 %v9096_v49 }
 0x490   : > { %6626 = vmatpush1.bf16.msra.mxu0 %v9091_v50 }
 0x491   : > { %6667 = vmatpush1.bf16.msra.mxu1 %v9094_v51  ;;  %6627 = vmatprep.subr.bf16.mxu0 %v9099_v52 }
 0x492   : > { %6668 = vmatprep.subr.bf16.mxu1 %v9102_v53 }
 0x494   : > { %6628 = vmatpush1.bf16.msra.mxu0 %v9097_v54 }
 0x495   : > { %6669 = vmatpush1.bf16.msra.mxu1 %v9100_v55  ;;  %6629 = vmatprep.subr.bf16.mxu0 %v9105_v56  ;;  %v3887_v55 = vld [vmem:[#allocation11 + $0x50] sm:$0xff] }
 0x496   : > { %6670 = vmatprep.subr.bf16.mxu1 %v9108_v57 }
 0x498   : > { %6630 = vmatpush1.bf16.msra.mxu0 %v9103_v58 }
 0x499   : > { %6671 = vmatpush1.bf16.msra.mxu1 %v9106_v59  ;;  %6631 = vmatprep.subr.bf16.mxu0 %v9111_v60  ;;  %v3888_v59 = vld [vmem:[#allocation11 + $0x58] sm:$0xff] }
 0x49a   : > { %6672 = vmatprep.subr.bf16.mxu1 %v9114_v61 }
 0x49c   : > { %6632 = vmatpush1.bf16.msra.mxu0 %v9109_v62 }
 0x49d   : > { %6673 = vmatpush1.bf16.msra.mxu1 %v9112_v63  ;;  %6633 = vmatprep.subr.bf16.mxu0 %v9117_v0 }
 0x49e   : > { %6674 = vmatprep.subr.bf16.mxu1 %v9120_v1 }
 0x4a0   : > { %6634 = vmatpush1.bf16.msra.mxu0 %v9115_v2 }
 0x4a1   : > { %6675 = vmatpush1.bf16.msra.mxu1 %v9118_v3  ;;  %6635 = vmatprep.subr.bf16.mxu0 %v9123_v4 }
 0x4a2   : > { %6676 = vmatprep.subr.bf16.mxu1 %v9126_v5 }
 0x4a4   : > { %6636 = vmatpush1.bf16.msra.mxu0 %v9121_v6 }
 0x4a5   : > { %6677 = vmatpush1.bf16.msra.mxu1 %v9124_v7  ;;  %6637 = vmatprep.subr.bf16.mxu0 %v9129_v28 }
 0x4a6   : > { %6678 = vmatprep.subr.bf16.mxu1 %v9132_v8 }
 0x4a8   : > { %6638 = vmatpush1.bf16.msra.mxu0 %v9127_v29 }
 0x4a9   : > { %6679 = vmatpush1.bf16.msra.mxu1 %v9130_v9 }
 0x4ab   : > { %6640 = vmatmul.mubr.bf16.vlgmr.msra.gmra.mrb[24].mxu0 %v10184_v32  ;;  %v3883_v32 = vld [vmem:[#allocation11 + $0x30] sm:$0xff] }
 0x4ac   : > { %6681 = vmatmul.mubr.bf16.vlgmr.msra.gmra.mrb[24].mxu1 %v10186_v33 }
 0x4be   : > { %v6395_v10 = vpop.f32.mrb[12].mxu0 }
 0x4bf   : > { %v6436_v12 = vpop.f32.mrb[12].mxu1  ;;  %v6397_v13 = vpop.f32.mrb[13].mxu0 }
 0x4c0   : > { %v6437_v14 = vadd.f32 %v6436_v12, %v6395_v10  ;;  %v6438_v16 = vpop.f32.mrb[13].mxu1  ;;  %v6399_v17 = vpop.f32.mrb[14].mxu0 }
 0x4c1   : > { %v6439_v18 = vadd.f32 %v6438_v16, %v6397_v13  ;;  %v6440_v19 = vpop.f32.mrb[14].mxu1  ;;  %v6400_v20 = vpop.f32.mrb[15].mxu0 }
 0x4c2   : > { %v6693_v21 = vadd.f32 %v6437_v14, %v3881_v11  ;;  %v6441_v22 = vpop.f32.mrb[15].mxu1 }
 0x4c3   : > { %v6694_v23 = vadd.f32 %v6439_v18, %v3882_v15 }
 0x4c4   : > { %6705 = vst [vmem:[#allocation11 + $0x20] sm:$0xff] %v6693_v21 }
 0x4c5   : > { %6706 = vst [vmem:[#allocation11 + $0x28] sm:$0xff] %v6694_v23 }
 0x4fe   : > { %v6477_v24 = vpop.f32.mrb[16].mxu0 }
 0x4ff   : > { %v6518_v25 = vpop.f32.mrb[16].mxu1  ;;  %v6479_v33 = vpop.f32.mrb[17].mxu0 }
 0x500   : > { %v6519_v26 = vadd.f32 %v6518_v25, %v6477_v24  ;;  %v6520_v30 = vpop.f32.mrb[17].mxu1  ;;  %v6481_v31 = vpop.f32.mrb[18].mxu0 }
 0x501   : > { %v6521_v34 = vadd.f32 %v6520_v30, %v6479_v33  ;;  %v6522_v35 = vpop.f32.mrb[18].mxu1  ;;  %v6482_v36 = vpop.f32.mrb[19].mxu0 }
 0x502   : > { %v6695_v37 = vadd.f32 %v6519_v26, %v3883_v32  ;;  %v6523_v38 = vpop.f32.mrb[19].mxu1 }
 0x503   : > { %v6696_v39 = vadd.f32 %v6521_v34, %v3884_v27 }
 0x504   : > { %6707 = vst [vmem:[#allocation11 + $0x30] sm:$0xff] %v6695_v37 }
 0x505   : > { %6708 = vst [vmem:[#allocation11 + $0x38] sm:$0xff] %v6696_v39 }
 0x53e   : > { %v6559_v40 = vpop.f32.mrb[20].mxu0 }
 0x53f   : > { %v6600_v42 = vpop.f32.mrb[20].mxu1  ;;  %v6561_v43 = vpop.f32.mrb[21].mxu0 }
 0x540   : > { %v6601_v44 = vadd.f32 %v6600_v42, %v6559_v40  ;;  %v6602_v46 = vpop.f32.mrb[21].mxu1  ;;  %v6563_v47 = vpop.f32.mrb[22].mxu0 }
 0x541   : > { %v6603_v48 = vadd.f32 %v6602_v46, %v6561_v43  ;;  %v6604_v49 = vpop.f32.mrb[22].mxu1  ;;  %v6564_v50 = vpop.f32.mrb[23].mxu0 }
 0x542   : > { %v6697_v51 = vadd.f32 %v6601_v44, %v3885_v41  ;;  %v6605_v52 = vpop.f32.mrb[23].mxu1 }
 0x543   : > { %v6698_v53 = vadd.f32 %v6603_v48, %v3886_v45 }
 0x544   : > { %6709 = vst [vmem:[#allocation11 + $0x40] sm:$0xff] %v6697_v51 }
 0x545   : > { %6710 = vst [vmem:[#allocation11 + $0x48] sm:$0xff] %v6698_v53 }
 0x57e   : > { %v6641_v54 = vpop.f32.mrb[24].mxu0 }
 0x57f   : > { %v6682_v56 = vpop.f32.mrb[24].mxu1  ;;  %v6643_v57 = vpop.f32.mrb[25].mxu0 }
 0x580   : > { %v6683_v58 = vadd.f32 %v6682_v56, %v6641_v54  ;;  %v6684_v60 = vpop.f32.mrb[25].mxu1  ;;  %v6645_v61 = vpop.f32.mrb[26].mxu0 }
 0x581   : > { %v6685_v62 = vadd.f32 %v6684_v60, %v6643_v57  ;;  %v6686_v63 = vpop.f32.mrb[26].mxu1  ;;  %v6646_v0 = vpop.f32.mrb[27].mxu0 }
 0x582   : > { %v6699_v1 = vadd.f32 %v6683_v58, %v3887_v55  ;;  %v6687_v2 = vpop.f32.mrb[27].mxu1 }
 0x583   : > { %v6700_v3 = vadd.f32 %v6685_v62, %v3888_v59 }
 0x584   : > { %6711 = vst [vmem:[#allocation11 + $0x50] sm:$0xff] %v6699_v1 }
 0x585   : > { %6712 = vst [vmem:[#allocation11 + $0x58] sm:$0xff] %v6700_v3 }
 0x586   : > { %9292 = shalt.err (!%p9289_p13)
}
 0x587   : > { %s9293_s11 = scalar_lea.hbm %s10574_s5, 1536 }
 0x588   : > { %p9294_p3 = scmp.ne.s32.totalorder %s10574_s5, %s9293_s11  ;;  %p9299_p9 = scmp.lt.u32.totalorder %s9293_s11, %s10574_s5 }
 0x58a   : > { %p9295_p1 = pnand %p9294_p3, %p7822_p12 }
 0x58c   : > { %p9296_p4 = pneg %p9295_p1 }
 0x58e   : > { %p9301_p5 = pnand %p9299_p9, %p9296_p4 }
 0x590   : > { %9304 = shalt.err (!%p9301_p5)
}
 0x591   : > { %7797 = dma.vmem_to_hbm [thread:$0]  (%p7822_p12), %s6724_s26, 1536, %s10574_s5, [#allocation4]  }
 0x592   : > { %9346 = dma.done.wait (%p7822_p12), [#allocation4], 1536  }
 0x593   : > { %9348 = vsyncadd (%p7822_p12), [#allocation4], 4294965760 }
 0x594 PF: > { %s23_s23 = sadd.s32 1, %s9371_s23   ;;  %s10613_s14 = sld [smem:[#allocation17_spill]] }
 0x595   : > { %p20_p2 = scmp.ge.s32.totalorder %s23_s23, 6   ;;  %s10614_s20 = sld [smem:[#allocation19_spill]] }
 0x596   : > { %s10615_s9 = sld [smem:[#allocation18_spill]]  ;;  %s10616_s18 = smov %s9355_s19 }
 0x597   : > { %s10618_s21 = smov %s9367_s22  ;;  %22 = sbr.rel (!%p20_p2) target bundleno = 11 (0xb), region = 116 }
 0x59a   : > { %s10617_s19 = smov %s10613_s14 }
 0x59c   : > { %s10619_s22 = smov %s10615_s9 }
 0x59e   :  { %6736 = vsyncpa [#allocation3], 1 }
 0x59f   :  { %6738 = vsyncpa [#allocation3 + $0x1], 1 }
 0x5a0   :  { %6739 = vsyncpa [#allocation6], 1 }
 0x5a1   :  { %6741 = vsyncpa [#allocation6 + $0x1], 1 }
 0x5a2   :  { %6742 = vsyncpa [#allocation9], 1 }
 0x5a3   :  { %6744 = vsyncpa [#allocation9 + $0x1], 1 }
 0x5a4   :  { %6745 = vsyncpa [#allocation4], 1 }
 0x5a5   :  { %6747 = vsyncpa [#allocation4 + $0x1], 1 }

</bundles_post_ra>
